<compile_context>
chip_gen: v7x
topology: tpu7x:2x2x1
jax: 0.10.0
libtpu: 0.0.40
codegen_flags: <defaults>
</compile_context>

<pallas_src>
import functools

import jax
import jax.numpy as jnp
from jax.experimental import pallas as pl
from jax.experimental.pallas import tpu as pltpu

LANE = 128
VMEM_LIMIT = 48 * 1024 * 1024


def _round_up(n, m):
    return ((n + m - 1) // m) * m


# ----------------------------------------------------------------------------
# Kernel: 1x1 conv as row-tiled matmul + per-channel shift (+ optional ReLU).
# ----------------------------------------------------------------------------
def _pw_conv_kernel(x_ref, w_ref, b_ref, o_ref, *, relu):
    y = jnp.dot(x_ref[0], w_ref[...], preferred_element_type=jnp.float32)
    y = y + b_ref[...]
    if relu:
        y = jnp.maximum(y, 0.0)
    o_ref[0] = y.astype(o_ref.dtype)


def pointwise_conv(x, w, b, *, relu, tm):
    B, HWp, Cin = x.shape
    Cout = w.shape[1]
    T = HWp // tm
    cost = pl.CostEstimate(
        flops=2 * B * HWp * Cin * Cout, transcendentals=0,
        bytes_accessed=2 * B * HWp * (Cin + Cout) + 2 * Cin * Cout + 4 * Cout)
    return pl.pallas_call(
        functools.partial(_pw_conv_kernel, relu=relu),
        out_shape=jax.ShapeDtypeStruct((B, HWp, Cout), jnp.bfloat16),
        grid_spec=pltpu.PrefetchScalarGridSpec(
            num_scalar_prefetch=0,
            grid=(B, T),
            in_specs=[
                pl.BlockSpec((1, tm, Cin), lambda bb, t: (bb, t, 0)),
                pl.BlockSpec((Cin, Cout), lambda bb, t: (0, 0)),
                pl.BlockSpec((1, Cout), lambda bb, t: (0, 0)),
            ],
            out_specs=pl.BlockSpec((1, tm, Cout), lambda bb, t: (bb, t, 0)),
        ),
        compiler_params=pltpu.CompilerParams(
            dimension_semantics=("parallel", "parallel"),
            vmem_limit_bytes=VMEM_LIMIT),
        cost_estimate=cost,
    )(x, w, b)


# ----------------------------------------------------------------------------
# Kernel: 1x1 conv + shift, fused with the SE global-average-pool accumulation.
# Pool output is a fp32 (1,1,Cout) accumulator carried across the t axis.
# ----------------------------------------------------------------------------
def _pw_conv_pool_kernel(x_ref, w_ref, b_ref, o_ref, pool_ref, *, hw, tm):
    t = pl.program_id(1)
    y = jnp.dot(x_ref[0], w_ref[...], preferred_element_type=jnp.float32)
    y = y + b_ref[...]
    o_ref[0] = y.astype(o_ref.dtype)

    if hw % tm != 0:  # mask padded tail rows out of the pooled sum
        rows = jax.lax.broadcasted_iota(jnp.int32, y.shape, 0)
        y = jnp.where(rows + t * tm < hw, y, 0.0)
    psum = jnp.sum(y, axis=0, keepdims=True)  # (1, Cout) fp32

    @pl.when(t == 0)
    def _():
        pool_ref[...] = jnp.zeros_like(pool_ref)

    pool_ref[...] += psum[None]


def pointwise_conv_pool(x, w, b, *, tm, hw):
    B, HWp, Cin = x.shape
    Cout = w.shape[1]
    T = HWp // tm
    cost = pl.CostEstimate(
        flops=2 * B * HWp * Cin * Cout, transcendentals=0,
        bytes_accessed=2 * B * HWp * (Cin + Cout) + 2 * Cin * Cout + 4 * Cout)
    return pl.pallas_call(
        functools.partial(_pw_conv_pool_kernel, hw=hw, tm=tm),
        out_shape=(jax.ShapeDtypeStruct((B, HWp, Cout), jnp.bfloat16),
                   jax.ShapeDtypeStruct((B, 1, Cout), jnp.float32)),
        grid_spec=pltpu.PrefetchScalarGridSpec(
            num_scalar_prefetch=0,
            grid=(B, T),
            in_specs=[
                pl.BlockSpec((1, tm, Cin), lambda bb, t: (bb, t, 0)),
                pl.BlockSpec((Cin, Cout), lambda bb, t: (0, 0)),
                pl.BlockSpec((1, Cout), lambda bb, t: (0, 0)),
            ],
            out_specs=[
                pl.BlockSpec((1, tm, Cout), lambda bb, t: (bb, t, 0)),
                pl.BlockSpec((1, 1, Cout), lambda bb, t: (bb, 0, 0)),
            ],
        ),
        compiler_params=pltpu.CompilerParams(
            dimension_semantics=("parallel", "arbitrary"),
            vmem_limit_bytes=VMEM_LIMIT),
        cost_estimate=cost,
    )(x, w, b)


# ----------------------------------------------------------------------------
# Kernel: 3x3/stride-1/pad-1 conv + shift + ReLU via 9 shifted-slice matmuls
# on a spatially padded VMEM tile (no HBM im2col).
# ----------------------------------------------------------------------------
def _conv3x3_kernel(xp_ref, w_ref, b_ref, o_ref, acc_ref, *, H, W):
    C = xp_ref.shape[3]
    acc_ref[...] = jnp.zeros_like(acc_ref)
    for kh in range(3):
        for kw in range(3):
            patch = xp_ref[0, kh:kh + H, kw:kw + W, :].reshape(H * W, C)
            acc_ref[...] += jnp.dot(patch, w_ref[kh * 3 + kw],
                                    preferred_element_type=jnp.float32)
    y = jnp.maximum(acc_ref[...] + b_ref[...], 0.0)
    o_ref[0] = y.astype(o_ref.dtype)


def conv3x3(xp, w_taps, b, *, H, W):
    B, Hp, Wp, C = xp.shape
    Cout = w_taps.shape[2]
    cost = pl.CostEstimate(
        flops=2 * 9 * B * H * W * C * Cout, transcendentals=0,
        bytes_accessed=2 * B * Hp * Wp * C + 2 * 9 * C * Cout + 2 * B * H * W * Cout)
    return pl.pallas_call(
        functools.partial(_conv3x3_kernel, H=H, W=W),
        out_shape=jax.ShapeDtypeStruct((B, H * W, Cout), jnp.bfloat16),
        grid_spec=pltpu.PrefetchScalarGridSpec(
            num_scalar_prefetch=0,
            grid=(B,),
            in_specs=[
                pl.BlockSpec((1, Hp, Wp, C), lambda bb: (bb, 0, 0, 0)),
                pl.BlockSpec((9, C, Cout), lambda bb: (0, 0, 0)),
                pl.BlockSpec((1, Cout), lambda bb: (0, 0)),
            ],
            out_specs=pl.BlockSpec((1, H * W, Cout), lambda bb: (bb, 0, 0)),
            scratch_shapes=[pltpu.VMEM((H * W, Cout), jnp.float32)],
        ),
        compiler_params=pltpu.CompilerParams(
            dimension_semantics=("parallel",),
            vmem_limit_bytes=VMEM_LIMIT),
        cost_estimate=cost,
    )(xp, w_taps, b)


# ----------------------------------------------------------------------------
# Kernel: SE channel scale + residual add + final ReLU (tiled elementwise).
# ----------------------------------------------------------------------------
def _scale_res_relu_kernel(x_ref, r_ref, s_ref, o_ref):
    y = x_ref[0].astype(jnp.float32) * s_ref[0] + r_ref[0].astype(jnp.float32)
    o_ref[0] = jnp.maximum(y, 0.0).astype(o_ref.dtype)


def scale_residual_relu(x, res, scales, *, tm):
    B, HWp, C = x.shape
    T = HWp // tm
    cost = pl.CostEstimate(
        flops=2 * B * HWp * C, transcendentals=0,
        bytes_accessed=3 * 2 * B * HWp * C + 4 * B * C)
    return pl.pallas_call(
        _scale_res_relu_kernel,
        out_shape=jax.ShapeDtypeStruct((B, HWp, C), jnp.bfloat16),
        grid_spec=pltpu.PrefetchScalarGridSpec(
            num_scalar_prefetch=0,
            grid=(B, T),
            in_specs=[
                pl.BlockSpec((1, tm, C), lambda bb, t: (bb, t, 0)),
                pl.BlockSpec((1, tm, C), lambda bb, t: (bb, t, 0)),
                pl.BlockSpec((1, 1, C), lambda bb, t: (bb, 0, 0)),
            ],
            out_specs=pl.BlockSpec((1, tm, C), lambda bb, t: (bb, t, 0)),
        ),
        compiler_params=pltpu.CompilerParams(
            dimension_semantics=("parallel", "parallel"),
            vmem_limit_bytes=VMEM_LIMIT),
        cost_estimate=cost,
        input_output_aliases={0: 0},
    )(x, res, scales)


# ----------------------------------------------------------------------------
# Full SEBottleneck forward (NCHW in / NCHW out).
# ----------------------------------------------------------------------------
def se_bottleneck_forward(x_nchw, p, *, tile_m=512):
    B, Cin, H, W = x_nchw.shape
    Cinp, C1p = p["w1"].shape
    C4p = p["w3"].shape[1]
    C4 = p["se_w2"].shape[1]
    assert Cin == C4, "downsample=None residual requires in_channels == out_channels*4"
    assert Cinp == C4p
    HW = H * W

    tm = max(8, (min(tile_m, HW) // 8) * 8)
    T = -(-HW // tm)
    HWp = T * tm

    def pad_rows(a):
        if a.shape[1] == HWp:
            return a
        return jnp.pad(a, ((0, 0), (0, HWp - a.shape[1]), (0, 0)))

    x = jnp.transpose(x_nchw, (0, 2, 3, 1)).astype(jnp.bfloat16)       # NCHW -> NHWC
    x = jnp.pad(x, ((0, 0), (0, 0), (0, 0), (0, Cinp - Cin)))          # lane-dense channels
    x_rows = pad_rows(x.reshape(B, HW, Cinp))

    # conv1 (1x1) + bn1 + relu
    o1 = pointwise_conv(x_rows, p["w1"], p["b1"], relu=True, tm=tm)
    o1 = o1[:, :HW].reshape(B, H, W, C1p)

    # conv2 (3x3, pad 1) + bn2 + relu  -- halo'd in-VMEM taps, no im2col
    o1p = jnp.pad(o1, ((0, 0), (1, 1), (1, 1), (0, 0)))
    o2 = conv3x3(o1p, p["w2"], p["b2"], H=H, W=W)                      # (B, HW, C1p)

    # conv3 (1x1) + bn3, fused with SE global-average-pool accumulation
    o3, psum = pointwise_conv_pool(pad_rows(o2), p["w3"], p["b3"], tm=tm, hw=HW)

    # SE excitation (tiny): fc -> relu -> fc -> sigmoid  (plain JAX on (B, C))
    y = psum[:, 0, :C4] * (1.0 / HW)
    h = jnp.maximum(y @ p["se_w1"], 0.0)
    s = jax.nn.sigmoid(h @ p["se_w2"])                                 # (B, C4)
    s = jnp.pad(s, ((0, 0), (0, C4p - C4)))[:, None, :]                # (B, 1, C4p)

    # channel scale + residual add + final relu
    out = scale_residual_relu(o3, x_rows, s, tm=tm)                    # (B, HWp, C4p)
    out = out[:, :HW, :C4].reshape(B, H, W, C4)
    return jnp.transpose(out, (0, 3, 1, 2)).astype(jnp.float32)        # NHWC -> NCHW


# ----------------------------------------------------------------------------
# Deterministic parameters (PyTorch __init__ shapes; BN folded, lane-padded).
# ----------------------------------------------------------------------------
def init_params(key, in_channels, out_channels, reduction=16):
    C1 = out_channels
    C4 = out_channels * 4
    Cinp = _round_up(in_channels, LANE)
    C1p = _round_up(C1, LANE)
    C4p = _round_up(C4, LANE)
    eps = 1e-5
    ks = jax.random.split(key, 20)

    def bn_fold(kg, kb, km, kv, C, conv_bias=None):
        gamma = jax.random.uniform(kg, (C,), minval=0.5, maxval=1.5)
        beta = jax.random.normal(kb, (C,)) * 0.1
        mean = jax.random.normal(km, (C,)) * 0.1
        var = jax.random.uniform(kv, (C,), minval=0.5, maxval=1.5)
        scale = gamma / jnp.sqrt(var + eps)
        bias = jnp.zeros((C,), jnp.float32) if conv_bias is None else conv_bias
        shift = beta + (bias - mean) * scale
        return scale.astype(jnp.float32), shift.astype(jnp.float32)

    def pad_w(w, rp, cp):
        r, c = w.shape[-2:]
        pads = [(0, 0)] * (w.ndim - 2) + [(0, rp - r), (0, cp - c)]
        return jnp.pad(w, pads)

    def pad_b(b, cp):
        return jnp.pad(b, ((0, cp - b.shape[0]),)).reshape(1, cp).astype(jnp.float32)

    # conv1: torch (C1, Cin, 1, 1), no bias; fold bn1 scale into columns.
    w1_t = jax.random.normal(ks[0], (C1, in_channels, 1, 1)) / jnp.sqrt(in_channels)
    s1, b1 = bn_fold(ks[1], ks[2], ks[3], ks[4], C1)
    w1 = w1_t[:, :, 0, 0].T * s1[None, :]
    w1 = pad_w(w1, Cinp, C1p).astype(jnp.bfloat16)

    # conv2: torch (C1, C1, 3, 3), bias=True; 9 taps of (Cin, Cout), bn2 folded.
    w2_t = jax.random.normal(ks[5], (C1, C1, 3, 3)) / jnp.sqrt(9 * C1)
    conv2_bias = (jax.random.normal(ks[6], (C1,)) * 0.05).astype(jnp.float32)
    s2, b2 = bn_fold(ks[7], ks[8], ks[9], ks[10], C1, conv_bias=conv2_bias)
    w2_taps = jnp.transpose(w2_t, (2, 3, 1, 0)).reshape(9, C1, C1) * s2[None, None, :]
    w2 = pad_w(w2_taps, C1p, C1p).astype(jnp.bfloat16)

    # conv3: torch (C4, C1, 1, 1), no bias; fold bn3 scale into columns.
    w3_t = jax.random.normal(ks[11], (C4, C1, 1, 1)) / jnp.sqrt(C1)
    s3, b3 = bn_fold(ks[12], ks[13], ks[14], ks[15], C4)
    w3 = w3_t[:, :, 0, 0].T * s3[None, :]
    w3 = pad_w(w3, C1p, C4p).astype(jnp.bfloat16)

    # SE: Linear(C4, C4//r, bias=False), Linear(C4//r, C4, bias=False)
    r = C4 // reduction
    se_w1 = (jax.random.normal(ks[16], (C4, r)) / jnp.sqrt(C4)).astype(jnp.float32)
    se_w2 = (jax.random.normal(ks[17], (r, C4)) / jnp.sqrt(r)).astype(jnp.float32)

    return dict(w1=w1, b1=pad_b(b1, C1p),
                w2=w2, b2=pad_b(b2, C1p),
                w3=w3, b3=pad_b(b3, C4p),
                se_w1=se_w1, se_w2=se_w2)


# ----------------------------------------------------------------------------
# Pure-JAX reference with the same dtype policy (checks the Pallas plumbing).
# ----------------------------------------------------------------------------
def reference(x_nchw, p):
    B, Cin, H, W = x_nchw.shape
    Cinp, C1p = p["w1"].shape
    C4p = p["w3"].shape[1]
    C4 = p["se_w2"].shape[1]
    HW = H * W

    x = jnp.transpose(x_nchw, (0, 2, 3, 1)).astype(jnp.bfloat16)
    x = jnp.pad(x, ((0, 0), (0, 0), (0, 0), (0, Cinp - Cin)))

    y1 = jnp.dot(x.reshape(-1, Cinp), p["w1"],
                 preferred_element_type=jnp.float32) + p["b1"]
    o1 = jnp.maximum(y1, 0.0).astype(jnp.bfloat16).reshape(B, H, W, C1p)

    xp = jnp.pad(o1, ((0, 0), (1, 1), (1, 1), (0, 0)))
    acc = jnp.zeros((B, HW, C1p), jnp.float32)
    for kh in range(3):
        for kw in range(3):
            patch = xp[:, kh:kh + H, kw:kw + W, :].reshape(B, HW, C1p)
            acc = acc + jnp.einsum("bnc,cd->bnd", patch, p["w2"][kh * 3 + kw],
                                   preferred_element_type=jnp.float32)
    o2 = jnp.maximum(acc + p["b2"][None], 0.0).astype(jnp.bfloat16)

    y3 = jnp.einsum("bnc,cd->bnd", o2, p["w3"],
                    preferred_element_type=jnp.float32) + p["b3"][None]
    o3 = y3.astype(jnp.bfloat16)
    pooled = jnp.sum(y3, axis=1) * (1.0 / HW)                          # (B, C4p) fp32

    h = jnp.maximum(pooled[:, :C4] @ p["se_w1"], 0.0)
    s = jax.nn.sigmoid(h @ p["se_w2"])                                 # (B, C4)
    sp = jnp.pad(s, ((0, 0), (0, C4p - C4)))

    res = x.reshape(B, HW, Cinp).astype(jnp.float32)
    out = jnp.maximum(o3.astype(jnp.float32) * sp[:, None, :] + res, 0.0)
    out = out.astype(jnp.bfloat16)[:, :, :C4].reshape(B, H, W, C4)
    return jnp.transpose(out, (0, 3, 1, 2)).astype(jnp.float32)


if __name__ == "__main__":
    key = jax.random.PRNGKey(0)
    kx, kp = jax.random.split(key)

    # residual add (downsample=None) requires in_channels == out_channels * 4
    in_channels, out_channels, H, W, B = 32, 8, 16, 16, 2
    x = jax.random.normal(kx, (B, in_channels, H, W), dtype=jnp.float32)
    params = init_params(kp, in_channels, out_channels, reduction=16)

    fwd = jax.jit(se_bottleneck_forward)
    out = jax.block_until_ready(fwd(x, params))
    assert out.shape == (B, out_channels * 4, H, W), out.shape

    ref = jax.block_until_ready(reference(x, params))
    max_err = float(jnp.max(jnp.abs(out - ref)))
    if jnp.allclose(out, ref, rtol=2e-2, atol=2e-2):
        print("KERNEL_OK")
    else:
        print("MISMATCH", max_err)
</pallas_src>

<mosaic_0001>
module attributes {stable_mosaic.version = 11 : i64} {
  func.func @_pw_conv_kernel(%arg0: i32, %arg1: i32, %arg2: memref<1x256x128xbf16, #tpu.memory_space<vmem>>, %arg3: memref<128x128xbf16, #tpu.memory_space<vmem>>, %arg4: memref<1x128xf32, #tpu.memory_space<vmem>>, %arg5: memref<1x256x128xbf16, #tpu.memory_space<vmem>>) attributes {dimension_semantics = [#tpu.dimension_semantics<parallel>, #tpu.dimension_semantics<parallel>], iteration_bounds = array<i64: 2, 1>, scalar_prefetch = 0 : i64, scratch_operands = 0 : i64, tpu.core_type = #tpu.core_type<tc>, window_params = [{transform_indices = @transform_0, window_bounds = array<i64: 1, 256, 128>}, {pipeline_mode = #tpu.pipeline_mode<synchronous>, transform_indices = @transform_1, window_bounds = array<i64: 128, 128>}, {pipeline_mode = #tpu.pipeline_mode<synchronous>, transform_indices = @transform_2, window_bounds = array<i64: 1, 128>}, {transform_indices = @transform_3, window_bounds = array<i64: 1, 256, 128>}]} {
    %c0 = arith.constant 0 : index
    %c0_0 = arith.constant 0 : index
    %c0_1 = arith.constant 0 : index
    %0 = vector.load %arg2[%c0, %c0_0, %c0_1] : memref<1x256x128xbf16, #tpu.memory_space<vmem>>, vector<1x256x128xbf16>
    %1 = vector.shape_cast %0 : vector<1x256x128xbf16> to vector<256x128xbf16>
    %c0_2 = arith.constant 0 : index
    %c0_3 = arith.constant 0 : index
    %2 = vector.load %arg3[%c0_2, %c0_3] : memref<128x128xbf16, #tpu.memory_space<vmem>>, vector<128x128xbf16>
    %cst = arith.constant dense<0.000000e+00> : vector<256x128xf32>
    %3 = tpu.matmul %1, %2, %cst {dimension_numbers = #tpu.dot_dimension_numbers<[1], [0], [0], [1], [0, 0, 1, 1], [], []>} : vector<256x128xbf16>, vector<128x128xbf16>, vector<256x128xf32> -> vector<256x128xf32>
    %c0_4 = arith.constant 0 : index
    %c0_5 = arith.constant 0 : index
    %4 = vector.load %arg4[%c0_4, %c0_5] : memref<1x128xf32, #tpu.memory_space<vmem>>, vector<1x128xf32>
    %5 = vector.broadcast %4 : vector<1x128xf32> to vector<256x128xf32>
    %6 = arith.addf %3, %5 : vector<256x128xf32>
    %cst_6 = arith.constant 0.000000e+00 : f32
    %7 = vector.broadcast %cst_6 : f32 to vector<256x128xf32>
    %8 = arith.maximumf %6, %7 : vector<256x128xf32>
    %9 = arith.truncf %8 : vector<256x128xf32> to vector<256x128xbf16>
    %c0_7 = arith.constant 0 : index
    %c0_8 = arith.constant 0 : index
    %c0_9 = arith.constant 0 : index
    %10 = vector.load %arg5[%c0_7, %c0_8, %c0_9] : memref<1x256x128xbf16, #tpu.memory_space<vmem>>, vector<1x256x128xbf16>
    %11 = vector.shape_cast %10 : vector<1x256x128xbf16> to vector<256x128xbf16>
    %12 = vector.shape_cast %9 : vector<256x128xbf16> to vector<1x256x128xbf16>
    tpu.vector_store %arg5[%c0_7, %c0_8, %c0_9], %12 {strides = array<i32>} : memref<1x256x128xbf16, #tpu.memory_space<vmem>>, vector<1x256x128xbf16>,
    return
  }
  func.func @transform_0(%arg0: i32, %arg1: i32) -> (i32, i32, i32) {
    %c0_i32 = arith.constant 0 : i32
    %c0_i32_0 = arith.constant 0 : i32
    return %arg0, %arg1, %c0_i32 : i32, i32, i32
  }
  func.func @transform_1(%arg0: i32, %arg1: i32) -> (i32, i32) {
    %c0_i32 = arith.constant 0 : i32
    %c0_i32_0 = arith.constant 0 : i32
    %c0_i32_1 = arith.constant 0 : i32
    return %c0_i32, %c0_i32_0 : i32, i32
  }
  func.func @transform_2(%arg0: i32, %arg1: i32) -> (i32, i32) {
    %c0_i32 = arith.constant 0 : i32
    %c0_i32_0 = arith.constant 0 : i32
    %c0_i32_1 = arith.constant 0 : i32
    return %c0_i32, %c0_i32_0 : i32, i32
  }
  func.func @transform_3(%arg0: i32, %arg1: i32) -> (i32, i32, i32) {
    %c0_i32 = arith.constant 0 : i32
    %c0_i32_0 = arith.constant 0 : i32
    return %arg0, %arg1, %c0_i32 : i32, i32, i32
  }
}

module attributes {stable_mosaic.version = 11 : i64} {
  func.func @_pw_conv_pool_kernel(%arg0: i32, %arg1: i32, %arg2: memref<1x256x128xbf16, #tpu.memory_space<vmem>>, %arg3: memref<128x128xbf16, #tpu.memory_space<vmem>>, %arg4: memref<1x128xf32, #tpu.memory_space<vmem>>, %arg5: memref<1x256x128xbf16, #tpu.memory_space<vmem>>, %arg6: memref<1x1x128xf32, #tpu.memory_space<vmem>>) attributes {dimension_semantics = [#tpu.dimension_semantics<parallel>, #tpu.dimension_semantics<arbitrary>], iteration_bounds = array<i64: 2, 1>, scalar_prefetch = 0 : i64, scratch_operands = 0 : i64, tpu.core_type = #tpu.core_type<tc>, window_params = [{transform_indices = @transform_0, window_bounds = array<i64: 1, 256, 128>}, {pipeline_mode = #tpu.pipeline_mode<synchronous>, transform_indices = @transform_1, window_bounds = array<i64: 128, 128>}, {pipeline_mode = #tpu.pipeline_mode<synchronous>, transform_indices = @transform_2, window_bounds = array<i64: 1, 128>}, {transform_indices = @transform_3, window_bounds = array<i64: 1, 256, 128>}, {transform_indices = @transform_4, window_bounds = array<i64: 1, 1, 128>}]} {
    %c0 = arith.constant 0 : index
    %c0_0 = arith.constant 0 : index
    %c0_1 = arith.constant 0 : index
    %0 = vector.load %arg2[%c0, %c0_0, %c0_1] : memref<1x256x128xbf16, #tpu.memory_space<vmem>>, vector<1x256x128xbf16>
    %1 = vector.shape_cast %0 : vector<1x256x128xbf16> to vector<256x128xbf16>
    %c0_2 = arith.constant 0 : index
    %c0_3 = arith.constant 0 : index
    %2 = vector.load %arg3[%c0_2, %c0_3] : memref<128x128xbf16, #tpu.memory_space<vmem>>, vector<128x128xbf16>
    %cst = arith.constant dense<0.000000e+00> : vector<256x128xf32>
    %3 = tpu.matmul %1, %2, %cst {dimension_numbers = #tpu.dot_dimension_numbers<[1], [0], [0], [1], [0, 0, 1, 1], [], []>} : vector<256x128xbf16>, vector<128x128xbf16>, vector<256x128xf32> -> vector<256x128xf32>
    %c0_4 = arith.constant 0 : index
    %c0_5 = arith.constant 0 : index
    %4 = vector.load %arg4[%c0_4, %c0_5] : memref<1x128xf32, #tpu.memory_space<vmem>>, vector<1x128xf32>
    %5 = vector.broadcast %4 : vector<1x128xf32> to vector<256x128xf32>
    %6 = arith.addf %3, %5 : vector<256x128xf32>
    %7 = arith.truncf %6 : vector<256x128xf32> to vector<256x128xbf16>
    %c0_6 = arith.constant 0 : index
    %c0_7 = arith.constant 0 : index
    %c0_8 = arith.constant 0 : index
    %8 = vector.load %arg5[%c0_6, %c0_7, %c0_8] : memref<1x256x128xbf16, #tpu.memory_space<vmem>>, vector<1x256x128xbf16>
    %9 = vector.shape_cast %8 : vector<1x256x128xbf16> to vector<256x128xbf16>
    %10 = vector.shape_cast %7 : vector<256x128xbf16> to vector<1x256x128xbf16>
    tpu.vector_store %arg5[%c0_6, %c0_7, %c0_8], %10 {strides = array<i32>} : memref<1x256x128xbf16, #tpu.memory_space<vmem>>, vector<1x256x128xbf16>,
    %cst_9 = arith.constant dense<0.000000e+00> : vector<128xf32>
    %11 = vector.multi_reduction <add>, %6, %cst_9 [0] : vector<256x128xf32> to vector<128xf32>
    %12 = vector.shape_cast %11 : vector<128xf32> to vector<1x128xf32>
    %c0_i32 = arith.constant 0 : i32
    %13 = arith.cmpi eq, %arg1, %c0_i32 : i32
    %14 = arith.extui %13 : i1 to i32
    %c0_i32_10 = arith.constant 0 : i32
    %15 = arith.cmpi ne, %14, %c0_i32_10 : i32
    scf.if %15 {
      %cst_17 = arith.constant 0.000000e+00 : f32
      %20 = vector.broadcast %cst_17 : f32 to vector<1x1x128xf32>
      %c0_18 = arith.constant 0 : index
      %c0_19 = arith.constant 0 : index
      %c0_20 = arith.constant 0 : index
      %21 = vector.load %arg6[%c0_18, %c0_19, %c0_20] : memref<1x1x128xf32, #tpu.memory_space<vmem>>, vector<1x1x128xf32>
      tpu.vector_store %arg6[%c0_18, %c0_19, %c0_20], %20 {strides = array<i32>} : memref<1x1x128xf32, #tpu.memory_space<vmem>>, vector<1x1x128xf32>,
    } else {
    }
    %c0_11 = arith.constant 0 : index
    %c0_12 = arith.constant 0 : index
    %c0_13 = arith.constant 0 : index
    %16 = vector.load %arg6[%c0_11, %c0_12, %c0_13] : memref<1x1x128xf32, #tpu.memory_space<vmem>>, vector<1x1x128xf32>
    %17 = vector.shape_cast %12 : vector<1x128xf32> to vector<1x1x128xf32>
    %18 = arith.addf %16, %17 : vector<1x1x128xf32>
    %c0_14 = arith.constant 0 : index
    %c0_15 = arith.constant 0 : index
    %c0_16 = arith.constant 0 : index
    %19 = vector.load %arg6[%c0_14, %c0_15, %c0_16] : memref<1x1x128xf32, #tpu.memory_space<vmem>>, vector<1x1x128xf32>
    tpu.vector_store %arg6[%c0_14, %c0_15, %c0_16], %18 {strides = array<i32>} : memref<1x1x128xf32, #tpu.memory_space<vmem>>, vector<1x1x128xf32>,
    return
  }
  func.func @transform_0(%arg0: i32, %arg1: i32) -> (i32, i32, i32) {
    %c0_i32 = arith.constant 0 : i32
    %c0_i32_0 = arith.constant 0 : i32
    return %arg0, %arg1, %c0_i32 : i32, i32, i32
  }
  func.func @transform_1(%arg0: i32, %arg1: i32) -> (i32, i32) {
    %c0_i32 = arith.constant 0 : i32
    %c0_i32_0 = arith.constant 0 : i32
    %c0_i32_1 = arith.constant 0 : i32
    return %c0_i32, %c0_i32_0 : i32, i32
  }
  func.func @transform_2(%arg0: i32, %arg1: i32) -> (i32, i32) {
    %c0_i32 = arith.constant 0 : i32
    %c0_i32_0 = arith.constant 0 : i32
    %c0_i32_1 = arith.constant 0 : i32
    return %c0_i32, %c0_i32_0 : i32, i32
  }
  func.func @transform_3(%arg0: i32, %arg1: i32) -> (i32, i32, i32) {
    %c0_i32 = arith.constant 0 : i32
    %c0_i32_0 = arith.constant 0 : i32
    return %arg0, %arg1, %c0_i32 : i32, i32, i32
  }
  func.func @transform_4(%arg0: i32, %arg1: i32) -> (i32, i32, i32) {
    %c0_i32 = arith.constant 0 : i32
    %c0_i32_0 = arith.constant 0 : i32
    %c0_i32_1 = arith.constant 0 : i32
    return %arg0, %c0_i32, %c0_i32_0 : i32, i32, i32
  }
}

module attributes {stable_mosaic.version = 11 : i64} {
  func.func @_conv3x3_kernel(%arg0: i32, %arg1: memref<1x18x18x128xbf16, #tpu.memory_space<vmem>>, %arg2: memref<9x128x128xbf16, #tpu.memory_space<vmem>>, %arg3: memref<1x128xf32, #tpu.memory_space<vmem>>, %arg4: memref<1x256x128xbf16, #tpu.memory_space<vmem>>, %arg5: memref<256x128xf32, #tpu.memory_space<vmem>>) attributes {dimension_semantics = [#tpu.dimension_semantics<parallel>], iteration_bounds = array<i64: 2>, scalar_prefetch = 0 : i64, scratch_operands = 1 : i64, tpu.core_type = #tpu.core_type<tc>, window_params = [{transform_indices = @transform_0, window_bounds = array<i64: 1, 18, 18, 128>}, {pipeline_mode = #tpu.pipeline_mode<synchronous>, transform_indices = @transform_1, window_bounds = array<i64: 9, 128, 128>}, {pipeline_mode = #tpu.pipeline_mode<synchronous>, transform_indices = @transform_2, window_bounds = array<i64: 1, 128>}, {transform_indices = @transform_3, window_bounds = array<i64: 1, 256, 128>}]} {
    %cst = arith.constant 0.000000e+00 : f32
    %0 = vector.broadcast %cst : f32 to vector<256x128xf32>
    %c0 = arith.constant 0 : index
    %c0_0 = arith.constant 0 : index
    %1 = vector.load %arg5[%c0, %c0_0] : memref<256x128xf32, #tpu.memory_space<vmem>>, vector<256x128xf32>
    tpu.vector_store %arg5[%c0, %c0_0], %0 {strides = array<i32>} : memref<256x128xf32, #tpu.memory_space<vmem>>, vector<256x128xf32>,
    %c0_1 = arith.constant 0 : index
    %c0_2 = arith.constant 0 : index
    %c0_3 = arith.constant 0 : index
    %c0_4 = arith.constant 0 : index
    %2 = vector.load %arg1[%c0_1, %c0_2, %c0_3, %c0_4] : memref<1x18x18x128xbf16, #tpu.memory_space<vmem>>, vector<1x16x16x128xbf16>
    %3 = vector.shape_cast %2 : vector<1x16x16x128xbf16> to vector<16x16x128xbf16>
    %4 = vector.shape_cast %3 : vector<16x16x128xbf16> to vector<256x128xbf16>
    %c0_5 = arith.constant 0 : index
    %c0_6 = arith.constant 0 : index
    %5 = vector.load %arg5[%c0_5, %c0_6] : memref<256x128xf32, #tpu.memory_space<vmem>>, vector<256x128xf32>
    %c0_7 = arith.constant 0 : index
    %c0_8 = arith.constant 0 : index
    %c0_9 = arith.constant 0 : index
    %6 = vector.load %arg2[%c0_7, %c0_8, %c0_9] : memref<9x128x128xbf16, #tpu.memory_space<vmem>>, vector<1x128x128xbf16>
    %7 = vector.shape_cast %6 : vector<1x128x128xbf16> to vector<128x128xbf16>
    %cst_10 = arith.constant dense<0.000000e+00> : vector<256x128xf32>
    %8 = tpu.matmul %4, %7, %cst_10 {dimension_numbers = #tpu.dot_dimension_numbers<[1], [0], [0], [1], [0, 0, 1, 1], [], []>} : vector<256x128xbf16>, vector<128x128xbf16>, vector<256x128xf32> -> vector<256x128xf32>
    %9 = arith.addf %5, %8 : vector<256x128xf32>
    %c0_11 = arith.constant 0 : index
    %c0_12 = arith.constant 0 : index
    %10 = vector.load %arg5[%c0_11, %c0_12] : memref<256x128xf32, #tpu.memory_space<vmem>>, vector<256x128xf32>
    tpu.vector_store %arg5[%c0_11, %c0_12], %9 {strides = array<i32>} : memref<256x128xf32, #tpu.memory_space<vmem>>, vector<256x128xf32>,
    %c0_13 = arith.constant 0 : index
    %c0_14 = arith.constant 0 : index
    %c1 = arith.constant 1 : index
    %c0_15 = arith.constant 0 : index
    %11 = vector.load %arg1[%c0_13, %c0_14, %c1, %c0_15] : memref<1x18x18x128xbf16, #tpu.memory_space<vmem>>, vector<1x16x16x128xbf16>
    %12 = vector.shape_cast %11 : vector<1x16x16x128xbf16> to vector<16x16x128xbf16>
    %13 = vector.shape_cast %12 : vector<16x16x128xbf16> to vector<256x128xbf16>
    %c0_16 = arith.constant 0 : index
    %c0_17 = arith.constant 0 : index
    %14 = vector.load %arg5[%c0_16, %c0_17] : memref<256x128xf32, #tpu.memory_space<vmem>>, vector<256x128xf32>
    %c1_18 = arith.constant 1 : index
    %c0_19 = arith.constant 0 : index
    %c0_20 = arith.constant 0 : index
    %15 = vector.load %arg2[%c1_18, %c0_19, %c0_20] : memref<9x128x128xbf16, #tpu.memory_space<vmem>>, vector<1x128x128xbf16>
    %16 = vector.shape_cast %15 : vector<1x128x128xbf16> to vector<128x128xbf16>
    %cst_21 = arith.constant dense<0.000000e+00> : vector<256x128xf32>
    %17 = tpu.matmul %13, %16, %cst_21 {dimension_numbers = #tpu.dot_dimension_numbers<[1], [0], [0], [1], [0, 0, 1, 1], [], []>} : vector<256x128xbf16>, vector<128x128xbf16>, vector<256x128xf32> -> vector<256x128xf32>
    %18 = arith.addf %14, %17 : vector<256x128xf32>
    %c0_22 = arith.constant 0 : index
    %c0_23 = arith.constant 0 : index
    %19 = vector.load %arg5[%c0_22, %c0_23] : memref<256x128xf32, #tpu.memory_space<vmem>>, vector<256x128xf32>
    tpu.vector_store %arg5[%c0_22, %c0_23], %18 {strides = array<i32>} : memref<256x128xf32, #tpu.memory_space<vmem>>, vector<256x128xf32>,
    %c0_24 = arith.constant 0 : index
    %c0_25 = arith.constant 0 : index
    %c2 = arith.constant 2 : index
    %c0_26 = arith.constant 0 : index
    %20 = vector.load %arg1[%c0_24, %c0_25, %c2, %c0_26] : memref<1x18x18x128xbf16, #tpu.memory_space<vmem>>, vector<1x16x16x128xbf16>
    %21 = vector.shape_cast %20 : vector<1x16x16x128xbf16> to vector<16x16x128xbf16>
    %22 = vector.shape_cast %21 : vector<16x16x128xbf16> to vector<256x128xbf16>
    %c0_27 = arith.constant 0 : index
    %c0_28 = arith.constant 0 : index
    %23 = vector.load %arg5[%c0_27, %c0_28] : memref<256x128xf32, #tpu.memory_space<vmem>>, vector<256x128xf32>
    %c2_29 = arith.constant 2 : index
    %c0_30 = arith.constant 0 : index
    %c0_31 = arith.constant 0 : index
    %24 = vector.load %arg2[%c2_29, %c0_30, %c0_31] : memref<9x128x128xbf16, #tpu.memory_space<vmem>>, vector<1x128x128xbf16>
    %25 = vector.shape_cast %24 : vector<1x128x128xbf16> to vector<128x128xbf16>
    %cst_32 = arith.constant dense<0.000000e+00> : vector<256x128xf32>
    %26 = tpu.matmul %22, %25, %cst_32 {dimension_numbers = #tpu.dot_dimension_numbers<[1], [0], [0], [1], [0, 0, 1, 1], [], []>} : vector<256x128xbf16>, vector<128x128xbf16>, vector<256x128xf32> -> vector<256x128xf32>
    %27 = arith.addf %23, %26 : vector<256x128xf32>
    %c0_33 = arith.constant 0 : index
    %c0_34 = arith.constant 0 : index
    %28 = vector.load %arg5[%c0_33, %c0_34] : memref<256x128xf32, #tpu.memory_space<vmem>>, vector<256x128xf32>
    tpu.vector_store %arg5[%c0_33, %c0_34], %27 {strides = array<i32>} : memref<256x128xf32, #tpu.memory_space<vmem>>, vector<256x128xf32>,
    %c0_35 = arith.constant 0 : index
    %c1_36 = arith.constant 1 : index
    %c0_37 = arith.constant 0 : index
    %c0_38 = arith.constant 0 : index
    %29 = vector.load %arg1[%c0_35, %c1_36, %c0_37, %c0_38] : memref<1x18x18x128xbf16, #tpu.memory_space<vmem>>, vector<1x16x16x128xbf16>
    %30 = vector.shape_cast %29 : vector<1x16x16x128xbf16> to vector<16x16x128xbf16>
    %31 = vector.shape_cast %30 : vector<16x16x128xbf16> to vector<256x128xbf16>
    %c0_39 = arith.constant 0 : index
    %c0_40 = arith.constant 0 : index
    %32 = vector.load %arg5[%c0_39, %c0_40] : memref<256x128xf32, #tpu.memory_space<vmem>>, vector<256x128xf32>
    %c3 = arith.constant 3 : index
    %c0_41 = arith.constant 0 : index
    %c0_42 = arith.constant 0 : index
    %33 = vector.load %arg2[%c3, %c0_41, %c0_42] : memref<9x128x128xbf16, #tpu.memory_space<vmem>>, vector<1x128x128xbf16>
    %34 = vector.shape_cast %33 : vector<1x128x128xbf16> to vector<128x128xbf16>
    %cst_43 = arith.constant dense<0.000000e+00> : vector<256x128xf32>
    %35 = tpu.matmul %31, %34, %cst_43 {dimension_numbers = #tpu.dot_dimension_numbers<[1], [0], [0], [1], [0, 0, 1, 1], [], []>} : vector<256x128xbf16>, vector<128x128xbf16>, vector<256x128xf32> -> vector<256x128xf32>
    %36 = arith.addf %32, %35 : vector<256x128xf32>
    %c0_44 = arith.constant 0 : index
    %c0_45 = arith.constant 0 : index
    %37 = vector.load %arg5[%c0_44, %c0_45] : memref<256x128xf32, #tpu.memory_space<vmem>>, vector<256x128xf32>
    tpu.vector_store %arg5[%c0_44, %c0_45], %36 {strides = array<i32>} : memref<256x128xf32, #tpu.memory_space<vmem>>, vector<256x128xf32>,
    %c0_46 = arith.constant 0 : index
    %c1_47 = arith.constant 1 : index
    %c1_48 = arith.constant 1 : index
    %c0_49 = arith.constant 0 : index
    %38 = vector.load %arg1[%c0_46, %c1_47, %c1_48, %c0_49] : memref<1x18x18x128xbf16, #tpu.memory_space<vmem>>, vector<1x16x16x128xbf16>
    %39 = vector.shape_cast %38 : vector<1x16x16x128xbf16> to vector<16x16x128xbf16>
    %40 = vector.shape_cast %39 : vector<16x16x128xbf16> to vector<256x128xbf16>
    %c0_50 = arith.constant 0 : index
    %c0_51 = arith.constant 0 : index
    %41 = vector.load %arg5[%c0_50, %c0_51] : memref<256x128xf32, #tpu.memory_space<vmem>>, vector<256x128xf32>
    %c4 = arith.constant 4 : index
    %c0_52 = arith.constant 0 : index
    %c0_53 = arith.constant 0 : index
    %42 = vector.load %arg2[%c4, %c0_52, %c0_53] : memref<9x128x128xbf16, #tpu.memory_space<vmem>>, vector<1x128x128xbf16>
    %43 = vector.shape_cast %42 : vector<1x128x128xbf16> to vector<128x128xbf16>
    %cst_54 = arith.constant dense<0.000000e+00> : vector<256x128xf32>
    %44 = tpu.matmul %40, %43, %cst_54 {dimension_numbers = #tpu.dot_dimension_numbers<[1], [0], [0], [1], [0, 0, 1, 1], [], []>} : vector<256x128xbf16>, vector<128x128xbf16>, vector<256x128xf32> -> vector<256x128xf32>
    %45 = arith.addf %41, %44 : vector<256x128xf32>
    %c0_55 = arith.constant 0 : index
    %c0_56 = arith.constant 0 : index
    %46 = vector.load %arg5[%c0_55, %c0_56] : memref<256x128xf32, #tpu.memory_space<vmem>>, vector<256x128xf32>
    tpu.vector_store %arg5[%c0_55, %c0_56], %45 {strides = array<i32>} : memref<256x128xf32, #tpu.memory_space<vmem>>, vector<256x128xf32>,
    %c0_57 = arith.constant 0 : index
    %c1_58 = arith.constant 1 : index
    %c2_59 = arith.constant 2 : index
    %c0_60 = arith.constant 0 : index
    %47 = vector.load %arg1[%c0_57, %c1_58, %c2_59, %c0_60] : memref<1x18x18x128xbf16, #tpu.memory_space<vmem>>, vector<1x16x16x128xbf16>
    %48 = vector.shape_cast %47 : vector<1x16x16x128xbf16> to vector<16x16x128xbf16>
    %49 = vector.shape_cast %48 : vector<16x16x128xbf16> to vector<256x128xbf16>
    %c0_61 = arith.constant 0 : index
    %c0_62 = arith.constant 0 : index
    %50 = vector.load %arg5[%c0_61, %c0_62] : memref<256x128xf32, #tpu.memory_space<vmem>>, vector<256x128xf32>
    %c5 = arith.constant 5 : index
    %c0_63 = arith.constant 0 : index
    %c0_64 = arith.constant 0 : index
    %51 = vector.load %arg2[%c5, %c0_63, %c0_64] : memref<9x128x128xbf16, #tpu.memory_space<vmem>>, vector<1x128x128xbf16>
    %52 = vector.shape_cast %51 : vector<1x128x128xbf16> to vector<128x128xbf16>
    %cst_65 = arith.constant dense<0.000000e+00> : vector<256x128xf32>
    %53 = tpu.matmul %49, %52, %cst_65 {dimension_numbers = #tpu.dot_dimension_numbers<[1], [0], [0], [1], [0, 0, 1, 1], [], []>} : vector<256x128xbf16>, vector<128x128xbf16>, vector<256x128xf32> -> vector<256x128xf32>
    %54 = arith.addf %50, %53 : vector<256x128xf32>
    %c0_66 = arith.constant 0 : index
    %c0_67 = arith.constant 0 : index
    %55 = vector.load %arg5[%c0_66, %c0_67] : memref<256x128xf32, #tpu.memory_space<vmem>>, vector<256x128xf32>
    tpu.vector_store %arg5[%c0_66, %c0_67], %54 {strides = array<i32>} : memref<256x128xf32, #tpu.memory_space<vmem>>, vector<256x128xf32>,
    %c0_68 = arith.constant 0 : index
    %c2_69 = arith.constant 2 : index
    %c0_70 = arith.constant 0 : index
    %c0_71 = arith.constant 0 : index
    %56 = vector.load %arg1[%c0_68, %c2_69, %c0_70, %c0_71] : memref<1x18x18x128xbf16, #tpu.memory_space<vmem>>, vector<1x16x16x128xbf16>
    %57 = vector.shape_cast %56 : vector<1x16x16x128xbf16> to vector<16x16x128xbf16>
    %58 = vector.shape_cast %57 : vector<16x16x128xbf16> to vector<256x128xbf16>
    %c0_72 = arith.constant 0 : index
    %c0_73 = arith.constant 0 : index
    %59 = vector.load %arg5[%c0_72, %c0_73] : memref<256x128xf32, #tpu.memory_space<vmem>>, vector<256x128xf32>
    %c6 = arith.constant 6 : index
    %c0_74 = arith.constant 0 : index
    %c0_75 = arith.constant 0 : index
    %60 = vector.load %arg2[%c6, %c0_74, %c0_75] : memref<9x128x128xbf16, #tpu.memory_space<vmem>>, vector<1x128x128xbf16>
    %61 = vector.shape_cast %60 : vector<1x128x128xbf16> to vector<128x128xbf16>
    %cst_76 = arith.constant dense<0.000000e+00> : vector<256x128xf32>
    %62 = tpu.matmul %58, %61, %cst_76 {dimension_numbers = #tpu.dot_dimension_numbers<[1], [0], [0], [1], [0, 0, 1, 1], [], []>} : vector<256x128xbf16>, vector<128x128xbf16>, vector<256x128xf32> -> vector<256x128xf32>
    %63 = arith.addf %59, %62 : vector<256x128xf32>
    %c0_77 = arith.constant 0 : index
    %c0_78 = arith.constant 0 : index
    %64 = vector.load %arg5[%c0_77, %c0_78] : memref<256x128xf32, #tpu.memory_space<vmem>>, vector<256x128xf32>
    tpu.vector_store %arg5[%c0_77, %c0_78], %63 {strides = array<i32>} : memref<256x128xf32, #tpu.memory_space<vmem>>, vector<256x128xf32>,
    %c0_79 = arith.constant 0 : index
    %c2_80 = arith.constant 2 : index
    %c1_81 = arith.constant 1 : index
    %c0_82 = arith.constant 0 : index
    %65 = vector.load %arg1[%c0_79, %c2_80, %c1_81, %c0_82] : memref<1x18x18x128xbf16, #tpu.memory_space<vmem>>, vector<1x16x16x128xbf16>
    %66 = vector.shape_cast %65 : vector<1x16x16x128xbf16> to vector<16x16x128xbf16>
    %67 = vector.shape_cast %66 : vector<16x16x128xbf16> to vector<256x128xbf16>
    %c0_83 = arith.constant 0 : index
    %c0_84 = arith.constant 0 : index
    %68 = vector.load %arg5[%c0_83, %c0_84] : memref<256x128xf32, #tpu.memory_space<vmem>>, vector<256x128xf32>
    %c7 = arith.constant 7 : index
    %c0_85 = arith.constant 0 : index
    %c0_86 = arith.constant 0 : index
    %69 = vector.load %arg2[%c7, %c0_85, %c0_86] : memref<9x128x128xbf16, #tpu.memory_space<vmem>>, vector<1x128x128xbf16>
    %70 = vector.shape_cast %69 : vector<1x128x128xbf16> to vector<128x128xbf16>
    %cst_87 = arith.constant dense<0.000000e+00> : vector<256x128xf32>
    %71 = tpu.matmul %67, %70, %cst_87 {dimension_numbers = #tpu.dot_dimension_numbers<[1], [0], [0], [1], [0, 0, 1, 1], [], []>} : vector<256x128xbf16>, vector<128x128xbf16>, vector<256x128xf32> -> vector<256x128xf32>
    %72 = arith.addf %68, %71 : vector<256x128xf32>
    %c0_88 = arith.constant 0 : index
    %c0_89 = arith.constant 0 : index
    %73 = vector.load %arg5[%c0_88, %c0_89] : memref<256x128xf32, #tpu.memory_space<vmem>>, vector<256x128xf32>
    tpu.vector_store %arg5[%c0_88, %c0_89], %72 {strides = array<i32>} : memref<256x128xf32, #tpu.memory_space<vmem>>, vector<256x128xf32>,
    %c0_90 = arith.constant 0 : index
    %c2_91 = arith.constant 2 : index
    %c2_92 = arith.constant 2 : index
    %c0_93 = arith.constant 0 : index
    %74 = vector.load %arg1[%c0_90, %c2_91, %c2_92, %c0_93] : memref<1x18x18x128xbf16, #tpu.memory_space<vmem>>, vector<1x16x16x128xbf16>
    %75 = vector.shape_cast %74 : vector<1x16x16x128xbf16> to vector<16x16x128xbf16>
    %76 = vector.shape_cast %75 : vector<16x16x128xbf16> to vector<256x128xbf16>
    %c0_94 = arith.constant 0 : index
    %c0_95 = arith.constant 0 : index
    %77 = vector.load %arg5[%c0_94, %c0_95] : memref<256x128xf32, #tpu.memory_space<vmem>>, vector<256x128xf32>
    %c8 = arith.constant 8 : index
    %c0_96 = arith.constant 0 : index
    %c0_97 = arith.constant 0 : index
    %78 = vector.load %arg2[%c8, %c0_96, %c0_97] : memref<9x128x128xbf16, #tpu.memory_space<vmem>>, vector<1x128x128xbf16>
    %79 = vector.shape_cast %78 : vector<1x128x128xbf16> to vector<128x128xbf16>
    %cst_98 = arith.constant dense<0.000000e+00> : vector<256x128xf32>
    %80 = tpu.matmul %76, %79, %cst_98 {dimension_numbers = #tpu.dot_dimension_numbers<[1], [0], [0], [1], [0, 0, 1, 1], [], []>} : vector<256x128xbf16>, vector<128x128xbf16>, vector<256x128xf32> -> vector<256x128xf32>
    %81 = arith.addf %77, %80 : vector<256x128xf32>
    %c0_99 = arith.constant 0 : index
    %c0_100 = arith.constant 0 : index
    %82 = vector.load %arg5[%c0_99, %c0_100] : memref<256x128xf32, #tpu.memory_space<vmem>>, vector<256x128xf32>
    tpu.vector_store %arg5[%c0_99, %c0_100], %81 {strides = array<i32>} : memref<256x128xf32, #tpu.memory_space<vmem>>, vector<256x128xf32>,
    %c0_101 = arith.constant 0 : index
    %c0_102 = arith.constant 0 : index
    %83 = vector.load %arg5[%c0_101, %c0_102] : memref<256x128xf32, #tpu.memory_space<vmem>>, vector<256x128xf32>
    %c0_103 = arith.constant 0 : index
    %c0_104 = arith.constant 0 : index
    %84 = vector.load %arg3[%c0_103, %c0_104] : memref<1x128xf32, #tpu.memory_space<vmem>>, vector<1x128xf32>
    %85 = vector.broadcast %84 : vector<1x128xf32> to vector<256x128xf32>
    %86 = arith.addf %83, %85 : vector<256x128xf32>
    %cst_105 = arith.constant 0.000000e+00 : f32
    %87 = vector.broadcast %cst_105 : f32 to vector<256x128xf32>
    %88 = arith.maximumf %86, %87 : vector<256x128xf32>
    %89 = arith.truncf %88 : vector<256x128xf32> to vector<256x128xbf16>
    %c0_106 = arith.constant 0 : index
    %c0_107 = arith.constant 0 : index
    %c0_108 = arith.constant 0 : index
    %90 = vector.load %arg4[%c0_106, %c0_107, %c0_108] : memref<1x256x128xbf16, #tpu.memory_space<vmem>>, vector<1x256x128xbf16>
    %91 = vector.shape_cast %90 : vector<1x256x128xbf16> to vector<256x128xbf16>
    %92 = vector.shape_cast %89 : vector<256x128xbf16> to vector<1x256x128xbf16>
    tpu.vector_store %arg4[%c0_106, %c0_107, %c0_108], %92 {strides = array<i32>} : memref<1x256x128xbf16, #tpu.memory_space<vmem>>, vector<1x256x128xbf16>,
    return
  }
  func.func @transform_0(%arg0: i32) -> (i32, i32, i32, i32) {
    %c0_i32 = arith.constant 0 : i32
    %c0_i32_0 = arith.constant 0 : i32
    %c0_i32_1 = arith.constant 0 : i32
    %c0_i32_2 = arith.constant 0 : i32
    return %arg0, %c0_i32, %c0_i32_0, %c0_i32_1 : i32, i32, i32, i32
  }
  func.func @transform_1(%arg0: i32) -> (i32, i32, i32) {
    %c0_i32 = arith.constant 0 : i32
    %c0_i32_0 = arith.constant 0 : i32
    %c0_i32_1 = arith.constant 0 : i32
    %c0_i32_2 = arith.constant 0 : i32
    return %c0_i32, %c0_i32_0, %c0_i32_1 : i32, i32, i32
  }
  func.func @transform_2(%arg0: i32) -> (i32, i32) {
    %c0_i32 = arith.constant 0 : i32
    %c0_i32_0 = arith.constant 0 : i32
    %c0_i32_1 = arith.constant 0 : i32
    return %c0_i32, %c0_i32_0 : i32, i32
  }
  func.func @transform_3(%arg0: i32) -> (i32, i32, i32) {
    %c0_i32 = arith.constant 0 : i32
    %c0_i32_0 = arith.constant 0 : i32
    %c0_i32_1 = arith.constant 0 : i32
    return %arg0, %c0_i32, %c0_i32_0 : i32, i32, i32
  }
}

module attributes {stable_mosaic.version = 11 : i64} {
  func.func @_scale_res_relu_kernel(%arg0: i32, %arg1: i32, %arg2: memref<1x256x128xbf16, #tpu.memory_space<vmem>>, %arg3: memref<1x256x128xbf16, #tpu.memory_space<vmem>>, %arg4: memref<1x1x128xf32, #tpu.memory_space<vmem>>, %arg5: memref<1x256x128xbf16, #tpu.memory_space<vmem>>) attributes {dimension_semantics = [#tpu.dimension_semantics<parallel>, #tpu.dimension_semantics<parallel>], iteration_bounds = array<i64: 2, 1>, scalar_prefetch = 0 : i64, scratch_operands = 0 : i64, tpu.core_type = #tpu.core_type<tc>, window_params = [{transform_indices = @transform_0, window_bounds = array<i64: 1, 256, 128>}, {transform_indices = @transform_1, window_bounds = array<i64: 1, 256, 128>}, {transform_indices = @transform_2, window_bounds = array<i64: 1, 1, 128>}, {transform_indices = @transform_3, window_bounds = array<i64: 1, 256, 128>}]} {
    %c0 = arith.constant 0 : index
    %c0_0 = arith.constant 0 : index
    %c0_1 = arith.constant 0 : index
    %0 = vector.load %arg2[%c0, %c0_0, %c0_1] : memref<1x256x128xbf16, #tpu.memory_space<vmem>>, vector<1x256x128xbf16>
    %1 = vector.shape_cast %0 : vector<1x256x128xbf16> to vector<256x128xbf16>
    %2 = arith.extf %1 : vector<256x128xbf16> to vector<256x128xf32>
    %c0_2 = arith.constant 0 : index
    %c0_3 = arith.constant 0 : index
    %c0_4 = arith.constant 0 : index
    %3 = vector.load %arg4[%c0_2, %c0_3, %c0_4] : memref<1x1x128xf32, #tpu.memory_space<vmem>>, vector<1x1x128xf32>
    %4 = vector.shape_cast %3 : vector<1x1x128xf32> to vector<1x128xf32>
    %5 = vector.broadcast %4 : vector<1x128xf32> to vector<256x128xf32>
    %6 = arith.mulf %2, %5 : vector<256x128xf32>
    %c0_5 = arith.constant 0 : index
    %c0_6 = arith.constant 0 : index
    %c0_7 = arith.constant 0 : index
    %7 = vector.load %arg3[%c0_5, %c0_6, %c0_7] : memref<1x256x128xbf16, #tpu.memory_space<vmem>>, vector<1x256x128xbf16>
    %8 = vector.shape_cast %7 : vector<1x256x128xbf16> to vector<256x128xbf16>
    %9 = arith.extf %8 : vector<256x128xbf16> to vector<256x128xf32>
    %10 = arith.addf %6, %9 : vector<256x128xf32>
    %cst = arith.constant 0.000000e+00 : f32
    %11 = vector.broadcast %cst : f32 to vector<256x128xf32>
    %12 = arith.maximumf %10, %11 : vector<256x128xf32>
    %13 = arith.truncf %12 : vector<256x128xf32> to vector<256x128xbf16>
    %c0_8 = arith.constant 0 : index
    %c0_9 = arith.constant 0 : index
    %c0_10 = arith.constant 0 : index
    %14 = vector.load %arg5[%c0_8, %c0_9, %c0_10] : memref<1x256x128xbf16, #tpu.memory_space<vmem>>, vector<1x256x128xbf16>
    %15 = vector.shape_cast %14 : vector<1x256x128xbf16> to vector<256x128xbf16>
    %16 = vector.shape_cast %13 : vector<256x128xbf16> to vector<1x256x128xbf16>
    tpu.vector_store %arg5[%c0_8, %c0_9, %c0_10], %16 {strides = array<i32>} : memref<1x256x128xbf16, #tpu.memory_space<vmem>>, vector<1x256x128xbf16>,
    return
  }
  func.func @transform_0(%arg0: i32, %arg1: i32) -> (i32, i32, i32) {
    %c0_i32 = arith.constant 0 : i32
    %c0_i32_0 = arith.constant 0 : i32
    return %arg0, %arg1, %c0_i32 : i32, i32, i32
  }
  func.func @transform_1(%arg0: i32, %arg1: i32) -> (i32, i32, i32) {
    %c0_i32 = arith.constant 0 : i32
    %c0_i32_0 = arith.constant 0 : i32
    return %arg0, %arg1, %c0_i32 : i32, i32, i32
  }
  func.func @transform_2(%arg0: i32, %arg1: i32) -> (i32, i32, i32) {
    %c0_i32 = arith.constant 0 : i32
    %c0_i32_0 = arith.constant 0 : i32
    %c0_i32_1 = arith.constant 0 : i32
    return %arg0, %c0_i32, %c0_i32_0 : i32, i32, i32
  }
  func.func @transform_3(%arg0: i32, %arg1: i32) -> (i32, i32, i32) {
    %c0_i32 = arith.constant 0 : i32
    %c0_i32_0 = arith.constant 0 : i32
    return %arg0, %arg1, %c0_i32 : i32, i32, i32
  }
}

</mosaic_0001>

<bundles_post_ra>
// kernel: se_bottleneck_forward.4
= control target key start
LH: loop header
LB: loop body
LE: loop exit
PB: predicated region body
PF: predicated region fallthrough
CT: control target
= control target key end

     0   :  { %s1227_s12 = smov 0   ;;  %s1229_s13 = smov 0   ;;  %s1364_s0 = inlined_call_operand.vmem [shape: bf16[2,256,128], index: 0, kind: input, shape index: {}]   ;;  %s1365_s1 = inlined_call_operand.vmem [shape: bf16[128,128], index: 1, kind: input, shape index: {}]   ;;  %s1366_s2 = inlined_call_operand.vmem [shape: f32[1,128], index: 2, kind: input, shape index: {}]   ;;  %s1367_s3 = inlined_call_operand.vmem [shape: bf16[2,256,128], index: 3, kind: output, shape index: {}]  }
   0x1   :  { %s1231_s14 = smov 0  }
   0x2 LB: > { %s25_s15 = sadd.s32 1, %s1201_s13  ;;  %p854_p0 = scmp.ge.s32.totalorder %s1205_s14, 1  ;;  %s1205_s14 = sphi %s1231_s14, %s13_s14   ;;  %s1201_s13 = sphi %s1229_s13, %s1369_s13   ;;  %s1197_s12 = sphi %s1227_s12, %s1368_s12  }
   0x3   : > { %p27_p1 = scmp.ge.s32.totalorder %s25_s15, 2  ;;  %p158_p2 = scmp.lt.s32.totalorder %s1205_s14, 3 }
   0x5   : > { %s1371_s15 = smov (%p27_p1, %s25_s15), 0  ;;  %p159_p3 = pnand %p854_p0, %p158_p2 }
   0x6   : > { %v1159_v0 = vld [vmem:[%s1365_s1] sm:$0xff] (!%p159_p3)   ;;  %p191_p4 = scmp.lt.s32.totalorder (!%p159_p3), %s1197_s12, 1  ;;  %v1160_v1 = vld [vmem:[%s1365_s1 + $0x8] sm:$0xff] (!%p159_p3)   ;;  %v1161_v2 = vld [vmem:[%s1365_s1 + $0x10] sm:$0xff] (!%p159_p3)  }
   0x7   : > { %162 = sbr.rel (%p159_p3) target bundleno = 285 (0x11d), region = 32  ;;  %1071 = vmatprep.subr.bf16.mxu0 (!%p159_p3), %v1159_v0  ;;  %1119 = vmatprep.subr.bf16.mxu1 (!%p159_p3), %v1159_v0  ;;  %v1162_v3 = vld [vmem:[%s1365_s1 + $0x18] sm:$0xff] (!%p159_p3)   ;;  %v1163_v6 = vld [vmem:[%s1365_s1 + $0x20] sm:$0xff] (!%p159_p3)   ;;  %v1164_v7 = vld [vmem:[%s1365_s1 + $0x28] sm:$0xff] (!%p159_p3)  }
   0x8   : > { %1072 = vmatpush3.bf16.msra.mxu0 (!%p159_p3), %v1159_v0  ;;  %1127 = vmatpush3.bf16.msra.mxu1 (!%p159_p3), %v1159_v0  ;;  %v1165_v8 = vld [vmem:[%s1365_s1 + $0x30] sm:$0xff] (!%p159_p3)   ;;  %v1166_v9 = vld [vmem:[%s1365_s1 + $0x38] sm:$0xff] (!%p159_p3)   ;;  %v1298_v24 = vld [vmem:[%s1366_s2] ss:$0 sm:$0xff] (!%p159_p3) }
   0x9   : > { %1073 = vmatprep.subr.bf16.mxu0 (!%p159_p3), %v1160_v1  ;;  %1120 = vmatprep.subr.bf16.mxu1 (!%p159_p3), %v1160_v1 }
   0xc   : > { %1074 = vmatpush3.bf16.msra.mxu0 (!%p159_p3), %v1160_v1  ;;  %1128 = vmatpush3.bf16.msra.mxu1 (!%p159_p3), %v1160_v1 }
   0xd   : > { %1075 = vmatprep.subr.bf16.mxu0 (!%p159_p3), %v1161_v2  ;;  %1121 = vmatprep.subr.bf16.mxu1 (!%p159_p3), %v1161_v2 }
   0xe   : > { %s1373_s12 = smov (!%p191_p4, %s1197_s12), 1 }
   0xf   : > { %s918_s22 = sshll.u32 %s1373_s12, 7 }
  0x10   : > { %s1262_s25 = scalar_lea.vmem %s1364_s0, %s918_s22  ;;  %1076 = vmatpush3.bf16.msra.mxu0 %v1161_v2  ;;  %1129 = vmatpush3.bf16.msra.mxu1 %v1161_v2  ;;  %s1313_s17 = scalar_lea.vmem %s1367_s3, %s918_s22 }
  0x11   : > { %v1167_v4 = vld [vmem:[%s1262_s25] sm:$0xff]   ;;  %1077 = vmatprep.subr.bf16.mxu0 %v1162_v3  ;;  %1122 = vmatprep.subr.bf16.mxu1 %v1162_v3  ;;  %v1169_v10 = vld [vmem:[%s1262_s25 + $0x8] sm:$0xff]   ;;  %v1171_v12 = vld [vmem:[%s1262_s25 + $0x10] sm:$0xff]  }
  0x12   : > { %v1168_v5 = vld [vmem:[%s1262_s25 + $0x40] sm:$0xff]   ;;  %1087 = vmatprep.mubr.bf16.mxu0 %v1167_v4  ;;  %v1170_v11 = vld [vmem:[%s1262_s25 + $0x48] sm:$0xff]   ;;  %v1172_v13 = vld [vmem:[%s1262_s25 + $0x50] sm:$0xff]  }
  0x13   : > { %1103 = vmatprep.mubr.bf16.mxu1 %v1168_v5  ;;  %v1173_v14 = vld [vmem:[%s1262_s25 + $0x18] sm:$0xff]   ;;  %v1175_v16 = vld [vmem:[%s1262_s25 + $0x20] sm:$0xff]   ;;  %v1177_v18 = vld [vmem:[%s1262_s25 + $0x28] sm:$0xff]  }
  0x14   : > { %1078 = vmatpush3.bf16.msra.mxu0 %v1162_v3  ;;  %1130 = vmatpush3.bf16.msra.mxu1 %v1162_v3  ;;  %v1174_v15 = vld [vmem:[%s1262_s25 + $0x58] sm:$0xff]   ;;  %v1176_v17 = vld [vmem:[%s1262_s25 + $0x60] sm:$0xff]   ;;  %v1178_v19 = vld [vmem:[%s1262_s25 + $0x68] sm:$0xff]  }
  0x15   : > { %1079 = vmatprep.subr.bf16.mxu0 %v1163_v6  ;;  %1123 = vmatprep.subr.bf16.mxu1 %v1163_v6  ;;  %v1179_v20 = vld [vmem:[%s1262_s25 + $0x30] sm:$0xff]   ;;  %v1181_v22 = vld [vmem:[%s1262_s25 + $0x38] sm:$0xff]  }
  0x16   : > { %v1180_v21 = vld [vmem:[%s1262_s25 + $0x70] sm:$0xff]   ;;  %v1182_v23 = vld [vmem:[%s1262_s25 + $0x78] sm:$0xff]  }
  0x18   : > { %1080 = vmatpush3.bf16.msra.mxu0 %v1163_v6  ;;  %1131 = vmatpush3.bf16.msra.mxu1 %v1163_v6 }
  0x19   : > { %1081 = vmatprep.subr.bf16.mxu0 %v1164_v7  ;;  %1124 = vmatprep.subr.bf16.mxu1 %v1164_v7 }
  0x1c   : > { %1082 = vmatpush3.bf16.msra.mxu0 %v1164_v7  ;;  %1132 = vmatpush3.bf16.msra.mxu1 %v1164_v7 }
  0x1d   : > { %1083 = vmatprep.subr.bf16.mxu0 %v1165_v8  ;;  %1125 = vmatprep.subr.bf16.mxu1 %v1165_v8 }
  0x20   : > { %1084 = vmatpush3.bf16.msra.mxu0 %v1165_v8  ;;  %1133 = vmatpush3.bf16.msra.mxu1 %v1165_v8 }
  0x21   : > { %1085 = vmatprep.subr.bf16.mxu0 %v1166_v9  ;;  %1126 = vmatprep.subr.bf16.mxu1 %v1166_v9 }
  0x24   : > { %1086 = vmatpush3.bf16.msra.mxu0 %v1166_v9  ;;  %1134 = vmatpush3.bf16.msra.mxu1 %v1166_v9 }
  0x27   : > { %1088 = vmatmul.mubr.bf16.vlgmr.msra.gmra.mrb[0].mxu0 %v1169_v10  ;;  %1104 = vmatmul.mubr.bf16.vlgmr.msra.gmra.mrb[0].mxu1 %v1170_v11 }
  0x28   : > { %1091 = vmatprep.mubr.bf16.mxu0 %v1171_v12  ;;  %1107 = vmatprep.mubr.bf16.mxu1 %v1172_v13 }
  0x2f   : > { %1092 = vmatmul.mubr.bf16.gmra.mrb[4].mxu0 %v1173_v14  ;;  %1108 = vmatmul.mubr.bf16.gmra.mrb[4].mxu1 %v1174_v15 }
  0x30   : > { %1095 = vmatprep.mubr.bf16.mxu0 %v1175_v16  ;;  %1111 = vmatprep.mubr.bf16.mxu1 %v1176_v17 }
  0x37   : > { %1096 = vmatmul.mubr.bf16.gmra.mrb[8].mxu0 %v1177_v18  ;;  %1112 = vmatmul.mubr.bf16.gmra.mrb[8].mxu1 %v1178_v19 }
  0x38   : > { %1099 = vmatprep.mubr.bf16.mxu0 %v1179_v20  ;;  %1115 = vmatprep.mubr.bf16.mxu1 %v1180_v21 }
  0x3f   : > { %1100 = vmatmul.mubr.bf16.gmra.mrb[12].mxu0 %v1181_v22  ;;  %1116 = vmatmul.mubr.bf16.gmra.mrb[12].mxu1 %v1182_v23 }
  0xfa   : > { %v1089_v25 = vpop.f32.mrb[0].mxu0  ;;  %v1105_v26 = vpop.f32.mrb[0].mxu1 }
  0xfb   : > { %v453_v27 = vadd.f32 %v1089_v25, %v1298_v24  ;;  %v517_v28 = vadd.f32 %v1105_v26, %v1298_v24  ;;  %v444_v29 = vpop.f32.mrb[1].mxu0  ;;  %v508_v30 = vpop.f32.mrb[1].mxu1 }
  0xfc   : > { %v445_v31 = vadd.f32 %v1298_v24, %v444_v29  ;;  %v509_v32 = vadd.f32 %v1298_v24, %v508_v30  ;;  %v1090_v33 = vpop.f32.mrb[2].mxu0  ;;  %v1106_v34 = vpop.f32.mrb[2].mxu1 }
  0xfd   : > { %v456_v35 = vadd.f32 %v1090_v33, %v1298_v24  ;;  %v520_v36 = vadd.f32 %v1106_v34, %v1298_v24  ;;  %v447_v37 = vpop.f32.mrb[3].mxu0  ;;  %v511_v38 = vpop.f32.mrb[3].mxu1  ;;  %v573_v41 = vmax.f32 %v453_v27, 0.0  ;;  %v589_v42 = vmax.f32 %v517_v28, 0.0 }
  0xfe   : > { %v448_v39 = vadd.f32 %v1298_v24, %v447_v37  ;;  %v512_v40 = vadd.f32 %v1298_v24, %v511_v38  ;;  %v571_v45 = vmax.f32 %v445_v31, 0.0  ;;  %v587_v46 = vmax.f32 %v509_v32, 0.0 }
  0xff   : > { %v574_v43 = vmax.f32 %v456_v35, 0.0  ;;  %v590_v44 = vmax.f32 %v520_v36, 0.0 }
 0x100   : > { %v572_v47 = vmax.f32 %v448_v39, 0.0  ;;  %v588_v48 = vmax.f32 %v512_v40, 0.0 }
 0x101   : > { %v960_v49 = vpack.c.bf16 %v574_v43, %v573_v41  ;;  %v1000_v50 = vpack.c.bf16 %v590_v44, %v589_v42 }
 0x102   : > { %v955_v51 = vpack.c.bf16 %v572_v47, %v571_v45  ;;  %v995_v52 = vpack.c.bf16 %v588_v48, %v587_v46  ;;  %v1093_v53 = vpop.f32.mrb[4].mxu0  ;;  %v1109_v54 = vpop.f32.mrb[4].mxu1 }
 0x103   : > { %1032 = vst [vmem:[%s1313_s17 + $0x8] sm:$0xff] %v960_v49   ;;  %1040 = vst [vmem:[%s1313_s17 + $0x48] sm:$0xff] %v1000_v50   ;;  %v469_v55 = vadd.f32 %v1093_v53, %v1298_v24  ;;  %v533_v56 = vadd.f32 %v1109_v54, %v1298_v24  ;;  %v460_v57 = vpop.f32.mrb[5].mxu0  ;;  %v524_v58 = vpop.f32.mrb[5].mxu1 }
 0x104   : > { %956 = vst [vmem:[%s1313_s17] sm:$0xff] %v955_v51   ;;  %1039 = vst [vmem:[%s1313_s17 + $0x40] sm:$0xff] %v995_v52   ;;  %v461_v59 = vadd.f32 %v1298_v24, %v460_v57  ;;  %v525_v60 = vadd.f32 %v1298_v24, %v524_v58  ;;  %v1094_v61 = vpop.f32.mrb[6].mxu0  ;;  %v1110_v62 = vpop.f32.mrb[6].mxu1 }
 0x105   : > { %v472_v63 = vadd.f32 %v1094_v61, %v1298_v24  ;;  %v536_v0 = vadd.f32 %v1110_v62, %v1298_v24  ;;  %v463_v1 = vpop.f32.mrb[7].mxu0  ;;  %v527_v2 = vpop.f32.mrb[7].mxu1  ;;  %v577_v5 = vmax.f32 %v469_v55, 0.0  ;;  %v593_v6 = vmax.f32 %v533_v56, 0.0 }
 0x106   : > { %v464_v3 = vadd.f32 %v1298_v24, %v463_v1  ;;  %v528_v4 = vadd.f32 %v1298_v24, %v527_v2  ;;  %v575_v9 = vmax.f32 %v461_v59, 0.0  ;;  %v591_v10 = vmax.f32 %v525_v60, 0.0 }
 0x107   : > { %v578_v7 = vmax.f32 %v472_v63, 0.0  ;;  %v594_v8 = vmax.f32 %v536_v0, 0.0 }
 0x108   : > { %v576_v11 = vmax.f32 %v464_v3, 0.0  ;;  %v592_v12 = vmax.f32 %v528_v4, 0.0 }
 0x109   : > { %v970_v13 = vpack.c.bf16 %v578_v7, %v577_v5  ;;  %v1010_v14 = vpack.c.bf16 %v594_v8, %v593_v6 }
 0x10a   : > { %v965_v15 = vpack.c.bf16 %v576_v11, %v575_v9  ;;  %v1005_v16 = vpack.c.bf16 %v592_v12, %v591_v10  ;;  %v1097_v17 = vpop.f32.mrb[8].mxu0  ;;  %v1113_v18 = vpop.f32.mrb[8].mxu1 }
 0x10b   : > { %1034 = vst [vmem:[%s1313_s17 + $0x18] sm:$0xff] %v970_v13   ;;  %1042 = vst [vmem:[%s1313_s17 + $0x58] sm:$0xff] %v1010_v14   ;;  %v485_v19 = vadd.f32 %v1097_v17, %v1298_v24  ;;  %v549_v20 = vadd.f32 %v1113_v18, %v1298_v24  ;;  %v476_v21 = vpop.f32.mrb[9].mxu0  ;;  %v540_v22 = vpop.f32.mrb[9].mxu1 }
 0x10c   : > { %1033 = vst [vmem:[%s1313_s17 + $0x10] sm:$0xff] %v965_v15   ;;  %1041 = vst [vmem:[%s1313_s17 + $0x50] sm:$0xff] %v1005_v16   ;;  %v477_v23 = vadd.f32 %v1298_v24, %v476_v21  ;;  %v541_v25 = vadd.f32 %v1298_v24, %v540_v22  ;;  %v1098_v26 = vpop.f32.mrb[10].mxu0  ;;  %v1114_v27 = vpop.f32.mrb[10].mxu1 }
 0x10d   : > { %v488_v28 = vadd.f32 %v1098_v26, %v1298_v24  ;;  %v552_v29 = vadd.f32 %v1114_v27, %v1298_v24  ;;  %v479_v30 = vpop.f32.mrb[11].mxu0  ;;  %v543_v31 = vpop.f32.mrb[11].mxu1  ;;  %v581_v34 = vmax.f32 %v485_v19, 0.0  ;;  %v597_v35 = vmax.f32 %v549_v20, 0.0 }
 0x10e   : > { %v480_v32 = vadd.f32 %v1298_v24, %v479_v30  ;;  %v544_v33 = vadd.f32 %v1298_v24, %v543_v31  ;;  %v579_v38 = vmax.f32 %v477_v23, 0.0  ;;  %v595_v39 = vmax.f32 %v541_v25, 0.0 }
 0x10f   : > { %v582_v36 = vmax.f32 %v488_v28, 0.0  ;;  %v598_v37 = vmax.f32 %v552_v29, 0.0 }
 0x110   : > { %v580_v40 = vmax.f32 %v480_v32, 0.0  ;;  %v596_v41 = vmax.f32 %v544_v33, 0.0 }
 0x111   : > { %v980_v42 = vpack.c.bf16 %v582_v36, %v581_v34  ;;  %v1020_v43 = vpack.c.bf16 %v598_v37, %v597_v35 }
 0x112   : > { %v975_v44 = vpack.c.bf16 %v580_v40, %v579_v38  ;;  %v1015_v45 = vpack.c.bf16 %v596_v41, %v595_v39  ;;  %v1101_v46 = vpop.f32.mrb[12].mxu0  ;;  %v1117_v47 = vpop.f32.mrb[12].mxu1 }
 0x113   : > { %1036 = vst [vmem:[%s1313_s17 + $0x28] sm:$0xff] %v980_v42   ;;  %1044 = vst [vmem:[%s1313_s17 + $0x68] sm:$0xff] %v1020_v43   ;;  %v501_v48 = vadd.f32 %v1101_v46, %v1298_v24  ;;  %v565_v49 = vadd.f32 %v1117_v47, %v1298_v24  ;;  %v492_v50 = vpop.f32.mrb[13].mxu0  ;;  %v556_v51 = vpop.f32.mrb[13].mxu1 }
 0x114   : > { %1035 = vst [vmem:[%s1313_s17 + $0x20] sm:$0xff] %v975_v44   ;;  %1043 = vst [vmem:[%s1313_s17 + $0x60] sm:$0xff] %v1015_v45   ;;  %v493_v52 = vadd.f32 %v1298_v24, %v492_v50  ;;  %v557_v53 = vadd.f32 %v1298_v24, %v556_v51  ;;  %v1102_v54 = vpop.f32.mrb[14].mxu0  ;;  %v1118_v55 = vpop.f32.mrb[14].mxu1 }
 0x115   : > { %v504_v56 = vadd.f32 %v1102_v54, %v1298_v24  ;;  %v568_v57 = vadd.f32 %v1118_v55, %v1298_v24  ;;  %v495_v58 = vpop.f32.mrb[15].mxu0  ;;  %v559_v59 = vpop.f32.mrb[15].mxu1  ;;  %v585_v62 = vmax.f32 %v501_v48, 0.0  ;;  %v601_v63 = vmax.f32 %v565_v49, 0.0 }
 0x116   : > { %v496_v60 = vadd.f32 %v1298_v24, %v495_v58  ;;  %v560_v61 = vadd.f32 %v1298_v24, %v559_v59  ;;  %v583_v2 = vmax.f32 %v493_v52, 0.0  ;;  %v599_v3 = vmax.f32 %v557_v53, 0.0 }
 0x117   : > { %v586_v0 = vmax.f32 %v504_v56, 0.0  ;;  %v602_v1 = vmax.f32 %v568_v57, 0.0 }
 0x118   : > { %v584_v4 = vmax.f32 %v496_v60, 0.0  ;;  %v600_v5 = vmax.f32 %v560_v61, 0.0 }
 0x119   : > { %v990_v6 = vpack.c.bf16 %v586_v0, %v585_v62  ;;  %v1030_v7 = vpack.c.bf16 %v602_v1, %v601_v63 }
 0x11a   : > { %v985_v8 = vpack.c.bf16 %v584_v4, %v583_v2  ;;  %v1025_v9 = vpack.c.bf16 %v600_v5, %v599_v3 }
 0x11b   : > { %1038 = vst [vmem:[%s1313_s17 + $0x38] sm:$0xff] %v990_v6   ;;  %1046 = vst [vmem:[%s1313_s17 + $0x78] sm:$0xff] %v1030_v7  }
 0x11c   : > { %1037 = vst [vmem:[%s1313_s17 + $0x30] sm:$0xff] %v985_v8   ;;  %1045 = vst [vmem:[%s1313_s17 + $0x70] sm:$0xff] %v1025_v9  }
 0x11d PF: > { %s13_s14 = sadd.s32 1, %s1205_s14   ;;  %s1368_s12 = smov %s1201_s13 }
 0x11e   : > { %p10_p5 = scmp.ge.s32.totalorder %s13_s14, 4   ;;  %s1369_s13 = smov %s1371_s15 }
 0x120   :  { %12 = sbr.rel (!%p10_p5) target bundleno = 2 (0x2), region = 62 }

// kernel: se_bottleneck_forward.6
= control target key start
LH: loop header
LB: loop body
LE: loop exit
PB: predicated region body
PF: predicated region fallthrough
CT: control target
= control target key end

     0   :  { %s1308_s15 = smov 0   ;;  %s1310_s16 = smov 0   ;;  %s1490_s0 = inlined_call_operand.vmem [shape: bf16[2,256,128], index: 0, kind: input, shape index: {}]   ;;  %s1491_s1 = inlined_call_operand.vmem [shape: bf16[128,128], index: 1, kind: input, shape index: {}]   ;;  %s1492_s2 = inlined_call_operand.vmem [shape: f32[1,128], index: 2, kind: input, shape index: {}]   ;;  %s1493_s3 = inlined_call_operand.vmem [shape: bf16[2,256,128], index: 3, kind: output, shape index: {0}]   ;;  %s1494_s4 = inlined_call_operand.vmem [shape: f32[2,1,128], index: 4, kind: output, shape index: {1}]  }
   0x1   :  { %s1312_s17 = smov 0  }
   0x2 LB: > { %s27_s18 = sadd.s32 1, %s1276_s16  ;;  %p928_p0 = scmp.ge.s32.totalorder %s1280_s17, 1  ;;  %s1280_s17 = sphi %s1312_s17, %s15_s17   ;;  %s1276_s16 = sphi %s1310_s16, %s1496_s16   ;;  %s1272_s15 = sphi %s1308_s15, %s1495_s15  }
   0x3   : > { %p29_p1 = scmp.ge.s32.totalorder %s27_s18, 2  ;;  %p186_p2 = scmp.lt.s32.totalorder %s1280_s17, 3 }
   0x5   : > { %s1498_s18 = smov (%p29_p1, %s27_s18), 0  ;;  %p187_p3 = pnand %p928_p0, %p186_p2 }
   0x6   : > { %v1234_v0 = vld [vmem:[%s1491_s1] sm:$0xff] (!%p187_p3)   ;;  %p224_p4 = scmp.lt.s32.totalorder (!%p187_p3), %s1272_s15, 1  ;;  %v1235_v1 = vld [vmem:[%s1491_s1 + $0x8] sm:$0xff] (!%p187_p3)   ;;  %v1236_v2 = vld [vmem:[%s1491_s1 + $0x10] sm:$0xff] (!%p187_p3)   ;;  %v1282_v24 = vmov (!%p187_p3), 0.0  }
   0x7   : > { %190 = sbr.rel (%p187_p3) target bundleno = 333 (0x14d), region = 32  ;;  %1145 = vmatprep.subr.bf16.mxu0 (!%p187_p3), %v1234_v0  ;;  %1193 = vmatprep.subr.bf16.mxu1 (!%p187_p3), %v1234_v0  ;;  %v1237_v3 = vld [vmem:[%s1491_s1 + $0x18] sm:$0xff] (!%p187_p3)   ;;  %v1238_v5 = vld [vmem:[%s1491_s1 + $0x20] sm:$0xff] (!%p187_p3)   ;;  %v1239_v6 = vld [vmem:[%s1491_s1 + $0x28] sm:$0xff] (!%p187_p3)  }
   0x8   : > { %1146 = vmatpush3.bf16.msra.mxu0 (!%p187_p3), %v1234_v0  ;;  %1201 = vmatpush3.bf16.msra.mxu1 (!%p187_p3), %v1234_v0  ;;  %v1240_v8 = vld [vmem:[%s1491_s1 + $0x30] sm:$0xff] (!%p187_p3)   ;;  %v1241_v9 = vld [vmem:[%s1491_s1 + $0x38] sm:$0xff] (!%p187_p3)   ;;  %v1386_v26 = vld [vmem:[%s1492_s2] ss:$0 sm:$0xff] (!%p187_p3) }
   0x9   : > { %1147 = vmatprep.subr.bf16.mxu0 (!%p187_p3), %v1235_v1  ;;  %1194 = vmatprep.subr.bf16.mxu1 (!%p187_p3), %v1235_v1 }
   0xc   : > { %1148 = vmatpush3.bf16.msra.mxu0 (!%p187_p3), %v1235_v1  ;;  %1202 = vmatpush3.bf16.msra.mxu1 (!%p187_p3), %v1235_v1 }
   0xd   : > { %1149 = vmatprep.subr.bf16.mxu0 (!%p187_p3), %v1236_v2  ;;  %1195 = vmatprep.subr.bf16.mxu1 (!%p187_p3), %v1236_v2 }
   0xe   : > { %s1500_s15 = smov (!%p224_p4, %s1272_s15), 1 }
   0xf   : > { %s992_s25 = sshll.u32 %s1500_s15, 7  ;;  %s1380_s19 = scalar_lea.vmem %s1494_s4, %s1500_s15 }
  0x10   : > { %s1343_s28 = scalar_lea.vmem %s1490_s0, %s992_s25  ;;  %1150 = vmatpush3.bf16.msra.mxu0 %v1236_v2  ;;  %1203 = vmatpush3.bf16.msra.mxu1 %v1236_v2  ;;  %808 = vst [vmem:[%s1380_s19] sm:$0x1] %v1282_v24  ;;  %s1405_s24 = scalar_lea.vmem %s1493_s3, %s992_s25 }
  0x11   : > { %v1242_v4 = vld [vmem:[%s1343_s28] sm:$0xff]   ;;  %1151 = vmatprep.subr.bf16.mxu0 %v1237_v3  ;;  %1196 = vmatprep.subr.bf16.mxu1 %v1237_v3  ;;  %v1243_v10 = vld [vmem:[%s1343_s28 + $0x8] sm:$0xff]   ;;  %v1244_v12 = vld [vmem:[%s1343_s28 + $0x10] sm:$0xff]  }
  0x12   : > { %1161 = vmatprep.mubr.bf16.mxu0 %v1242_v4  ;;  %v1250_v7 = vld [vmem:[%s1343_s28 + $0x40] sm:$0xff]   ;;  %v1251_v11 = vld [vmem:[%s1343_s28 + $0x48] sm:$0xff]   ;;  %v1252_v13 = vld [vmem:[%s1343_s28 + $0x50] sm:$0xff]  }
  0x13   : > { %1177 = vmatprep.mubr.bf16.mxu1 %v1250_v7  ;;  %v1245_v14 = vld [vmem:[%s1343_s28 + $0x18] sm:$0xff]   ;;  %v1246_v16 = vld [vmem:[%s1343_s28 + $0x20] sm:$0xff]   ;;  %v1247_v18 = vld [vmem:[%s1343_s28 + $0x28] sm:$0xff]  }
  0x14   : > { %1152 = vmatpush3.bf16.msra.mxu0 %v1237_v3  ;;  %1204 = vmatpush3.bf16.msra.mxu1 %v1237_v3  ;;  %v1253_v15 = vld [vmem:[%s1343_s28 + $0x58] sm:$0xff]   ;;  %v1254_v17 = vld [vmem:[%s1343_s28 + $0x60] sm:$0xff]   ;;  %v1255_v19 = vld [vmem:[%s1343_s28 + $0x68] sm:$0xff]  }
  0x15   : > { %1153 = vmatprep.subr.bf16.mxu0 %v1238_v5  ;;  %1197 = vmatprep.subr.bf16.mxu1 %v1238_v5  ;;  %v1248_v20 = vld [vmem:[%s1343_s28 + $0x30] sm:$0xff]   ;;  %v1249_v22 = vld [vmem:[%s1343_s28 + $0x38] sm:$0xff]  }
  0x16   : > { %v1256_v21 = vld [vmem:[%s1343_s28 + $0x70] sm:$0xff]   ;;  %v1257_v23 = vld [vmem:[%s1343_s28 + $0x78] sm:$0xff]  }
  0x18   : > { %1154 = vmatpush3.bf16.msra.mxu0 %v1238_v5  ;;  %1205 = vmatpush3.bf16.msra.mxu1 %v1238_v5 }
  0x19   : > { %1155 = vmatprep.subr.bf16.mxu0 %v1239_v6  ;;  %1198 = vmatprep.subr.bf16.mxu1 %v1239_v6 }
  0x1c   : > { %1156 = vmatpush3.bf16.msra.mxu0 %v1239_v6  ;;  %1206 = vmatpush3.bf16.msra.mxu1 %v1239_v6 }
  0x1d   : > { %1157 = vmatprep.subr.bf16.mxu0 %v1240_v8  ;;  %1199 = vmatprep.subr.bf16.mxu1 %v1240_v8 }
  0x20   : > { %1158 = vmatpush3.bf16.msra.mxu0 %v1240_v8  ;;  %1207 = vmatpush3.bf16.msra.mxu1 %v1240_v8 }
  0x21   : > { %1159 = vmatprep.subr.bf16.mxu0 %v1241_v9  ;;  %1200 = vmatprep.subr.bf16.mxu1 %v1241_v9 }
  0x24   : > { %1160 = vmatpush3.bf16.msra.mxu0 %v1241_v9  ;;  %1208 = vmatpush3.bf16.msra.mxu1 %v1241_v9 }
  0x27   : > { %1162 = vmatmul.mubr.bf16.vlgmr.msra.gmra.mrb[0].mxu0 %v1243_v10  ;;  %1178 = vmatmul.mubr.bf16.vlgmr.msra.gmra.mrb[0].mxu1 %v1251_v11 }
  0x28   : > { %1165 = vmatprep.mubr.bf16.mxu0 %v1244_v12  ;;  %1181 = vmatprep.mubr.bf16.mxu1 %v1252_v13 }
  0x2f   : > { %1166 = vmatmul.mubr.bf16.gmra.mrb[4].mxu0 %v1245_v14  ;;  %1182 = vmatmul.mubr.bf16.gmra.mrb[4].mxu1 %v1253_v15 }
  0x30   : > { %1169 = vmatprep.mubr.bf16.mxu0 %v1246_v16  ;;  %1185 = vmatprep.mubr.bf16.mxu1 %v1254_v17 }
  0x37   : > { %1170 = vmatmul.mubr.bf16.gmra.mrb[8].mxu0 %v1247_v18  ;;  %1186 = vmatmul.mubr.bf16.gmra.mrb[8].mxu1 %v1255_v19 }
  0x38   : > { %1173 = vmatprep.mubr.bf16.mxu0 %v1248_v20  ;;  %1189 = vmatprep.mubr.bf16.mxu1 %v1256_v21 }
  0x3f   : > { %1174 = vmatmul.mubr.bf16.gmra.mrb[12].mxu0 %v1249_v22  ;;  %1190 = vmatmul.mubr.bf16.gmra.mrb[12].mxu1 %v1257_v23 }
  0xfa   : > { %v1163_v25 = vpop.f32.mrb[0].mxu0  ;;  %v1179_v27 = vpop.f32.mrb[0].mxu1 }
  0xfb   : > { %v480_v28 = vpop.f32.mrb[1].mxu0  ;;  %v1389_v29 = vadd.f32 %v1179_v27, %v1386_v26  ;;  %v544_v30 = vpop.f32.mrb[1].mxu1  ;;  %v489_v34 = vadd.f32 %v1163_v25, %v1386_v26 }
  0xfc   : > { %v1164_v31 = vpop.f32.mrb[2].mxu0  ;;  %v1392_v32 = vadd.f32 %v1386_v26, %v544_v30  ;;  %v1180_v33 = vpop.f32.mrb[2].mxu1  ;;  %v481_v39 = vadd.f32 %v1386_v26, %v480_v28 }
  0xfd   : > { %v492_v35 = vadd.f32 %v1164_v31, %v1386_v26  ;;  %v483_v36 = vpop.f32.mrb[3].mxu0  ;;  %v1397_v37 = vadd.f32 %v1180_v33, %v1386_v26  ;;  %v547_v38 = vpop.f32.mrb[3].mxu1 }
  0xfe   : > { %v484_v40 = vadd.f32 %v1386_v26, %v483_v36  ;;  %v1409_v41 = vadd.f32 %v1386_v26, %v547_v38 }
  0xff   : > { %v1034_v42 = vpack.c.bf16 %v492_v35, %v489_v34  ;;  %v1074_v43 = vpack.c.bf16 %v1397_v37, %v1389_v29 }
 0x100   : > { %v1029_v44 = vpack.c.bf16 %v484_v40, %v481_v39  ;;  %v767_v45 = vadd.f32 %v484_v40, %v481_v39  ;;  %v1069_v46 = vpack.c.bf16 %v1409_v41, %v1392_v32 }
 0x101   : > { %1106 = vst [vmem:[%s1405_s24 + $0x8] sm:$0xff] %v1034_v42   ;;  %1114 = vst [vmem:[%s1405_s24 + $0x48] sm:$0xff] %v1074_v43  }
 0x102   : > { %1030 = vst [vmem:[%s1405_s24] sm:$0xff] %v1029_v44   ;;  %v768_v47 = vadd.f32 %v767_v45, %v489_v34  ;;  %v1167_v48 = vpop.f32.mrb[4].mxu0  ;;  %1113 = vst [vmem:[%s1405_s24 + $0x40] sm:$0xff] %v1069_v46   ;;  %v1183_v49 = vpop.f32.mrb[4].mxu1 }
 0x103   : > { %v496_v50 = vpop.f32.mrb[5].mxu0  ;;  %v1420_v51 = vadd.f32 %v1183_v49, %v1386_v26  ;;  %v560_v52 = vpop.f32.mrb[5].mxu1  ;;  %v505_v58 = vadd.f32 %v1167_v48, %v1386_v26 }
 0x104   : > { %v497_v53 = vadd.f32 %v1386_v26, %v496_v50  ;;  %v769_v54 = vadd.f32 %v768_v47, %v492_v35  ;;  %v1168_v55 = vpop.f32.mrb[6].mxu0  ;;  %v1424_v56 = vadd.f32 %v1386_v26, %v560_v52  ;;  %v1184_v57 = vpop.f32.mrb[6].mxu1 }
 0x105   : > { %v508_v59 = vadd.f32 %v1168_v55, %v1386_v26  ;;  %v499_v60 = vpop.f32.mrb[7].mxu0  ;;  %v1429_v61 = vadd.f32 %v1184_v57, %v1386_v26  ;;  %v563_v62 = vpop.f32.mrb[7].mxu1 }
 0x106   : > { %v770_v63 = vadd.f32 %v769_v54, %v497_v53  ;;  %v500_v0 = vadd.f32 %v1386_v26, %v499_v60  ;;  %v1433_v1 = vadd.f32 %v1386_v26, %v563_v62 }
 0x107   : > { %v1044_v2 = vpack.c.bf16 %v508_v59, %v505_v58  ;;  %v1084_v3 = vpack.c.bf16 %v1429_v61, %v1420_v51 }
 0x108   : > { %v1039_v4 = vpack.c.bf16 %v500_v0, %v497_v53  ;;  %v771_v5 = vadd.f32 %v770_v63, %v500_v0  ;;  %v1079_v6 = vpack.c.bf16 %v1433_v1, %v1424_v56 }
 0x109   : > { %1108 = vst [vmem:[%s1405_s24 + $0x18] sm:$0xff] %v1044_v2   ;;  %1116 = vst [vmem:[%s1405_s24 + $0x58] sm:$0xff] %v1084_v3  }
 0x10a   : > { %1107 = vst [vmem:[%s1405_s24 + $0x10] sm:$0xff] %v1039_v4   ;;  %v772_v7 = vadd.f32 %v771_v5, %v505_v58  ;;  %v1171_v8 = vpop.f32.mrb[8].mxu0  ;;  %1115 = vst [vmem:[%s1405_s24 + $0x50] sm:$0xff] %v1079_v6   ;;  %v1187_v9 = vpop.f32.mrb[8].mxu1 }
 0x10b   : > { %v512_v10 = vpop.f32.mrb[9].mxu0  ;;  %v1444_v11 = vadd.f32 %v1187_v9, %v1386_v26  ;;  %v576_v12 = vpop.f32.mrb[9].mxu1  ;;  %v521_v18 = vadd.f32 %v1171_v8, %v1386_v26 }
 0x10c   : > { %v513_v13 = vadd.f32 %v1386_v26, %v512_v10  ;;  %v773_v14 = vadd.f32 %v772_v7, %v508_v59  ;;  %v1172_v15 = vpop.f32.mrb[10].mxu0  ;;  %v577_v16 = vadd.f32 %v1386_v26, %v576_v12  ;;  %v1188_v17 = vpop.f32.mrb[10].mxu1 }
 0x10d   : > { %v524_v19 = vadd.f32 %v1172_v15, %v1386_v26  ;;  %v515_v20 = vpop.f32.mrb[11].mxu0  ;;  %v588_v21 = vadd.f32 %v1188_v17, %v1386_v26  ;;  %v579_v22 = vpop.f32.mrb[11].mxu1 }
 0x10e   : > { %v774_v23 = vadd.f32 %v773_v14, %v513_v13  ;;  %v516_v24 = vadd.f32 %v1386_v26, %v515_v20  ;;  %v580_v25 = vadd.f32 %v1386_v26, %v579_v22 }
 0x10f   : > { %v1054_v27 = vpack.c.bf16 %v524_v19, %v521_v18  ;;  %v1094_v28 = vpack.c.bf16 %v588_v21, %v1444_v11 }
 0x110   : > { %v1049_v30 = vpack.c.bf16 %v516_v24, %v513_v13  ;;  %v775_v31 = vadd.f32 %v774_v23, %v516_v24  ;;  %v1089_v33 = vpack.c.bf16 %v580_v25, %v577_v16 }
 0x111   : > { %1110 = vst [vmem:[%s1405_s24 + $0x28] sm:$0xff] %v1054_v27   ;;  %1118 = vst [vmem:[%s1405_s24 + $0x68] sm:$0xff] %v1094_v28  }
 0x112   : > { %1109 = vst [vmem:[%s1405_s24 + $0x20] sm:$0xff] %v1049_v30   ;;  %v776_v34 = vadd.f32 %v775_v31, %v521_v18  ;;  %v1175_v35 = vpop.f32.mrb[12].mxu0  ;;  %1117 = vst [vmem:[%s1405_s24 + $0x60] sm:$0xff] %v1089_v33   ;;  %v1191_v36 = vpop.f32.mrb[12].mxu1  ;;  %v809_v18 = vld [vmem:[%s1380_s19] sm:$0x1] }
 0x113   : > { %v528_v38 = vpop.f32.mrb[13].mxu0  ;;  %v601_v39 = vadd.f32 %v1191_v36, %v1386_v26  ;;  %v592_v40 = vpop.f32.mrb[13].mxu1  ;;  %v537_v47 = vadd.f32 %v1175_v35, %v1386_v26 }
 0x114   : > { %v529_v42 = vadd.f32 %v1386_v26, %v528_v38  ;;  %v777_v43 = vadd.f32 %v776_v34, %v524_v19  ;;  %v1176_v44 = vpop.f32.mrb[14].mxu0  ;;  %v593_v45 = vadd.f32 %v1386_v26, %v592_v40  ;;  %v1192_v46 = vpop.f32.mrb[14].mxu1 }
 0x115   : > { %v540_v48 = vadd.f32 %v1176_v44, %v1386_v26  ;;  %v531_v49 = vpop.f32.mrb[15].mxu0  ;;  %v604_v50 = vadd.f32 %v1192_v46, %v1386_v26  ;;  %v595_v52 = vpop.f32.mrb[15].mxu1 }
 0x116   : > { %v778_v53 = vadd.f32 %v777_v43, %v529_v42  ;;  %v532_v54 = vadd.f32 %v1386_v26, %v531_v49  ;;  %v596_v55 = vadd.f32 %v1386_v26, %v595_v52 }
 0x117   : > { %v1064_v57 = vpack.c.bf16 %v540_v48, %v537_v47  ;;  %v1104_v58 = vpack.c.bf16 %v604_v50, %v601_v39 }
 0x118   : > { %v1059_v59 = vpack.c.bf16 %v532_v54, %v529_v42  ;;  %v779_v60 = vadd.f32 %v778_v53, %v532_v54  ;;  %v1099_v62 = vpack.c.bf16 %v596_v55, %v593_v45 }
 0x119   : > { %1112 = vst [vmem:[%s1405_s24 + $0x38] sm:$0xff] %v1064_v57   ;;  %1120 = vst [vmem:[%s1405_s24 + $0x78] sm:$0xff] %v1104_v58  }
 0x11a   : > { %1111 = vst [vmem:[%s1405_s24 + $0x30] sm:$0xff] %v1059_v59   ;;  %v780_v63 = vadd.f32 %v779_v60, %v537_v47  ;;  %1119 = vst [vmem:[%s1405_s24 + $0x70] sm:$0xff] %v1099_v62  }
 0x11c   : > { %v781_v0 = vadd.f32 %v780_v63, %v540_v48 }
 0x11e   : > { %v782_v2 = vadd.f32 %v781_v0, %v1392_v32 }
 0x120   : > { %v783_v3 = vadd.f32 %v782_v2, %v1409_v41 }
 0x122   : > { %v784_v4 = vadd.f32 %v783_v3, %v1389_v29 }
 0x124   : > { %v785_v5 = vadd.f32 %v784_v4, %v1397_v37 }
 0x126   : > { %v786_v26 = vadd.f32 %v785_v5, %v1424_v56 }
 0x128   : > { %v787_v6 = vadd.f32 %v786_v26, %v1433_v1 }
 0x12a   : > { %v788_v7 = vadd.f32 %v787_v6, %v1420_v51 }
 0x12c   : > { %v789_v8 = vadd.f32 %v788_v7, %v1429_v61 }
 0x12e   : > { %v790_v9 = vadd.f32 %v789_v8, %v577_v16 }
 0x130   : > { %v791_v10 = vadd.f32 %v790_v9, %v580_v25 }
 0x132   : > { %v792_v32 = vadd.f32 %v791_v10, %v1444_v11 }
 0x134   : > { %v793_v12 = vadd.f32 %v792_v32, %v588_v21 }
 0x136   : > { %v794_v41 = vadd.f32 %v793_v12, %v593_v45 }
 0x138   : > { %v795_v13 = vadd.f32 %v794_v41, %v596_v55 }
 0x13a   : > { %v796_v29 = vadd.f32 %v795_v13, %v601_v39 }
 0x13c   : > { %v797_v14 = vadd.f32 %v796_v29, %v604_v50 }
 0x13e   : > { %v798_v37 = vrot.slane %v797_v14, 4 }
 0x140   : > { %v799_v15 = vadd.f32 %v798_v37, %v797_v14 }
 0x142   : > { %v800_v56 = vrot.slane %v799_v15, 2 }
 0x144   : > { %v801_v17 = vadd.f32 %v800_v56, %v799_v15 }
 0x146   : > { %v802_v1 = vrot.slane %v801_v17, 1 }
 0x148   : > { %v803_v19 = vadd.f32 %v802_v1, %v801_v17 }
 0x14a   : > { %v810_v51 = vadd.f32 %v809_v18, %v803_v19 }
 0x14c   : > { %811 = vst [vmem:[%s1380_s19] sm:$0x1] %v810_v51 }
 0x14d PF: > { %s15_s17 = sadd.s32 1, %s1280_s17   ;;  %s1495_s15 = smov %s1276_s16 }
 0x14e   : > { %p12_p5 = scmp.ge.s32.totalorder %s15_s17, 4   ;;  %s1496_s16 = smov %s1498_s18 }
 0x150   :  { %14 = sbr.rel (!%p12_p5) target bundleno = 2 (0x2), region = 78 }

// kernel: se_bottleneck_forward.7
= control target key start
LH: loop header
LB: loop body
LE: loop exit
PB: predicated region body
PF: predicated region fallthrough
CT: control target
= control target key end

     0   :  { %s1167_s12 = smov 0   ;;  %s1169_s13 = smov 0   ;;  %s1386_s0 = inlined_call_operand.vmem [shape: bf16[2,256,128], index: 0, kind: input, shape index: {}, may-alias: {0,3}]   ;;  %s1387_s1 = inlined_call_operand.vmem [shape: bf16[2,256,128], index: 1, kind: input, shape index: {}]   ;;  %s1388_s2 = inlined_call_operand.vmem [shape: f32[2,1,128], index: 2, kind: input, shape index: {}]   ;;  %s1389_s3 = inlined_call_operand.vmem [shape: bf16[2,256,128], index: 3, kind: output, shape index: {}, may-alias: {0,3}]  }
   0x1   :  { %s1171_s14 = smov 0  }
   0x2 LB: > { %s25_s15 = sadd.s32 1, %s1141_s13  ;;  %p769_p0 = scmp.ge.s32.totalorder %s1145_s14, 1  ;;  %s1145_s14 = sphi %s1171_s14, %s13_s14   ;;  %s1141_s13 = sphi %s1169_s13, %s1409_s13   ;;  %s1137_s12 = sphi %s1167_s12, %s1408_s12  }
   0x3   : > { %p27_p1 = scmp.ge.s32.totalorder %s25_s15, 2  ;;  %p183_p2 = scmp.lt.s32.totalorder %s1145_s14, 3 }
   0x5   : > { %s1411_s15 = smov (%p27_p1, %s25_s15), 0  ;;  %p184_p3 = pnand %p769_p0, %p183_p2 }
   0x7   : > { %187 = sbr.rel (%p184_p3) target bundleno = 71 (0x47), region = 32 }
   0xe   : > { %p228_p4 = scmp.lt.s32.totalorder %s1137_s12, 1 }
  0x10   : > { %s1413_s12 = smov (!%p228_p4, %s1137_s12), 1 }
  0x11   : > { %s1188_s16 = sshll.u32 %s1413_s12, 7  ;;  %s249_s22 = scalar_lea.vmem %s1388_s2, %s1413_s12 }
  0x12   : > { %s1194_s19 = scalar_lea.vmem %s1386_s0, %s1188_s16  ;;  %v776_v40 = vld [vmem:[%s249_s22] ss:$0 sm:$0xff]  ;;  %s1236_s25 = scalar_lea.vmem %s1387_s1, %s1188_s16 }
  0x13   : > { %v847_v0 = vld [vmem:[%s1194_s19] sm:$0xff]   ;;  %v1054_v1 = vld [vmem:[%s1194_s19 + $0x8] sm:$0xff]   ;;  %v1055_v2 = vld [vmem:[%s1194_s19 + $0x10] sm:$0xff]   ;;  %s1359_s28 = scalar_lea.vmem %s1389_s3, %s1188_s16 }
  0x14   : > { %v848_v3 = vunpack.c.l.bf16 %v847_v0  ;;  %v849_v4 = vunpack.c.h.bf16 %v847_v0  ;;  %v852_v5 = vunpack.c.l.bf16 %v1054_v1  ;;  %v853_v6 = vunpack.c.h.bf16 %v1054_v1  ;;  %v1056_v7 = vld [vmem:[%s1194_s19 + $0x18] sm:$0xff]   ;;  %v1057_v8 = vld [vmem:[%s1194_s19 + $0x20] sm:$0xff]   ;;  %v1058_v9 = vld [vmem:[%s1194_s19 + $0x28] sm:$0xff]  }
  0x15   : > { %v856_v10 = vunpack.c.l.bf16 %v1055_v2  ;;  %v857_v11 = vunpack.c.h.bf16 %v1055_v2  ;;  %v860_v12 = vunpack.c.l.bf16 %v1056_v7  ;;  %v861_v13 = vunpack.c.h.bf16 %v1056_v7  ;;  %v1059_v14 = vld [vmem:[%s1194_s19 + $0x30] sm:$0xff]   ;;  %v1060_v15 = vld [vmem:[%s1194_s19 + $0x38] sm:$0xff]   ;;  %v1061_v16 = vld [vmem:[%s1194_s19 + $0x40] sm:$0xff]  }
  0x16   : > { %v864_v17 = vunpack.c.l.bf16 %v1057_v8  ;;  %v865_v18 = vunpack.c.h.bf16 %v1057_v8  ;;  %v868_v19 = vunpack.c.l.bf16 %v1058_v9  ;;  %v869_v20 = vunpack.c.h.bf16 %v1058_v9  ;;  %v1062_v21 = vld [vmem:[%s1194_s19 + $0x48] sm:$0xff]   ;;  %v1063_v22 = vld [vmem:[%s1194_s19 + $0x50] sm:$0xff]   ;;  %v1064_v23 = vld [vmem:[%s1194_s19 + $0x58] sm:$0xff]  }
  0x17   : > { %v872_v24 = vunpack.c.l.bf16 %v1059_v14  ;;  %v873_v25 = vunpack.c.h.bf16 %v1059_v14  ;;  %v876_v26 = vunpack.c.l.bf16 %v1060_v15  ;;  %v877_v27 = vunpack.c.h.bf16 %v1060_v15  ;;  %v1065_v28 = vld [vmem:[%s1194_s19 + $0x60] sm:$0xff]   ;;  %v1066_v29 = vld [vmem:[%s1194_s19 + $0x68] sm:$0xff]   ;;  %v1067_v34 = vld [vmem:[%s1194_s19 + $0x70] sm:$0xff]  }
  0x18   : > { %v880_v30 = vunpack.c.l.bf16 %v1061_v16  ;;  %v881_v31 = vunpack.c.h.bf16 %v1061_v16  ;;  %v884_v32 = vunpack.c.l.bf16 %v1062_v21  ;;  %v885_v33 = vunpack.c.h.bf16 %v1062_v21  ;;  %v1068_v35 = vld [vmem:[%s1194_s19 + $0x78] sm:$0xff]   ;;  %v911_v9 = vld [vmem:[%s1236_s25] sm:$0xff]   ;;  %v1070_v15 = vld [vmem:[%s1236_s25 + $0x10] sm:$0xff]  }
  0x19   : > { %v888_v36 = vunpack.c.l.bf16 %v1063_v22  ;;  %v889_v37 = vunpack.c.h.bf16 %v1063_v22  ;;  %v892_v38 = vunpack.c.l.bf16 %v1064_v23  ;;  %v893_v39 = vunpack.c.h.bf16 %v1064_v23  ;;  %v1071_v16 = vld [vmem:[%s1236_s25 + $0x18] sm:$0xff]   ;;  %v1072_v21 = vld [vmem:[%s1236_s25 + $0x20] sm:$0xff]   ;;  %v1073_v22 = vld [vmem:[%s1236_s25 + $0x28] sm:$0xff]  }
  0x1a   : > { %v896_v41 = vunpack.c.l.bf16 %v1065_v28  ;;  %v897_v42 = vunpack.c.h.bf16 %v1065_v28  ;;  %v900_v43 = vunpack.c.l.bf16 %v1066_v29  ;;  %v901_v44 = vunpack.c.h.bf16 %v1066_v29  ;;  %v1075_v28 = vld [vmem:[%s1236_s25 + $0x38] sm:$0xff]  }
  0x1b   : > { %v904_v45 = vunpack.c.l.bf16 %v1067_v34  ;;  %v905_v46 = vunpack.c.h.bf16 %v1067_v34  ;;  %v908_v47 = vunpack.c.l.bf16 %v1068_v35  ;;  %v909_v48 = vunpack.c.h.bf16 %v1068_v35  ;;  %v1077_v34 = vld [vmem:[%s1236_s25 + $0x48] sm:$0xff]  }
  0x1c   : > { %v1216_v49 = vmul.f32 %v848_v3, %v776_v40  ;;  %v1218_v50 = vmul.f32 %v849_v4, %v776_v40  ;;  %v1220_v51 = vmul.f32 %v852_v5, %v776_v40  ;;  %v1222_v52 = vmul.f32 %v853_v6, %v776_v40 }
  0x1d   : > { %v1224_v53 = vmul.f32 %v856_v10, %v776_v40  ;;  %v1226_v54 = vmul.f32 %v857_v11, %v776_v40  ;;  %v1228_v55 = vmul.f32 %v860_v12, %v776_v40  ;;  %v1230_v56 = vmul.f32 %v861_v13, %v776_v40  ;;  %v1069_v10 = vld [vmem:[%s1236_s25 + $0x8] sm:$0xff]  }
  0x1e   : > { %v1238_v57 = vmul.f32 %v864_v17, %v776_v40  ;;  %v1240_v58 = vmul.f32 %v865_v18, %v776_v40  ;;  %v1242_v59 = vmul.f32 %v868_v19, %v776_v40  ;;  %v1244_v60 = vmul.f32 %v869_v20, %v776_v40 }
  0x1f   : > { %v1246_v61 = vmul.f32 %v872_v24, %v776_v40  ;;  %v1248_v62 = vmul.f32 %v873_v25, %v776_v40  ;;  %v1250_v63 = vmul.f32 %v876_v26, %v776_v40  ;;  %v1252_v0 = vmul.f32 %v877_v27, %v776_v40  ;;  %v1074_v27 = vld [vmem:[%s1236_s25 + $0x30] sm:$0xff]  }
  0x20   : > { %v1254_v1 = vmul.f32 %v880_v30, %v776_v40  ;;  %v1256_v2 = vmul.f32 %v881_v31, %v776_v40  ;;  %v1258_v3 = vmul.f32 %v884_v32, %v776_v40  ;;  %v1260_v4 = vmul.f32 %v885_v33, %v776_v40  ;;  %v1076_v33 = vld [vmem:[%s1236_s25 + $0x40] sm:$0xff]  }
  0x21   : > { %v1262_v5 = vmul.f32 %v888_v36, %v776_v40  ;;  %v1264_v6 = vmul.f32 %v889_v37, %v776_v40  ;;  %v1266_v7 = vmul.f32 %v892_v38, %v776_v40  ;;  %v1268_v8 = vmul.f32 %v893_v39, %v776_v40  ;;  %v1078_v39 = vld [vmem:[%s1236_s25 + $0x50] sm:$0xff]  }
  0x22   : > { %v1272_v11 = vmul.f32 %v896_v41, %v776_v40  ;;  %v1274_v12 = vmul.f32 %v897_v42, %v776_v40  ;;  %v1276_v13 = vmul.f32 %v900_v43, %v776_v40  ;;  %v1278_v14 = vmul.f32 %v901_v44, %v776_v40 }
  0x23   : > { %1390 = vst [vmem:[#allocation2_spill] sm:$0xff] %v1268_v8  ;;  %v1282_v17 = vmul.f32 %v904_v45, %v776_v40  ;;  %v1284_v18 = vmul.f32 %v905_v46, %v776_v40  ;;  %v1286_v19 = vmul.f32 %v908_v47, %v776_v40  ;;  %v1288_v20 = vmul.f32 %v909_v48, %v776_v40  ;;  %v1079_v40 = vld [vmem:[%s1236_s25 + $0x58] sm:$0xff]   ;;  %v1080_v45 = vld [vmem:[%s1236_s25 + $0x60] sm:$0xff]   ;;  %v1081_v46 = vld [vmem:[%s1236_s25 + $0x68] sm:$0xff]  }
  0x24   : > { %1391 = vst [vmem:[#allocation3_spill] sm:$0xff] %v1272_v11  ;;  %1392 = vst [vmem:[#allocation4_spill] sm:$0xff] %v1274_v12  ;;  %v912_v23 = vunpack.c.l.bf16 %v911_v9  ;;  %v913_v24 = vunpack.c.h.bf16 %v911_v9  ;;  %v916_v25 = vunpack.c.l.bf16 %v1069_v10  ;;  %v917_v26 = vunpack.c.h.bf16 %v1069_v10 }
  0x25   : > { %1393 = vst [vmem:[#allocation5_spill] sm:$0xff] %v1276_v13  ;;  %1394 = vst [vmem:[#allocation6_spill] sm:$0xff] %v1278_v14  ;;  %v920_v29 = vunpack.c.l.bf16 %v1070_v15  ;;  %v921_v30 = vunpack.c.h.bf16 %v1070_v15  ;;  %v924_v31 = vunpack.c.l.bf16 %v1071_v16  ;;  %v925_v32 = vunpack.c.h.bf16 %v1071_v16  ;;  %v1082_v15 = vld [vmem:[%s1236_s25 + $0x70] sm:$0xff]   ;;  %v1083_v16 = vld [vmem:[%s1236_s25 + $0x78] sm:$0xff]  }
  0x26   : > { %1395 = vst [vmem:[#allocation7_spill] sm:$0xff] %v1282_v17  ;;  %1396 = vst [vmem:[#allocation8_spill] sm:$0xff] %v1284_v18  ;;  %v928_v35 = vunpack.c.l.bf16 %v1072_v21  ;;  %v929_v36 = vunpack.c.h.bf16 %v1072_v21  ;;  %v932_v37 = vunpack.c.l.bf16 %v1073_v22  ;;  %v933_v38 = vunpack.c.h.bf16 %v1073_v22 }
  0x27   : > { %1397 = vst [vmem:[#allocation9_spill] sm:$0xff] %v1286_v19  ;;  %1398 = vst [vmem:[#allocation10_spill] sm:$0xff] %v1288_v20  ;;  %v936_v41 = vunpack.c.l.bf16 %v1074_v27  ;;  %v937_v42 = vunpack.c.h.bf16 %v1074_v27  ;;  %v940_v43 = vunpack.c.l.bf16 %v1075_v28  ;;  %v941_v44 = vunpack.c.h.bf16 %v1075_v28 }
  0x28   : > { %v944_v47 = vunpack.c.l.bf16 %v1076_v33  ;;  %v945_v48 = vunpack.c.h.bf16 %v1076_v33  ;;  %v948_v9 = vunpack.c.l.bf16 %v1077_v34  ;;  %v949_v10 = vunpack.c.h.bf16 %v1077_v34 }
  0x29   : > { %v952_v20 = vunpack.c.l.bf16 %v1078_v39  ;;  %v953_v19 = vunpack.c.h.bf16 %v1078_v39  ;;  %v956_v21 = vunpack.c.l.bf16 %v1079_v40  ;;  %v957_v18 = vunpack.c.h.bf16 %v1079_v40 }
  0x2a   : > { %v960_v17 = vunpack.c.l.bf16 %v1080_v45  ;;  %v961_v22 = vunpack.c.h.bf16 %v1080_v45  ;;  %v964_v14 = vunpack.c.l.bf16 %v1081_v46  ;;  %v965_v13 = vunpack.c.h.bf16 %v1081_v46 }
  0x2b   : > { %v968_v12 = vunpack.c.l.bf16 %v1082_v15  ;;  %v969_v27 = vunpack.c.h.bf16 %v1082_v15  ;;  %v972_v11 = vunpack.c.l.bf16 %v1083_v16  ;;  %v973_v28 = vunpack.c.h.bf16 %v1083_v16 }
  0x2c   : > { %v1303_v8 = vadd.f32 %v912_v23, %v1216_v49  ;;  %v1306_v33 = vadd.f32 %v913_v24, %v1218_v50  ;;  %v1309_v34 = vadd.f32 %v916_v25, %v1220_v51  ;;  %v1312_v39 = vadd.f32 %v917_v26, %v1222_v52  ;;  %v1399_v26 = vld [vmem:[#allocation2_spill] sm:$0xff] }
  0x2d   : > { %v1315_v40 = vadd.f32 %v920_v29, %v1224_v53  ;;  %v1318_v45 = vadd.f32 %v921_v30, %v1226_v54  ;;  %v1321_v46 = vadd.f32 %v924_v31, %v1228_v55  ;;  %v434_v49 = vadd.f32 %v925_v32, %v1230_v56  ;;  %v1400_v29 = vld [vmem:[#allocation3_spill] sm:$0xff]  ;;  %v1401_v30 = vld [vmem:[#allocation4_spill] sm:$0xff]  ;;  %v1402_v31 = vld [vmem:[#allocation5_spill] sm:$0xff] }
  0x2e   : > { %v435_v50 = vadd.f32 %v928_v35, %v1238_v57  ;;  %v436_v23 = vadd.f32 %v929_v36, %v1240_v58  ;;  %v437_v51 = vadd.f32 %v932_v37, %v1242_v59  ;;  %v438_v52 = vadd.f32 %v933_v38, %v1244_v60  ;;  %v1403_v32 = vld [vmem:[#allocation6_spill] sm:$0xff]  ;;  %v1404_v35 = vld [vmem:[#allocation7_spill] sm:$0xff]  ;;  %v1405_v36 = vld [vmem:[#allocation8_spill] sm:$0xff] }
  0x2f   : > { %v439_v24 = vadd.f32 %v936_v41, %v1246_v61  ;;  %v440_v53 = vadd.f32 %v937_v42, %v1248_v62  ;;  %v441_v54 = vadd.f32 %v940_v43, %v1250_v63  ;;  %v442_v25 = vadd.f32 %v941_v44, %v1252_v0  ;;  %v1406_v37 = vld [vmem:[#allocation9_spill] sm:$0xff] }
  0x30   : > { %v443_v55 = vadd.f32 %v944_v47, %v1254_v1  ;;  %v444_v56 = vadd.f32 %v945_v48, %v1256_v2  ;;  %v445_v57 = vadd.f32 %v948_v9, %v1258_v3  ;;  %v446_v58 = vadd.f32 %v949_v10, %v1260_v4 }
  0x31   : > { %v447_v59 = vadd.f32 %v952_v20, %v1262_v5  ;;  %v448_v60 = vadd.f32 %v953_v19, %v1264_v6  ;;  %v449_v61 = vadd.f32 %v956_v21, %v1266_v7  ;;  %v450_v62 = vadd.f32 %v957_v18, %v1399_v26  ;;  %v1407_v20 = vld [vmem:[#allocation10_spill] sm:$0xff] }
  0x32   : > { %v451_v63 = vadd.f32 %v960_v17, %v1400_v29  ;;  %v452_v0 = vadd.f32 %v961_v22, %v1401_v30  ;;  %v453_v1 = vadd.f32 %v964_v14, %v1402_v31  ;;  %v454_v2 = vadd.f32 %v965_v13, %v1403_v32 }
  0x33   : > { %v455_v3 = vadd.f32 %v968_v12, %v1404_v35  ;;  %v456_v4 = vadd.f32 %v969_v27, %v1405_v36  ;;  %v457_v5 = vadd.f32 %v972_v11, %v1406_v37  ;;  %v458_v6 = vadd.f32 %v973_v28, %v1407_v20 }
  0x34   : > { %v459_v7 = vmax.f32 %v1303_v8, 0.0  ;;  %v460_v18 = vmax.f32 %v1306_v33, 0.0  ;;  %v461_v17 = vmax.f32 %v1309_v34, 0.0  ;;  %v462_v19 = vmax.f32 %v1312_v39, 0.0 }
  0x35   : > { %v463_v14 = vmax.f32 %v1315_v40, 0.0  ;;  %v464_v13 = vmax.f32 %v1318_v45, 0.0  ;;  %v465_v12 = vmax.f32 %v1321_v46, 0.0  ;;  %v466_v38 = vmax.f32 %v434_v49, 0.0 }
  0x36   : > { %v467_v41 = vmax.f32 %v435_v50, 0.0  ;;  %v468_v42 = vmax.f32 %v436_v23, 0.0  ;;  %v469_v11 = vmax.f32 %v437_v51, 0.0  ;;  %v470_v43 = vmax.f32 %v438_v52, 0.0 }
  0x37   : > { %v471_v44 = vmax.f32 %v439_v24, 0.0  ;;  %v472_v8 = vmax.f32 %v440_v53, 0.0  ;;  %v473_v47 = vmax.f32 %v441_v54, 0.0  ;;  %v474_v48 = vmax.f32 %v442_v25, 0.0 }
  0x38   : > { %v475_v9 = vmax.f32 %v443_v55, 0.0  ;;  %v476_v10 = vmax.f32 %v444_v56, 0.0  ;;  %v477_v15 = vmax.f32 %v445_v57, 0.0  ;;  %v478_v16 = vmax.f32 %v446_v58, 0.0 }
  0x39   : > { %v479_v21 = vmax.f32 %v447_v59, 0.0  ;;  %v480_v22 = vmax.f32 %v448_v60, 0.0  ;;  %v481_v27 = vmax.f32 %v449_v61, 0.0  ;;  %v482_v28 = vmax.f32 %v450_v62, 0.0 }
  0x3a   : > { %v483_v33 = vmax.f32 %v451_v63, 0.0  ;;  %v484_v34 = vmax.f32 %v452_v0, 0.0  ;;  %v485_v39 = vmax.f32 %v453_v1, 0.0  ;;  %v486_v40 = vmax.f32 %v454_v2, 0.0 }
  0x3b   : > { %v487_v45 = vmax.f32 %v455_v3, 0.0  ;;  %v488_v46 = vmax.f32 %v456_v4, 0.0  ;;  %v489_v49 = vmax.f32 %v457_v5, 0.0  ;;  %v490_v50 = vmax.f32 %v458_v6, 0.0 }
  0x3c   : > { %v977_v23 = vpack.c.bf16 %v460_v18, %v459_v7  ;;  %v982_v51 = vpack.c.bf16 %v462_v19, %v461_v17  ;;  %v987_v52 = vpack.c.bf16 %v464_v13, %v463_v14  ;;  %v992_v24 = vpack.c.bf16 %v466_v38, %v465_v12 }
  0x3d   : > { %v997_v53 = vpack.c.bf16 %v468_v42, %v467_v41  ;;  %v1002_v54 = vpack.c.bf16 %v470_v43, %v469_v11  ;;  %v1007_v25 = vpack.c.bf16 %v472_v8, %v471_v44  ;;  %v1012_v55 = vpack.c.bf16 %v474_v48, %v473_v47 }
  0x3e   : > { %978 = vst [vmem:[%s1359_s28] sm:$0xff] %v977_v23   ;;  %v1017_v56 = vpack.c.bf16 %v476_v10, %v475_v9  ;;  %v1022_v57 = vpack.c.bf16 %v478_v16, %v477_v15  ;;  %v1027_v58 = vpack.c.bf16 %v480_v22, %v479_v21  ;;  %v1032_v59 = vpack.c.bf16 %v482_v28, %v481_v27 }
  0x3f   : > { %1084 = vst [vmem:[%s1359_s28 + $0x8] sm:$0xff] %v982_v51   ;;  %1085 = vst [vmem:[%s1359_s28 + $0x10] sm:$0xff] %v987_v52   ;;  %v1037_v60 = vpack.c.bf16 %v484_v34, %v483_v33  ;;  %v1042_v61 = vpack.c.bf16 %v486_v40, %v485_v39  ;;  %v1047_v26 = vpack.c.bf16 %v488_v46, %v487_v45 }
  0x40   : > { %1086 = vst [vmem:[%s1359_s28 + $0x18] sm:$0xff] %v992_v24   ;;  %v1052_v62 = vpack.c.bf16 %v490_v50, %v489_v49  ;;  %1087 = vst [vmem:[%s1359_s28 + $0x20] sm:$0xff] %v997_v53  }
  0x41   : > { %1088 = vst [vmem:[%s1359_s28 + $0x28] sm:$0xff] %v1002_v54   ;;  %1089 = vst [vmem:[%s1359_s28 + $0x30] sm:$0xff] %v1007_v25  }
  0x42   : > { %1090 = vst [vmem:[%s1359_s28 + $0x38] sm:$0xff] %v1012_v55   ;;  %1091 = vst [vmem:[%s1359_s28 + $0x40] sm:$0xff] %v1017_v56  }
  0x43   : > { %1092 = vst [vmem:[%s1359_s28 + $0x48] sm:$0xff] %v1022_v57   ;;  %1093 = vst [vmem:[%s1359_s28 + $0x50] sm:$0xff] %v1027_v58  }
  0x44   : > { %1094 = vst [vmem:[%s1359_s28 + $0x58] sm:$0xff] %v1032_v59   ;;  %1095 = vst [vmem:[%s1359_s28 + $0x60] sm:$0xff] %v1037_v60  }
  0x45   : > { %1096 = vst [vmem:[%s1359_s28 + $0x68] sm:$0xff] %v1042_v61   ;;  %1097 = vst [vmem:[%s1359_s28 + $0x70] sm:$0xff] %v1047_v26  }
  0x46   : > { %1098 = vst [vmem:[%s1359_s28 + $0x78] sm:$0xff] %v1052_v62  }
  0x47 PF: > { %s13_s14 = sadd.s32 1, %s1145_s14   ;;  %s1408_s12 = smov %s1141_s13 }
  0x48   : > { %p10_p5 = scmp.ge.s32.totalorder %s13_s14, 4   ;;  %s1409_s13 = smov %s1411_s15 }
  0x4a   :  { %12 = sbr.rel (!%p10_p5) target bundleno = 2 (0x2), region = 68 }

// kernel: se_bottleneck_forward.5
= control target key start
LH: loop header
LB: loop body
LE: loop exit
PB: predicated region body
PF: predicated region fallthrough
CT: control target
= control target key end

     0   :  { %s8019_s12 = smov 0   ;;  %s9182_s0 = inlined_call_operand.vmem [shape: bf16[2,18,18,128], index: 0, kind: input, shape index: {}]   ;;  %s9183_s1 = inlined_call_operand.vmem [shape: bf16[9,128,128], index: 1, kind: input, shape index: {}]   ;;  %s9184_s2 = inlined_call_operand.vmem [shape: f32[1,128], index: 2, kind: input, shape index: {}]   ;;  %s9185_s3 = inlined_call_operand.vmem [shape: bf16[2,256,128], index: 3, kind: output, shape index: {}]  }
   0x1 LB: > { %s6115_s13 = sadd.s32 4294967295, %s7997_s12   ;;  %p6119_p0 = scmp.ge.s32.totalorder %s7997_s12, 1  ;;  %s7997_s12 = sphi %s8019_s12, %s13_s12  }
   0x2   : > { %p137_p1 = scmp.lt.s32.totalorder %s7997_s12, 3 }
   0x4   : > { %p138_p2 = pnand %p6119_p0, %p137_p1 }
   0x5   : > { %v7863_v0 = vld [vmem:[%s9183_s1] sm:$0xff] (!%p138_p2)   ;;  %v7865_v2 = vld [vmem:[%s9183_s1 + $0x8] sm:$0xff] (!%p138_p2)   ;;  %p161_p3 = scmp.lt.s32.totalorder (!%p138_p2), %s6115_s13, 1  ;;  %v7867_v4 = vld [vmem:[%s9183_s1 + $0x10] sm:$0xff] (!%p138_p2)   ;;  %vm701_vm0 = vsmask.f32 (!%p138_p2), 3328 }
   0x6   : > { %141 = sbr.rel (%p138_p2) target bundleno = 557 (0x22d), region = 32  ;;  %v7864_v1 = vld [vmem:[%s9183_s1 + $0x100] sm:$0xff] (!%p138_p2)   ;;  %7150 = vmatprep.subr.bf16.mxu1 (!%p138_p2), %v7863_v0  ;;  %v7866_v3 = vld [vmem:[%s9183_s1 + $0x108] sm:$0xff] (!%p138_p2)   ;;  %v7868_v5 = vld [vmem:[%s9183_s1 + $0x110] sm:$0xff] (!%p138_p2)   ;;  %vm702_vm1 = vsmask.f32 (!%p138_p2), 7440 }
   0x7   : > { %7342 = vmatprep.subr.bf16.mxu0 (!%p138_p2), %v7864_v1  ;;  %7151 = vmatpush3.bf16.msra.mxu1 (!%p138_p2), %v7863_v0  ;;  %v7869_v6 = vld [vmem:[%s9183_s1 + $0x18] sm:$0xff] (!%p138_p2)   ;;  %v7871_v8 = vld [vmem:[%s9183_s1 + $0x20] sm:$0xff] (!%p138_p2)   ;;  %v7873_v10 = vld [vmem:[%s9183_s1 + $0x28] sm:$0xff] (!%p138_p2)   ;;  %vm1570_vm3 = vcmask (!%p138_p2), 1042432   ;;  %vm1571_vm4 = vcmask (!%p138_p2), 1046532  }
   0x8   : > { %7343 = vmatpush3.bf16.msra.mxu0 (!%p138_p2), %v7864_v1  ;;  %7152 = vmatprep.subr.bf16.mxu1 (!%p138_p2), %v7865_v2  ;;  %v7870_v7 = vld [vmem:[%s9183_s1 + $0x118] sm:$0xff] (!%p138_p2)   ;;  %v7872_v9 = vld [vmem:[%s9183_s1 + $0x120] sm:$0xff] (!%p138_p2)   ;;  %v7874_v11 = vld [vmem:[%s9183_s1 + $0x128] sm:$0xff] (!%p138_p2)  }
   0x9   : > { %7344 = vmatprep.subr.bf16.mxu0 (!%p138_p2), %v7866_v3  ;;  %v7875_v18 = vld [vmem:[%s9183_s1 + $0x30] sm:$0xff] (!%p138_p2)   ;;  %v7877_v32 = vld [vmem:[%s9183_s1 + $0x38] sm:$0xff] (!%p138_p2)   ;;  %vm8089_vm2 = vmor (!%p138_p2), %vm701_vm0, %vm702_vm1 }
   0xa   : > { %v7876_v24 = vld [vmem:[%s9183_s1 + $0x130] sm:$0xff] (!%p138_p2)   ;;  %v7878_v38 = vld [vmem:[%s9183_s1 + $0x138] sm:$0xff] (!%p138_p2)   ;;  %v7881_v47 = vld [vmem:[%s9183_s1 + $0x40] sm:$0xff] (!%p138_p2)  }
   0xb   : > { %7153 = vmatpush3.bf16.msra.mxu1 (!%p138_p2), %v7865_v2  ;;  %v7882_v52 = vld [vmem:[%s9183_s1 + $0x140] sm:$0xff] (!%p138_p2)   ;;  %vm8189_vm5 = vmor (!%p138_p2), %vm1570_vm3, %vm1571_vm4 }
   0xc   : > { %7345 = vmatpush3.bf16.msra.mxu0 (!%p138_p2), %v7866_v3  ;;  %7154 = vmatprep.subr.bf16.mxu1 (!%p138_p2), %v7867_v4 }
   0xd   : > { %s9191_s13 = smov (!%p161_p3, %s6115_s13), 1  ;;  %7346 = vmatprep.subr.bf16.mxu0 %v7868_v5 }
   0xe   : > { %s7854_s30 = smul.u32 216, %s9191_s13  ;;  %s6806_s7 = sshll.u32 %s9191_s13, 7 }
   0xf   : > { %7155 = vmatpush3.bf16.msra.mxu1 %v7867_v4  ;;  %s9129_s10 = scalar_lea.vmem %s9185_s3, %s6806_s7 }
  0x10   : > { %7347 = vmatpush3.bf16.msra.mxu0 %v7868_v5  ;;  %7156 = vmatprep.subr.bf16.mxu1 %v7869_v6  ;;  %s8066_s14 = scalar_lea.vmem %s9182_s0, %s7854_s30 }
  0x11   : > { %7348 = vmatprep.subr.bf16.mxu0 %v7870_v7  ;;  %v7879_v12 = vld [vmem:[%s8066_s14] sm:$0xff]   ;;  %v6315_v13 = vld [vmem:[%s8066_s14 + $0xc] sm:$0xf]  ;;  %v6316_v14 = vld [vmem:[%s8066_s14 + $0x10] sm:$0xf] }
  0x12   : > { %7166 = vmatprep.mubr.bf16.mxu1 %v7879_v12  ;;  %v6317_v15 = vld [vmem:[%s8066_s14 + $0x14] sm:$0x1]  ;;  %v2571_v16 = vshrl.u32 %v6315_v13, 16  ;;  %v2574_v17 = vshll.u32 %v6315_v13, 16  ;;  %v2580_v19 = vshll.u32 %v6316_v14, 16  ;;  %v2584_v20 = vshrl.u32 %v6316_v14, 16 }
  0x13   : > { %7157 = vmatpush3.bf16.msra.mxu1 %v7869_v6  ;;  %v2590_v21 = vshll.u32 %v6317_v15, 16  ;;  %v6318_v29 = vld [vmem:[%s8066_s14 + $0x18] sm:$0xf]  ;;  %v6319_v30 = vld [vmem:[%s8066_s14 + $0x1c] sm:$0xf]  ;;  %v7880_v55 = vld [vmem:[%s8066_s14 + $0xc] sm:$0xff]  }
  0x14   : > { %7349 = vmatpush3.bf16.msra.mxu0 %v7870_v7  ;;  %7158 = vmatprep.subr.bf16.mxu1 %v7871_v8  ;;  %v2573_v22 = vrot.slane %v2571_v16, 4  ;;  %v2576_v23 = vrot.slane %v2574_v17, 5  ;;  %v2582_v25 = vrot.slane %v2580_v19, 5  ;;  %v2586_v26 = vrot.slane %v2584_v20, 4  ;;  %v6320_v31 = vld [vmem:[%s8066_s14 + $0x20] sm:$0x1] }
  0x15   : > { %7350 = vmatprep.subr.bf16.mxu0 %v7872_v9  ;;  %v2592_v27 = vrot.slane %v2590_v21, 5  ;;  %v2595_v35 = vshrl.u32 %v6318_v29, 16  ;;  %v2598_v36 = vshll.u32 %v6318_v29, 16  ;;  %v2604_v37 = vshll.u32 %v6319_v30, 16  ;;  %v6321_v53 = vld [vmem:[%s8066_s14 + $0x24] sm:$0xf] }
  0x16   : > { %v2577_v28 = vor.u32 %v2576_v23, %v2573_v22  ;;  %v2587_v34 = vor.u32 %v2586_v26, %v2582_v25  ;;  %v2608_v40 = vshrl.u32 %v6319_v30, 16  ;;  %v2614_v41 = vshll.u32 %v6320_v31, 16  ;;  %v6322_v57 = vld [vmem:[%s8066_s14 + $0x28] sm:$0xf]  ;;  %v6323_v58 = vld [vmem:[%s8066_s14 + $0x2c] sm:$0x1] }
  0x17   : > { %7159 = vmatpush3.bf16.msra.mxu1 %v7871_v8  ;;  %v2597_v43 = vrot.slane %v2595_v35, 4  ;;  %v2600_v44 = vrot.slane %v2598_v36, 5  ;;  %v2606_v45 = vrot.slane %v2604_v37, 5  ;;  %v2619_v59 = vshrl.u32 %v6321_v53, 16  ;;  %v7884_v2 = vld [vmem:[%s8066_s14 + $0x18] sm:$0xff]   ;;  %v7883_v6 = vld [vmem:[%s9183_s1 + $0x148] sm:$0xff]  }
  0x18   : > { %7351 = vmatpush3.bf16.msra.mxu0 %v7872_v9  ;;  %7160 = vmatprep.subr.bf16.mxu1 %v7873_v10  ;;  %v2578_v39 = vrot.slane %v2577_v28, 4  ;;  %v2588_v42 = vrot.slane %v2587_v34, 4  ;;  %v2610_v48 = vrot.slane %v2608_v40, 4  ;;  %v2616_v51 = vrot.slane %v2614_v41, 5  ;;  %v6324_v13 = vld [vmem:[%s8066_s14 + $0x30] sm:$0xf] }
  0x19   : > { %7352 = vmatprep.subr.bf16.mxu0 %v7874_v11  ;;  %v2601_v50 = vor.u32 %v2600_v44, %v2597_v43  ;;  %v2622_v60 = vshll.u32 %v6321_v53, 16  ;;  %v2628_v62 = vshll.u32 %v6322_v57, 16  ;;  %v2632_v63 = vshrl.u32 %v6322_v57, 16  ;;  %v6325_v14 = vld [vmem:[%s8066_s14 + $0x34] sm:$0xf]  ;;  %v7885_v28 = vld [vmem:[%s8066_s14 + $0x24] sm:$0xff]  }
  0x1a   : > { %v2583_v46 = vsel %vm8089_vm2, %v2578_v39, %v2582_v25  ;;  %v2593_v49 = vsel %vm8089_vm2, %v2588_v42, %v2592_v27  ;;  %v2611_v56 = vor.u32 %v2610_v48, %v2606_v45  ;;  %v2638_v0 = vshll.u32 %v6323_v58, 16  ;;  %v6326_v17 = vld [vmem:[%s8066_s14 + $0x38] sm:$0x1]  ;;  %v7887_v31 = vld [vmem:[%s9183_s1 + $0x150] sm:$0xff]   ;;  %v6327_v39 = vld [vmem:[%s8066_s14 + $0x3c] sm:$0xf] }
  0x1b   : > { %7161 = vmatpush3.bf16.msra.mxu1 %v7873_v10  ;;  %v6379_v54 = vcombine.low %v2583_v46, %v2593_v49  ;;  %v2602_v61 = vrot.slane %v2601_v50, 4  ;;  %v2621_v3 = vrot.slane %v2619_v59, 4  ;;  %v2624_v4 = vrot.slane %v2622_v60, 5  ;;  %v7886_v10 = vld [vmem:[%s9183_s1 + $0x48] sm:$0xff]   ;;  %v7889_v36 = vld [vmem:[%s8066_s14 + $0x30] sm:$0xff]  }
  0x1c   : > { %7353 = vmatpush3.bf16.msra.mxu0 %v7874_v11  ;;  %7162 = vmatprep.subr.bf16.mxu1 %v7875_v18  ;;  %v2612_v1 = vrot.slane %v2611_v56, 4  ;;  %v2630_v7 = vrot.slane %v2628_v62, 5  ;;  %v2634_v8 = vrot.slane %v2632_v63, 4  ;;  %v2640_v9 = vrot.slane %v2638_v0, 5  ;;  %v6328_v40 = vld [vmem:[%s8066_s14 + $0x40] sm:$0xf] }
  0x1d   : > { %7354 = vmatprep.subr.bf16.mxu0 %v7876_v24  ;;  %7358 = vmatprep.mubr.bf16.mxu0 %v6379_v54  ;;  %v2607_v5 = vsel %vm8089_vm2, %v2602_v61, %v2606_v45  ;;  %v2625_v12 = vor.u32 %v2624_v4, %v2621_v3  ;;  %v2646_v19 = vshll.u32 %v6324_v13, 16  ;;  %v2652_v21 = vshll.u32 %v6325_v14, 16  ;;  %v6329_v41 = vld [vmem:[%s8066_s14 + $0x44] sm:$0x1]  ;;  %v7891_v54 = vld [vmem:[%s9183_s1 + $0x50] sm:$0xff]  }
  0x1e   : > { %v2617_v11 = vsel %vm8089_vm2, %v2612_v1, %v2616_v51  ;;  %v2635_v16 = vor.u32 %v2634_v8, %v2630_v7  ;;  %v2656_v22 = vshrl.u32 %v6325_v14, 16  ;;  %v2662_v23 = vshll.u32 %v6326_v17, 16  ;;  %v6330_v58 = vld [vmem:[%s8066_s14 + $0x48] sm:$0xf]  ;;  %v6331_v61 = vld [vmem:[%s8066_s14 + $0x4c] sm:$0xf] }
  0x1f   : > { %7163 = vmatpush3.bf16.msra.mxu1 %v7875_v18  ;;  %v6380_v15 = vcombine.low %v2607_v5, %v2617_v11  ;;  %v2643_v18 = vshrl.u32 %v6324_v13, 16  ;;  %v2626_v20 = vrot.slane %v2625_v12, 4  ;;  %v2648_v26 = vrot.slane %v2646_v19, 5  ;;  %v6332_v62 = vld [vmem:[%s8066_s14 + $0x50] sm:$0x1]  ;;  %v7892_v8 = vld [vmem:[%s9183_s1 + $0x160] sm:$0xff]  }
  0x20   : > { %7355 = vmatpush3.bf16.msra.mxu0 %v7876_v24  ;;  %7164 = vmatprep.subr.bf16.mxu1 %v7877_v32  ;;  %v2636_v24 = vrot.slane %v2635_v16, 4  ;;  %v2654_v29 = vrot.slane %v2652_v21, 5  ;;  %v2658_v30 = vrot.slane %v2656_v22, 4  ;;  %v2664_v35 = vrot.slane %v2662_v23, 5  ;;  %v6333_v19 = vld [vmem:[%s8066_s14 + $0x54] sm:$0xf] }
  0x21   : > { %7356 = vmatprep.subr.bf16.mxu0 %v7878_v38  ;;  %v2645_v25 = vrot.slane %v2643_v18, 4  ;;  %v2631_v27 = vsel %vm8089_vm2, %v2626_v20, %v2630_v7  ;;  %v2667_v43 = vshrl.u32 %v6327_v39, 16  ;;  %v2670_v44 = vshll.u32 %v6327_v39, 16  ;;  %v7894_v18 = vld [vmem:[%s8066_s14 + $0x48] sm:$0xff]   ;;  %v6334_v20 = vld [vmem:[%s8066_s14 + $0x58] sm:$0xf] }
  0x22   : > { %v2676_v45 = vshll.u32 %v6328_v40, 16  ;;  %v2680_v48 = vshrl.u32 %v6328_v40, 16  ;;  %v2686_v49 = vshll.u32 %v6329_v41, 16  ;;  %v2691_v63 = vshrl.u32 %v6330_v58, 16  ;;  %v7893_v23 = vld [vmem:[%s9183_s1 + $0x168] sm:$0xff]   ;;  %v7895_v39 = vld [vmem:[%s8066_s14 + $0x54] sm:$0xff]  }
  0x23   : > { %7165 = vmatpush3.bf16.msra.mxu1 %v7877_v32  ;;  %v2641_v32 = vsel %vm8089_vm2, %v2636_v24, %v2640_v9  ;;  %v2649_v34 = vor.u32 %v2648_v26, %v2645_v25  ;;  %v2669_v51 = vrot.slane %v2667_v43, 4  ;;  %v2694_v0 = vshll.u32 %v6330_v58, 16  ;;  %v6335_v24 = vld [vmem:[%s8066_s14 + $0x5c] sm:$0x1]  ;;  %v6336_v43 = vld [vmem:[%s8066_s14 + $0x60] sm:$0xf] }
  0x24   : > { %7357 = vmatpush3.bf16.msra.mxu0 %v7878_v38  ;;  %7198 = vmatprep.subr.bf16.mxu1 %v7881_v47  ;;  %v6381_v37 = vcombine.low %v2631_v27, %v2641_v32  ;;  %v2659_v38 = vor.u32 %v2658_v30, %v2654_v29  ;;  %v2678_v53 = vrot.slane %v2676_v45, 5  ;;  %v2682_v56 = vrot.slane %v2680_v48, 4  ;;  %v7896_v40 = vld [vmem:[%s9183_s1 + $0x58] sm:$0xff]   ;;  %v6338_v45 = vld [vmem:[%s8066_s14 + $0x68] sm:$0x1] }
  0x25   : > { %7390 = vmatprep.subr.bf16.mxu0 %v7882_v52  ;;  %v2650_v42 = vrot.slane %v2649_v34, 4  ;;  %v2688_v57 = vrot.slane %v2686_v49, 5  ;;  %v2704_v3 = vshrl.u32 %v6331_v61, 16  ;;  %v2710_v4 = vshll.u32 %v6332_v62, 16 }
  0x26   : > { %7167 = vmatmul.mubr.bf16.vlgmr.msra.gmra.mrb[0].mxu1 %v7880_v55  ;;  %v2660_v46 = vrot.slane %v2659_v38, 4  ;;  %v2683_v1 = vor.u32 %v2682_v56, %v2678_v53  ;;  %v2696_v7 = vrot.slane %v2694_v0, 5  ;;  %v2715_v25 = vshrl.u32 %v6333_v19, 16  ;;  %v6403_v0 = vld [vmem:[%s8066_s14 + $0xc] sm:$0xe] }
  0x27   : > { %7359 = vmatmul.mubr.bf16.vlgmr.msra.gmra.mrb[0].mxu0 %v6380_v15  ;;  %7199 = vmatpush3.bf16.msra.mxu1 %v7881_v47  ;;  %v7888_v47 = vld [vmem:[%s9183_s1 + $0x158] sm:$0xff]   ;;  %v2655_v50 = vsel %vm8089_vm2, %v2650_v42, %v2654_v29  ;;  %v2706_v12 = vrot.slane %v2704_v3, 4  ;;  %v2712_v17 = vrot.slane %v2710_v4, 5  ;;  %v2718_v26 = vshll.u32 %v6333_v19, 16 }
  0x28   : > { %7391 = vmatpush3.bf16.msra.mxu0 %v7882_v52  ;;  %7170 = vmatprep.mubr.bf16.mxu1 %v7884_v2  ;;  %v2672_v52 = vrot.slane %v2670_v44, 5  ;;  %v2665_v55 = vsel %vm8089_vm2, %v2660_v46, %v2664_v35  ;;  %v2700_v2 = vshll.u32 %v6331_v61, 16  ;;  %v2684_v9 = vrot.slane %v2683_v1, 4  ;;  %v6337_v44 = vld [vmem:[%s8066_s14 + $0x64] sm:$0xf] }
  0x29   : > { %7392 = vmatprep.subr.bf16.mxu0 %v7883_v6  ;;  %7200 = vmatprep.subr.bf16.mxu1 %v7886_v10  ;;  %v6382_v59 = vcombine.low %v2655_v50, %v2665_v55  ;;  %v2728_v29 = vshrl.u32 %v6334_v20, 16  ;;  %v2734_v30 = vshll.u32 %v6335_v24, 16  ;;  %v2717_v32 = vrot.slane %v2715_v25, 4  ;;  %v7897_v50 = vld [vmem:[%s9183_s1 + $0x170] sm:$0xff]  }
  0x2a   : > { %7362 = vmatprep.mubr.bf16.mxu0 %v6381_v37  ;;  %v2673_v60 = vor.u32 %v2672_v52, %v2669_v51  ;;  %v2702_v11 = vrot.slane %v2700_v2, 5  ;;  %v2689_v15 = vsel %vm8089_vm2, %v2684_v9, %v2688_v57  ;;  %v2720_v34 = vrot.slane %v2718_v26, 5 }
  0x2b   : > { %7201 = vmatpush3.bf16.msra.mxu1 %v7886_v10  ;;  %v7890_v10 = vld [vmem:[%s8066_s14 + $0x3c] sm:$0xff]   ;;  %v2730_v37 = vrot.slane %v2728_v29, 4  ;;  %v2736_v38 = vrot.slane %v2734_v30, 5  ;;  %v2742_v48 = vshll.u32 %v6336_v43, 16  ;;  %v2748_v49 = vshll.u32 %v6337_v44, 16 }
  0x2c   : > { %7393 = vmatpush3.bf16.msra.mxu0 %v7883_v6  ;;  %7202 = vmatprep.subr.bf16.mxu1 %v7891_v54  ;;  %v2674_v5 = vrot.slane %v2673_v60, 4  ;;  %v2693_v6 = vrot.slane %v2691_v63, 4  ;;  %v2707_v16 = vor.u32 %v2706_v12, %v2702_v11  ;;  %v2721_v42 = vor.u32 %v2720_v34, %v2717_v32  ;;  %v7898_v60 = vld [vmem:[%s9183_s1 + $0x178] sm:$0xff]   ;;  %v7899_v63 = vld [vmem:[%s8066_s14 + $0x60] sm:$0xff]   ;;  %v6411_v32 = vld [vmem:[%s8066_s14 + $0x2c] sm:$0x1] }
  0x2d   : > { %7394 = vmatprep.subr.bf16.mxu0 %v7887_v31  ;;  %v2752_v52 = vshrl.u32 %v6337_v44, 16  ;;  %v2744_v56 = vrot.slane %v2742_v48, 5  ;;  %v2750_v57 = vrot.slane %v2748_v49, 5  ;;  %v6409_v29 = vld [vmem:[%s8066_s14 + $0x24] sm:$0xe]  ;;  %v7906_v48 = vld [vmem:[%s9183_s1 + $0x188] sm:$0xff]  }
  0x2e   : > { %7171 = vmatmul.mubr.bf16.gmra.mrb[4].mxu1 %v7885_v28  ;;  %v2679_v13 = vsel %vm8089_vm2, %v2674_v5, %v2678_v53  ;;  %v2697_v14 = vor.u32 %v2696_v7, %v2693_v6  ;;  %v2708_v27 = vrot.slane %v2707_v16, 4  ;;  %v2724_v28 = vshll.u32 %v6334_v20, 16  ;;  %v6404_v5 = vld [vmem:[%s8066_s14 + $0x10] sm:$0xf]  ;;  %v6405_v6 = vld [vmem:[%s8066_s14 + $0x14] sm:$0x1] }
  0x2f   : > { %7174 = vmatprep.mubr.bf16.mxu1 %v7889_v36  ;;  %7203 = vmatpush3.bf16.msra.mxu1 %v7891_v54  ;;  %v6383_v21 = vcombine.low %v2679_v13, %v2689_v15  ;;  %v2722_v51 = vrot.slane %v2721_v42, 4  ;;  %v2758_v53 = vshll.u32 %v6338_v45, 16  ;;  %v6451_v7 = vrot.slane %v6403_v0, 9  ;;  %v7902_v13 = vld [vmem:[%s9183_s1 + $0x180] sm:$0xff]   ;;  %v6407_v20 = vld [vmem:[%s8066_s14 + $0x1c] sm:$0xf] }
  0x30   : > { %7395 = vmatpush3.bf16.msra.mxu0 %v7887_v31  ;;  %v2698_v22 = vrot.slane %v2697_v14, 4  ;;  %v2713_v35 = vsel %vm8089_vm2, %v2708_v27, %v2712_v17  ;;  %v2726_v36 = vrot.slane %v2724_v28, 5  ;;  %7204 = vmatprep.subr.bf16.mxu1 %v7896_v40  ;;  %v3438_v9 = vrot.slane %v6404_v5, 5  ;;  %v7900_v17 = vld [vmem:[%s8066_s14 + $0x6c] sm:$0xff]   ;;  %v7904_v42 = vld [vmem:[%s8066_s14 + $0x84] sm:$0xff]  }
  0x31   : > { %7363 = vmatmul.mubr.bf16.gmra.mrb[4].mxu0 %v6382_v59  ;;  %7396 = vmatprep.subr.bf16.mxu0 %v7888_v47  ;;  %v2754_v59 = vrot.slane %v2752_v52, 4  ;;  %v2760_v3 = vrot.slane %v2758_v53, 5  ;;  %v3445_v26 = vrot.slane %v6407_v20, 5  ;;  %v6453_v34 = vrot.slane %v6409_v29, 9  ;;  %v6413_v44 = vld [vmem:[%s8066_s14 + $0x34] sm:$0xf] }
  0x32   : > { %7366 = vmatprep.mubr.bf16.mxu0 %v6383_v21  ;;  %v2703_v31 = vsel %vm8089_vm2, %v2698_v22, %v2702_v11  ;;  %v2731_v46 = vor.u32 %v2730_v37, %v2726_v36  ;;  %v2727_v58 = vsel %vm8089_vm2, %v2722_v51, %v2726_v36  ;;  %v7901_v11 = vld [vmem:[%s9183_s1 + $0x60] sm:$0xff]   ;;  %v3439_v15 = vsel %vm8189_vm5, %v6451_v7, %v3438_v9  ;;  %v6418_v0 = vld [vmem:[%s8066_s14 + $0x48] sm:$0xe]  ;;  %v6419_v5 = vld [vmem:[%s8066_s14 + $0x4c] sm:$0xf] }
  0x33   : > { %v6384_v41 = vcombine.low %v2703_v31, %v2713_v35  ;;  %7205 = vmatpush3.bf16.msra.mxu1 %v7896_v40  ;;  %v2755_v2 = vor.u32 %v2754_v59, %v2750_v57  ;;  %v3440_v16 = vrot.slane %v3438_v9, 4  ;;  %v6408_v21 = vld [vmem:[%s8066_s14 + $0x20] sm:$0x1]  ;;  %v3447_v30 = vrot.slane %v3445_v26, 4  ;;  %v6410_v31 = vld [vmem:[%s8066_s14 + $0x28] sm:$0xf] }
  0x34   : > { %7397 = vmatpush3.bf16.msra.mxu0 %v7888_v47  ;;  %v2739_v47 = vshrl.u32 %v6336_v43, 16  ;;  %v2732_v54 = vrot.slane %v2731_v46, 4  ;;  %7206 = vmatprep.subr.bf16.mxu1 %v7901_v11  ;;  %v3448_v27 = vrot.slane %v6408_v21, 5  ;;  %v3452_v36 = vrot.slane %v6410_v31, 5  ;;  %v6412_v43 = vld [vmem:[%s8066_s14 + $0x30] sm:$0xe] }
  0x35   : > { %7398 = vmatprep.subr.bf16.mxu0 %v7892_v8  ;;  %v2756_v12 = vrot.slane %v2755_v2, 4  ;;  %v3455_v37 = vrot.slane %v6411_v32, 5  ;;  %v6414_v46 = vld [vmem:[%s8066_s14 + $0x38] sm:$0x1]  ;;  %v7909_v59 = vld [vmem:[%s9183_s1 + $0x70] sm:$0xff]   ;;  %v6456_v7 = vrot.slane %v6418_v0, 9 }
  0x36   : > { %7175 = vmatmul.mubr.bf16.gmra.mrb[8].mxu1 %v7890_v10  ;;  %v2741_v55 = vrot.slane %v2739_v47, 4  ;;  %v2737_v61 = vsel %vm8089_vm2, %v2732_v54, %v2736_v38  ;;  %v3441_v10 = vrot.slane %v6405_v6, 5  ;;  %v3449_v38 = vsel %vm8189_vm5, %v3447_v30, %v3448_v27  ;;  %v7907_v54 = vld [vmem:[%s8066_s14 + $0x90] sm:$0xff]   ;;  %v6424_v27 = vld [vmem:[%s8066_s14 + $0x60] sm:$0xe]  ;;  %v7914_v31 = vld [vmem:[%s9183_s1 + $0x198] sm:$0xff]  }
  0x37   : > { %7178 = vmatprep.mubr.bf16.mxu1 %v7894_v18  ;;  %v6385_v1 = vcombine.low %v2727_v58, %v2737_v61  ;;  %v6406_v18 = vld [vmem:[%s8066_s14 + $0x18] sm:$0xe]  ;;  %v2761_v19 = vsel %vm8089_vm2, %v2756_v12, %v2760_v3  ;;  %7207 = vmatpush3.bf16.msra.mxu1 %v7901_v11  ;;  %v3453_v40 = vsel %vm8189_vm5, %v6453_v34, %v3452_v36  ;;  %v3459_v47 = vrot.slane %v6413_v44, 5  ;;  %v7908_v3 = vld [vmem:[%s8066_s14 + $0x9c] sm:$0xff]   ;;  %v6420_v6 = vld [vmem:[%s8066_s14 + $0x50] sm:$0x1] }
  0x38   : > { %7399 = vmatpush3.bf16.msra.mxu0 %v7892_v8  ;;  %v2745_v62 = vor.u32 %v2744_v56, %v2741_v55  ;;  %v6452_v22 = vrot.slane %v6406_v18, 9  ;;  %v3442_v25 = vsel %vm8189_vm5, %v3440_v16, %v3441_v10  ;;  %v3462_v51 = vrot.slane %v6414_v46, 5  ;;  %v6415_v55 = vld [vmem:[%s8066_s14 + $0x3c] sm:$0xe]  ;;  %v6416_v56 = vld [vmem:[%s8066_s14 + $0x40] sm:$0xf] }
  0x39   : > { %7400 = vmatprep.subr.bf16.mxu0 %v7893_v23  ;;  %7367 = vmatmul.mubr.bf16.gmra.mrb[8].mxu0 %v6384_v41  ;;  %v6483_v28 = vcombine.low %v3439_v15, %v3442_v25  ;;  %v3454_v41 = vrot.slane %v3452_v36, 4  ;;  %v3461_v53 = vrot.slane %v3459_v47, 4  ;;  %v6455_v58 = vrot.slane %v6415_v55, 9  ;;  %v7910_v12 = vld [vmem:[%s9183_s1 + $0x190] sm:$0xff]   ;;  %v7911_v15 = vld [vmem:[%s8066_s14 + $0xa8] sm:$0xff]  }
  0x3a   : > { %v2746_v8 = vrot.slane %v2745_v62, 4  ;;  %7370 = vmatprep.mubr.bf16.mxu0 %v6385_v1  ;;  %v3446_v35 = vsel %vm8189_vm5, %v6452_v22, %v3445_v26  ;;  %v3476_v11 = vrot.slane %v6420_v6, 5  ;;  %v6421_v16 = vld [vmem:[%s8066_s14 + $0x54] sm:$0xe]  ;;  %v6423_v18 = vld [vmem:[%s8066_s14 + $0x5c] sm:$0x1] }
  0x3b   : > { %v6484_v45 = vcombine.low %v3446_v35, %v3449_v38  ;;  %v3456_v49 = vsel %vm8189_vm5, %v3454_v41, %v3455_v37  ;;  %v3483_v21 = vrot.slane %v6423_v18, 5  ;;  %v7913_v26 = vld [vmem:[%s9183_s1 + $0x78] sm:$0xff]   ;;  %v6426_v29 = vld [vmem:[%s8066_s14 + $0x68] sm:$0x1]  ;;  %v6458_v30 = vrot.slane %v6424_v27, 9 }
  0x3c   : > { %7401 = vmatpush3.bf16.msra.mxu0 %v7893_v23  ;;  %v2751_v14 = vsel %vm8089_vm2, %v2746_v8, %v2750_v57  ;;  %v7903_v23 = vld [vmem:[%s8066_s14 + $0x78] sm:$0xff]   ;;  %v6485_v52 = vcombine.low %v3453_v40, %v3456_v49  ;;  %v6417_v57 = vld [vmem:[%s8066_s14 + $0x44] sm:$0x1]  ;;  %v3473_v8 = vrot.slane %v6419_v5, 5  ;;  %v3490_v36 = vrot.slane %v6426_v29, 5 }
  0x3d   : > { %7402 = vmatprep.subr.bf16.mxu0 %v7897_v50  ;;  %v6386_v24 = vcombine.low %v2751_v14, %v2761_v19  ;;  %v3469_v61 = vrot.slane %v6417_v57, 5  ;;  %v6457_v19 = vrot.slane %v6421_v16, 9  ;;  %v7912_v34 = vld [vmem:[%s8066_s14 + $0xb4] sm:$0xff]   ;;  %v654_v40 = vld [vmem:[%s8066_s14 + $0x4] sm:$0xf] }
  0x3e   : > { %7179 = vmatmul.mubr.bf16.gmra.mrb[12].mxu1 %v7895_v39  ;;  %v7905_v39 = vld [vmem:[%s9183_s1 + $0x68] sm:$0xff]   ;;  %v3475_v14 = vrot.slane %v3473_v8, 4  ;;  %v3474_v22 = vsel %vm8189_vm5, %v6456_v7, %v3473_v8  ;;  %v718_v49 = vshrl.u32 %v654_v40, 16  ;;  %v657_v5 = vld [vmem:[%s8066_s14 + $0x10] sm:$0xf] }
  0x3f   : > { %7182 = vmatprep.mubr.bf16.mxu1 %v7899_v63  ;;  %7208 = vmatprep.subr.bf16.mxu1 %v7905_v39  ;;  %v3463_v63 = vsel %vm8189_vm5, %v3461_v53, %v3462_v51  ;;  %v655_v41 = vld [vmem:[%s8066_s14 + $0x8] sm:$0x1]  ;;  %v6427_v46 = vld [vmem:[%s8066_s14 + $0x6c] sm:$0xe]  ;;  %v6428_v51 = vld [vmem:[%s8066_s14 + $0x70] sm:$0xf] }
  0x40   : > { %7403 = vmatpush3.bf16.msra.mxu0 %v7897_v50  ;;  %v6454_v50 = vrot.slane %v6412_v43, 9  ;;  %7209 = vmatpush3.bf16.msra.mxu1 %v7905_v39  ;;  %v653_v39 = vld [vmem:[%s8066_s14] sm:$0xf]  ;;  %v3494_v57 = vrot.slane %v6428_v51, 5  ;;  %v658_v6 = vld [vmem:[%s8066_s14 + $0x14] sm:$0x1] }
  0x41   : > { %7404 = vmatprep.subr.bf16.mxu0 %v7898_v60  ;;  %7371 = vmatmul.mubr.bf16.gmra.mrb[12].mxu0 %v6386_v24  ;;  %v705_v44 = vshrl.u32 %v653_v39, 16  ;;  %v6432_v29 = vld [vmem:[%s8066_s14 + $0x80] sm:$0x1] }
  0x42   : > { %7406 = vmatprep.mubr.bf16.mxu0 %v6483_v28  ;;  %v3460_v62 = vsel %vm8189_vm5, %v6454_v50, %v3459_v47  ;;  %7210 = vmatprep.subr.bf16.mxu1 %v7909_v59  ;;  %v6425_v28 = vld [vmem:[%s8066_s14 + $0x64] sm:$0xf]  ;;  %v724_v50 = vshll.u32 %v655_v41, 16  ;;  %v660_v41 = vld [vmem:[%s8066_s14 + $0x1c] sm:$0xf] }
  0x43   : > { %v6486_v9 = vcombine.low %v3460_v62, %v3463_v63  ;;  %v3487_v35 = vrot.slane %v6425_v28, 5  ;;  %v8290_v47 = vld [vmem:[%s9183_s1 + $0x80] sm:$0xff]   ;;  %v656_v63 = vld [vmem:[%s8066_s14 + $0xc] sm:$0xf]  ;;  %v766_v51 = vshrl.u32 %v660_v41, 16 }
  0x44   : > { %7405 = vmatpush3.bf16.msra.mxu0 %v7898_v60  ;;  %v3466_v60 = vrot.slane %v6416_v56, 5  ;;  %7211 = vmatpush3.bf16.msra.mxu1 %v7909_v59  ;;  %v6429_v56 = vld [vmem:[%s8066_s14 + $0x74] sm:$0x1]  ;;  %v726_v62 = vrot.slane %v724_v50, 5  ;;  %v729_v8 = vshrl.u32 %v656_v63, 16 }
  0x45   : > { %7438 = vmatprep.subr.bf16.mxu0 %v7902_v13  ;;  %7212 = vmatprep.subr.bf16.mxu1 %v7913_v26  ;;  %v3489_v43 = vrot.slane %v3487_v35, 4 }
  0x46   : > { %7183 = vmatmul.mubr.bf16.gmra.mrb[16].mxu1 %v7900_v17  ;;  %v3467_v1 = vsel %vm8189_vm5, %v6455_v58, %v3466_v60  ;;  %v3468_v2 = vrot.slane %v3466_v60, 4  ;;  %v6422_v17 = vld [vmem:[%s8066_s14 + $0x58] sm:$0xf]  ;;  %v7916_v58 = vld [vmem:[%s9183_s1 + $0x1a0] sm:$0xff]   ;;  %v731_v18 = vrot.slane %v729_v8, 4 }
  0x47   : > { %7186 = vmatprep.mubr.bf16.mxu1 %v7903_v23  ;;  %v3480_v20 = vrot.slane %v6422_v17, 5  ;;  %v3477_v23 = vsel %vm8189_vm5, %v3475_v14, %v3476_v11  ;;  %v3491_v53 = vsel %vm8189_vm5, %v3489_v43, %v3490_v36  ;;  %v7918_v11 = vld [vmem:[%s9183_s1 + $0x1a8] sm:$0xff]   ;;  %v742_v14 = vshrl.u32 %v657_v5, 16  ;;  %v659_v36 = vld [vmem:[%s8066_s14 + $0x18] sm:$0xf] }
  0x48   : > { %v3470_v10 = vsel %vm8189_vm5, %v3468_v2, %v3469_v61  ;;  %v6488_v37 = vcombine.low %v3474_v22, %v3477_v23  ;;  %7213 = vmatpush3.bf16.msra.mxu1 %v7913_v26  ;;  %v720_v61 = vrot.slane %v718_v49, 4  ;;  %v3496_v2 = vrot.slane %v3494_v57, 4  ;;  %v6431_v26 = vld [vmem:[%s8066_s14 + $0x7c] sm:$0xf] }
  0x49   : > { %7407 = vmatmul.mubr.bf16.vlgmr.msra.gmra.mrb[0].mxu0 %v6484_v45  ;;  %v3481_v24 = vsel %vm8189_vm5, %v6457_v19, %v3480_v20  ;;  %v3482_v25 = vrot.slane %v3480_v20, 4  ;;  %v708_v45 = vshll.u32 %v653_v39, 16  ;;  %7246 = vmatprep.subr.bf16.mxu1 %v8290_v47  ;;  %v6430_v20 = vld [vmem:[%s8066_s14 + $0x78] sm:$0xe] }
  0x4a   : > { %7439 = vmatpush3.bf16.msra.mxu0 %v7902_v13  ;;  %7410 = vmatprep.mubr.bf16.mxu0 %v6485_v52  ;;  %v6487_v13 = vcombine.low %v3467_v1, %v3470_v10  ;;  %v6459_v52 = vrot.slane %v6427_v46, 9  ;;  %v738_v10 = vshll.u32 %v657_v5, 16  ;;  %v762_v46 = vshll.u32 %v660_v41, 16 }
  0x4b   : > { %7440 = vmatprep.subr.bf16.mxu0 %v7906_v48  ;;  %v3484_v32 = vsel %vm8189_vm5, %v3482_v25, %v3483_v21  ;;  %v710_v55 = vrot.slane %v708_v45, 5  ;;  %v7920_v21 = vld [vmem:[%s9183_s1 + $0x1b0] sm:$0xff]   ;;  %v756_v45 = vshll.u32 %v659_v36, 16 }
  0x4c   : > { %v6489_v38 = vcombine.low %v3481_v24, %v3484_v32  ;;  %v3495_v1 = vsel %vm8189_vm5, %v6459_v52, %v3494_v57  ;;  %v740_v23 = vrot.slane %v738_v10, 5  ;;  %v744_v24 = vrot.slane %v742_v14, 4 }
  0x4e   : > { %7187 = vmatmul.mubr.bf16.gmra.mrb[20].mxu1 %v7904_v42  ;;  %7441 = vmatpush3.bf16.msra.mxu0 %v7906_v48  ;;  %v8284_v42 = vsel %vm8189_vm5, %v6458_v30, %v3487_v35  ;;  %v714_v48 = vshll.u32 %v654_v40, 16  ;;  %v6460_v30 = vrot.slane %v6430_v20, 9  ;;  %v3504_v35 = vrot.slane %v6432_v29, 5 }
  0x4f   : > { %7190 = vmatprep.mubr.bf16.mxu1 %v7907_v54  ;;  %7442 = vmatprep.subr.bf16.mxu0 %v7910_v12  ;;  %v707_v54 = vrot.slane %v705_v44, 4  ;;  %v6490_v59 = vcombine.low %v8284_v42, %v3491_v53  ;;  %v661_v42 = vld [vmem:[%s8066_s14 + $0x20] sm:$0x1]  ;;  %v753_v44 = vshrl.u32 %v659_v36, 16  ;;  %v6434_v53 = vld [vmem:[%s8066_s14 + $0x88] sm:$0xf] }
  0x50   : > { %v716_v60 = vrot.slane %v714_v48, 5  ;;  %v6433_v48 = vld [vmem:[%s8066_s14 + $0x84] sm:$0xe]  ;;  %v772_v52 = vshll.u32 %v661_v42, 16 }
  0x51   : > { %7411 = vmatmul.mubr.bf16.gmra.mrb[4].mxu0 %v6486_v9  ;;  %v711_v0 = vor.u32 %v710_v55, %v707_v54  ;;  %v732_v9 = vshll.u32 %v656_v63, 16  ;;  %v6435_v54 = vld [vmem:[%s8066_s14 + $0x8c] sm:$0x1]  ;;  %v755_v57 = vrot.slane %v753_v44, 4  ;;  %v768_v63 = vrot.slane %v766_v51, 4 }
  0x52   : > { %7414 = vmatprep.mubr.bf16.mxu0 %v6487_v13  ;;  %7443 = vmatpush3.bf16.msra.mxu0 %v7910_v12  ;;  %v721_v7 = vor.u32 %v720_v61, %v716_v60  ;;  %v6461_v5 = vrot.slane %v6433_v48, 9  ;;  %v6440_v51 = vld [vmem:[%s8066_s14 + $0xa0] sm:$0xf] }
  0x53   : > { %7444 = vmatprep.subr.bf16.mxu0 %v7914_v31  ;;  %v712_v12 = vrot.slane %v711_v0, 4  ;;  %v734_v19 = vrot.slane %v732_v9, 5  ;;  %v774_v0 = vrot.slane %v772_v52, 5 }
  0x54   : > { %v722_v16 = vrot.slane %v721_v7, 4  ;;  %v3511_v7 = vrot.slane %v6435_v54, 5 }
  0x55   : > { %v717_v22 = vsel %vm8089_vm2, %v712_v12, %v716_v60  ;;  %v735_v28 = vor.u32 %v734_v19, %v731_v18  ;;  %v663_v60 = vld [vmem:[%s8066_s14 + $0x28] sm:$0xf]  ;;  %v7919_v12 = vld [vmem:[%s9183_s1 + $0x90] sm:$0xff]   ;;  %v8354_v18 = vld [vmem:[%s9183_s1 + $0x1c0] sm:$0xff]  }
  0x56   : > { %7191 = vmatmul.mubr.bf16.gmra.mrb[24].mxu1 %v7908_v3  ;;  %7445 = vmatpush3.bf16.msra.mxu0 %v7914_v31  ;;  %v3497_v3 = vrot.slane %v6429_v56, 5  ;;  %v727_v27 = vsel %vm8089_vm2, %v722_v16, %v726_v62  ;;  %v3501_v31 = vrot.slane %v6431_v26, 5  ;;  %v764_v62 = vrot.slane %v762_v46, 5 }
  0x57   : > { %7194 = vmatprep.mubr.bf16.mxu1 %v7911_v15  ;;  %7446 = vmatprep.subr.bf16.mxu0 %v7916_v58  ;;  %v748_v15 = vshll.u32 %v658_v6, 16  ;;  %v6163_v32 = vcombine.low %v717_v22, %v727_v27  ;;  %v3508_v6 = vrot.slane %v6434_v53, 5  ;;  %v790_v16 = vshrl.u32 %v663_v60, 16  ;;  %v6438_v27 = vld [vmem:[%s8066_s14 + $0x98] sm:$0x1] }
  0x58   : > { %v3498_v13 = vsel %vm8189_vm5, %v3496_v2, %v3497_v3  ;;  %v3502_v39 = vsel %vm8189_vm5, %v6460_v30, %v3501_v31  ;;  %v3503_v40 = vrot.slane %v3501_v31, 4  ;;  %v7917_v2 = vld [vmem:[%s9183_s1 + $0x88] sm:$0xff]   ;;  %v769_v8 = vor.u32 %v768_v63, %v764_v62 }
  0x59   : > { %7415 = vmatmul.mubr.bf16.gmra.mrb[8].mxu0 %v6488_v37  ;;  %v6491_v17 = vcombine.low %v3495_v1, %v3498_v13  ;;  %v750_v25 = vrot.slane %v748_v15, 5  ;;  %v7922_v37 = vld [vmem:[%s9183_s1 + $0x1b8] sm:$0xff]   ;;  %v664_v1 = vld [vmem:[%s8066_s14 + $0x2c] sm:$0x1]  ;;  %v3509_v14 = vsel %vm8189_vm5, %v6461_v5, %v3508_v6  ;;  %v3510_v15 = vrot.slane %v3508_v6, 4  ;;  %v7924_v5 = vld [vmem:[%s9183_s1 + $0xa0] sm:$0xff]  }
  0x5a   : > { %7418 = vmatprep.mubr.bf16.mxu0 %v6489_v38  ;;  %7447 = vmatpush3.bf16.msra.mxu0 %v7916_v58  ;;  %v736_v38 = vrot.slane %v735_v28, 4  ;;  %v3505_v50 = vsel %vm8189_vm5, %v3503_v40, %v3504_v35  ;;  %v758_v58 = vrot.slane %v756_v45, 5  ;;  %v770_v19 = vrot.slane %v769_v8, 4  ;;  %v667_v40 = vld [vmem:[%s8066_s14 + $0x38] sm:$0x1] }
  0x5b   : > { %7448 = vmatprep.subr.bf16.mxu0 %v7918_v11  ;;  %v6492_v56 = vcombine.low %v3502_v39, %v3505_v50  ;;  %v796_v26 = vshll.u32 %v664_v1, 16  ;;  %v666_v39 = vld [vmem:[%s8066_s14 + $0x34] sm:$0xf]  ;;  %v3518_v42 = vrot.slane %v6438_v27, 5  ;;  %v6439_v45 = vld [vmem:[%s8066_s14 + $0x9c] sm:$0xe] }
  0x5c   : > { %v741_v49 = vsel %vm8089_vm2, %v736_v38, %v740_v23  ;;  %v759_v3 = vor.u32 %v758_v58, %v755_v57  ;;  %v775_v28 = vsel %vm8089_vm2, %v770_v19, %v774_v0  ;;  %v810_v50 = vshll.u32 %v666_v39, 16 }
  0x5d   : > { %v3522_v8 = vrot.slane %v6440_v51, 5 }
  0x5e   : > { %7195 = vmatmul.mubr.bf16.gmra.mrb[28].mxu1 %v7912_v34  ;;  %v745_v34 = vor.u32 %v744_v24, %v740_v23  ;;  %7449 = vmatpush3.bf16.msra.mxu0 %v7918_v11  ;;  %v786_v11 = vshll.u32 %v663_v60, 16  ;;  %v760_v13 = vrot.slane %v759_v3, 4  ;;  %v3512_v24 = vsel %vm8189_vm5, %v3510_v15, %v3511_v7  ;;  %v670_v3 = vld [vmem:[%s8066_s14 + $0x44] sm:$0x1] }
  0x5f   : > { %7450 = vmatprep.subr.bf16.mxu0 %v7920_v21  ;;  %7214 = vmatprep.mubr.bf16.mxu1 %v6163_v32  ;;  %v6493_v29 = vcombine.low %v3509_v14, %v3512_v24  ;;  %v665_v32 = vld [vmem:[%s8066_s14 + $0x30] sm:$0xf]  ;;  %v820_v60 = vshll.u32 %v667_v40, 16  ;;  %v6463_v7 = vrot.slane %v6439_v45, 9  ;;  %v6442_v14 = vld [vmem:[%s8066_s14 + $0xa8] sm:$0xe] }
  0x60   : > { %v746_v43 = vrot.slane %v745_v34, 4  ;;  %v788_v22 = vrot.slane %v786_v11, 5  ;;  %v765_v23 = vsel %vm8089_vm2, %v760_v13, %v764_v62  ;;  %v7921_v34 = vld [vmem:[%s9183_s1 + $0x98] sm:$0xff]   ;;  %v804_v44 = vshll.u32 %v665_v32, 16  ;;  %v669_v62 = vld [vmem:[%s8066_s14 + $0x40] sm:$0xf] }
  0x61   : > { %7419 = vmatmul.mubr.bf16.gmra.mrb[12].mxu0 %v6490_v59  ;;  %v662_v59 = vld [vmem:[%s8066_s14 + $0x24] sm:$0xf]  ;;  %v6165_v35 = vcombine.low %v765_v23, %v775_v28  ;;  %v822_v6 = vrot.slane %v820_v60, 5  ;;  %v3523_v15 = vsel %vm8189_vm5, %v6463_v7, %v3522_v8  ;;  %v838_v19 = vshrl.u32 %v669_v62, 16  ;;  %v6444_v24 = vld [vmem:[%s8066_s14 + $0xb0] sm:$0x1] }
  0x62   : > { %7422 = vmatprep.mubr.bf16.mxu0 %v6491_v17  ;;  %v751_v55 = vsel %vm8089_vm2, %v746_v43, %v750_v25  ;;  %7451 = vmatpush3.bf16.msra.mxu0 %v7920_v21  ;;  %v777_v9 = vshrl.u32 %v662_v59, 16  ;;  %v780_v10 = vshll.u32 %v662_v59, 16  ;;  %v6436_v17 = vld [vmem:[%s8066_s14 + $0x90] sm:$0xe]  ;;  %v792_v25 = vrot.slane %v790_v16, 4  ;;  %v7936_v7 = vld [vmem:[%s9183_s1 + $0xb8] sm:$0xff]  }
  0x63   : > { %v6164_v61 = vcombine.low %v741_v49, %v751_v55  ;;  %7452 = vmatprep.subr.bf16.mxu0 %v7922_v37  ;;  %v6462_v31 = vrot.slane %v6436_v17, 9  ;;  %v801_v43 = vshrl.u32 %v665_v32, 16  ;;  %v806_v54 = vrot.slane %v804_v44, 5 }
  0x64   : > { %v779_v20 = vrot.slane %v777_v9, 4  ;;  %v782_v21 = vrot.slane %v780_v10, 5  ;;  %v793_v36 = vor.u32 %v792_v25, %v788_v22  ;;  %v814_v55 = vshrl.u32 %v666_v39, 16  ;;  %v7928_v25 = vld [vmem:[%s9183_s1 + $0xa8] sm:$0xff]  }
  0x65   : > { %v803_v53 = vrot.slane %v801_v43, 4  ;;  %v812_v59 = vrot.slane %v810_v50, 5  ;;  %v3524_v16 = vrot.slane %v3522_v8, 4  ;;  %v834_v17 = vshll.u32 %v669_v62, 16 }
  0x66   : > { %7215 = vmatmul.mubr.bf16.vlgmr.msra.gmra.mrb[0].mxu1 %v6164_v61  ;;  %7453 = vmatpush3.bf16.msra.mxu0 %v7922_v37  ;;  %v783_v30 = vor.u32 %v782_v21, %v779_v20  ;;  %v798_v37 = vrot.slane %v796_v26, 5  ;;  %v794_v46 = vrot.slane %v793_v36, 4  ;;  %v668_v61 = vld [vmem:[%s8066_s14 + $0x3c] sm:$0xf]  ;;  %v6443_v20 = vld [vmem:[%s8066_s14 + $0xac] sm:$0xf] }
  0x67   : > { %7247 = vmatpush3.bf16.msra.mxu1 %v8290_v47  ;;  %v6437_v47 = vld [vmem:[%s8066_s14 + $0x94] sm:$0xf]  ;;  %7486 = vmatprep.subr.bf16.mxu0 %v8354_v18  ;;  %v807_v1 = vor.u32 %v806_v54, %v803_v53  ;;  %v828_v13 = vshll.u32 %v668_v61, 16  ;;  %v836_v27 = vrot.slane %v834_v17, 5  ;;  %v840_v28 = vrot.slane %v838_v19, 4 }
  0x68   : > { %7248 = vmatprep.subr.bf16.mxu1 %v7917_v2  ;;  %v3515_v38 = vrot.slane %v6437_v47, 5  ;;  %v784_v41 = vrot.slane %v783_v30, 4  ;;  %7218 = vmatprep.mubr.bf16.mxu1 %v6165_v35  ;;  %v799_v57 = vsel %vm8089_vm2, %v794_v46, %v798_v37  ;;  %v671_v35 = vld [vmem:[%s8066_s14 + $0x48] sm:$0xf]  ;;  %v7932_v36 = vld [vmem:[%s9183_s1 + $0xb0] sm:$0xff]   ;;  %v3529_v40 = vrot.slane %v6443_v20, 5 }
  0x69   : > { %7423 = vmatmul.mubr.bf16.gmra.mrb[16].mxu0 %v6492_v56  ;;  %v6441_v56 = vld [vmem:[%s8066_s14 + $0xa4] sm:$0x1]  ;;  %v808_v10 = vrot.slane %v807_v1, 4  ;;  %v830_v23 = vrot.slane %v828_v13, 5  ;;  %v3532_v44 = vrot.slane %v6444_v24, 5  ;;  %v849_v45 = vshrl.u32 %v671_v35, 16 }
  0x6a   : > { %7426 = vmatprep.mubr.bf16.mxu0 %v6493_v29  ;;  %v3516_v48 = vsel %vm8189_vm5, %v6462_v31, %v3515_v38  ;;  %v3517_v49 = vrot.slane %v3515_v38, 4  ;;  %v789_v52 = vsel %vm8089_vm2, %v784_v41, %v788_v22  ;;  %v3525_v9 = vrot.slane %v6441_v56, 5  ;;  %v672_v41 = vld [vmem:[%s8066_s14 + $0x4c] sm:$0xf]  ;;  %v6446_v53 = vld [vmem:[%s8066_s14 + $0xb8] sm:$0xf] }
  0x6b   : > { %7249 = vmatpush3.bf16.msra.mxu1 %v7917_v2  ;;  %v6166_v63 = vcombine.low %v789_v52, %v799_v57  ;;  %v816_v2 = vrot.slane %v814_v55, 4  ;;  %v813_v21 = vsel %vm8089_vm2, %v808_v10, %v812_v59  ;;  %v844_v29 = vshll.u32 %v670_v3, 16 }
  0x6c   : > { %7250 = vmatprep.subr.bf16.mxu1 %v7919_v12  ;;  %v3519_v58 = vsel %vm8189_vm5, %v3517_v49, %v3518_v42  ;;  %v3526_v26 = vsel %vm8189_vm5, %v3524_v16, %v3525_v9  ;;  %v841_v38 = vor.u32 %v840_v28, %v836_v27  ;;  %v673_v42 = vld [vmem:[%s8066_s14 + $0x50] sm:$0x1]  ;;  %v852_v46 = vshll.u32 %v671_v35, 16  ;;  %v6448_v16 = vld [vmem:[%s8066_s14 + $0xc0] sm:$0xe] }
  0x6d   : > { %v6494_v0 = vcombine.low %v3516_v48, %v3519_v58  ;;  %v817_v11 = vor.u32 %v816_v2, %v812_v59  ;;  %v6495_v31 = vcombine.low %v3523_v15, %v3526_v26  ;;  %v846_v39 = vrot.slane %v844_v29, 5  ;;  %v6445_v48 = vld [vmem:[%s8066_s14 + $0xb4] sm:$0xe]  ;;  %v6447_v58 = vld [vmem:[%s8066_s14 + $0xbc] sm:$0x1] }
  0x6e   : > { %7219 = vmatmul.mubr.bf16.gmra.mrb[4].mxu1 %v6166_v63  ;;  %v842_v49 = vrot.slane %v841_v38, 4  ;;  %v3531_v51 = vrot.slane %v3529_v40, 4  ;;  %v858_v52 = vshll.u32 %v672_v41, 16  ;;  %v851_v55 = vrot.slane %v849_v45, 4  ;;  %v674_v63 = vld [vmem:[%s8066_s14 + $0x54] sm:$0xf] }
  0x6f   : > { %7251 = vmatpush3.bf16.msra.mxu1 %v7919_v12  ;;  %v825_v12 = vshrl.u32 %v668_v61, 16  ;;  %v818_v22 = vrot.slane %v817_v11, 4  ;;  %v854_v56 = vrot.slane %v852_v46, 5  ;;  %v862_v57 = vshrl.u32 %v672_v41, 16  ;;  %v6450_v26 = vld [vmem:[%s8066_s14 + $0xc8] sm:$0x1] }
  0x70   : > { %7252 = vmatprep.subr.bf16.mxu1 %v7921_v34  ;;  %v847_v59 = vsel %vm8089_vm2, %v842_v49, %v846_v39  ;;  %v3533_v60 = vsel %vm8189_vm5, %v3531_v51, %v3532_v44  ;;  %v860_v61 = vrot.slane %v858_v52, 5  ;;  %v868_v62 = vshll.u32 %v673_v42, 16  ;;  %v678_v42 = vld [vmem:[%s8066_s14 + $0x64] sm:$0xf] }
  0x71   : > { %7427 = vmatmul.mubr.bf16.gmra.mrb[20].mxu0 %v6494_v0  ;;  %v827_v47 = vrot.slane %v825_v12, 4  ;;  %v823_v30 = vsel %vm8089_vm2, %v818_v22, %v822_v6  ;;  %v675_v0 = vld [vmem:[%s8066_s14 + $0x58] sm:$0xf]  ;;  %v855_v3 = vor.u32 %v854_v56, %v851_v55  ;;  %v676_v6 = vld [vmem:[%s8066_s14 + $0x5c] sm:$0x1]  ;;  %v6465_v9 = vrot.slane %v6445_v48, 9 }
  0x72   : > { %v6167_v37 = vcombine.low %v813_v21, %v823_v30  ;;  %7430 = vmatprep.mubr.bf16.mxu0 %v6495_v31  ;;  %v870_v8 = vrot.slane %v868_v62, 5  ;;  %v3536_v10 = vrot.slane %v6446_v53, 5  ;;  %v3539_v11 = vrot.slane %v6447_v58, 5  ;;  %v6449_v22 = vld [vmem:[%s8066_s14 + $0xc4] sm:$0xf] }
  0x73   : > { %7253 = vmatpush3.bf16.msra.mxu1 %v7921_v34  ;;  %v831_v32 = vor.u32 %v830_v23, %v827_v47  ;;  %v6464_v34 = vrot.slane %v6442_v14, 9  ;;  %v856_v12 = vrot.slane %v855_v3, 4  ;;  %v873_v14 = vshrl.u32 %v674_v63, 16  ;;  %v680_v58 = vld [vmem:[%s8066_s14 + $0x6c] sm:$0xf] }
  0x74   : > { %7254 = vmatprep.subr.bf16.mxu1 %v7924_v5  ;;  %7222 = vmatprep.mubr.bf16.mxu1 %v6167_v37  ;;  %v876_v15 = vshll.u32 %v674_v63, 16  ;;  %v3537_v17 = vsel %vm8189_vm5, %v6465_v9, %v3536_v10  ;;  %v3538_v19 = vrot.slane %v3536_v10, 4  ;;  %v882_v20 = vshll.u32 %v675_v0, 16  ;;  %v677_v37 = vld [vmem:[%s8066_s14 + $0x60] sm:$0xf] }
  0x75   : > { %v832_v43 = vrot.slane %v831_v32, 4  ;;  %v3530_v50 = vsel %vm8189_vm5, %v6464_v34, %v3529_v40  ;;  %v886_v21 = vshrl.u32 %v675_v0, 16  ;;  %v861_v47 = vsel %vm8089_vm2, %v856_v12, %v860_v61  ;;  %v681_v63 = vld [vmem:[%s8066_s14 + $0x70] sm:$0xf]  ;;  %v682_v0 = vld [vmem:[%s8066_s14 + $0x74] sm:$0x1] }
  0x76   : > { %v6496_v2 = vcombine.low %v3530_v50, %v3533_v60  ;;  %v875_v24 = vrot.slane %v873_v14, 4  ;;  %v3540_v28 = vsel %vm8189_vm5, %v3538_v19, %v3539_v11  ;;  %v884_v29 = vrot.slane %v882_v20, 5 }
  0x77   : > { %7255 = vmatpush3.bf16.msra.mxu1 %v7924_v5  ;;  %v837_v54 = vsel %vm8089_vm2, %v832_v43, %v836_v27  ;;  %v864_v5 = vrot.slane %v862_v57, 4  ;;  %v8435_v27 = vld [vmem:[%s9183_s1 + $0xc0] sm:$0xff]   ;;  %v888_v30 = vrot.slane %v886_v21, 4  ;;  %v892_v31 = vshll.u32 %v676_v6, 16  ;;  %v679_v43 = vld [vmem:[%s8066_s14 + $0x68] sm:$0x1] }
  0x78   : > { %7256 = vmatprep.subr.bf16.mxu1 %v7928_v25  ;;  %v6168_v1 = vcombine.low %v837_v54, %v847_v59  ;;  %v6497_v34 = vcombine.low %v3537_v17, %v3540_v28  ;;  %v3543_v41 = vrot.slane %v6449_v22, 5  ;;  %v3546_v45 = vrot.slane %v6450_v26, 5  ;;  %v7923_v57 = vld [vmem:[%s8066_s14 + $0x18] sm:$0xff]   ;;  %v7925_v22 = vld [vmem:[%s8066_s14 + $0x24] sm:$0xff]   ;;  %v7927_v26 = vld [vmem:[%s8066_s14 + $0x30] sm:$0xff]  }
  0x79   : > { %7431 = vmatmul.mubr.bf16.gmra.mrb[24].mxu0 %v6496_v2  ;;  %v865_v13 = vor.u32 %v864_v5, %v860_v61  ;;  %v889_v39 = vor.u32 %v888_v30, %v884_v29  ;;  %v894_v40 = vrot.slane %v892_v31, 5  ;;  %v897_v46 = vshrl.u32 %v677_v37, 16 }
  0x7a   : > { %7223 = vmatmul.mubr.bf16.gmra.mrb[8].mxu1 %v6168_v1  ;;  %7434 = vmatprep.mubr.bf16.mxu0 %v6497_v34  ;;  %v900_v48 = vshll.u32 %v677_v37, 16  ;;  %v3545_v51 = vrot.slane %v3543_v41, 4  ;;  %v906_v52 = vshll.u32 %v678_v42, 16  ;;  %v910_v56 = vshrl.u32 %v678_v42, 16  ;;  %v686_v37 = vld [vmem:[%s8066_s14 + $0x84] sm:$0xf] }
  0x7b   : > { %7257 = vmatpush3.bf16.msra.mxu1 %v7928_v25  ;;  %v866_v23 = vrot.slane %v865_v13, 4  ;;  %v878_v25 = vrot.slane %v876_v15, 5  ;;  %v890_v49 = vrot.slane %v889_v39, 4  ;;  %v899_v54 = vrot.slane %v897_v46, 4 }
  0x7c   : > { %7258 = vmatprep.subr.bf16.mxu1 %v7932_v36  ;;  %v902_v55 = vrot.slane %v900_v48, 5  ;;  %v3547_v60 = vsel %vm8189_vm5, %v3545_v51, %v3546_v45  ;;  %v908_v61 = vrot.slane %v906_v52, 5  ;;  %v916_v62 = vshll.u32 %v679_v43, 16  ;;  %v687_v43 = vld [vmem:[%s8066_s14 + $0x88] sm:$0xf] }
  0x7d   : > { %v871_v32 = vsel %vm8089_vm2, %v866_v23, %v870_v8  ;;  %v879_v35 = vor.u32 %v878_v25, %v875_v24  ;;  %v895_v59 = vsel %vm8089_vm2, %v890_v49, %v894_v40  ;;  %v912_v5 = vrot.slane %v910_v56, 4  ;;  %v683_v23 = vld [vmem:[%s8066_s14 + $0x78] sm:$0xf]  ;;  %v684_v24 = vld [vmem:[%s8066_s14 + $0x7c] sm:$0xf] }
  0x7e   : > { %v6169_v38 = vcombine.low %v861_v47, %v871_v32  ;;  %v903_v3 = vor.u32 %v902_v55, %v899_v54  ;;  %v918_v6 = vrot.slane %v916_v62, 5  ;;  %v924_v8 = vshll.u32 %v680_v58, 16  ;;  %v685_v25 = vld [vmem:[%s8066_s14 + $0x80] sm:$0x1]  ;;  %v688_v48 = vld [vmem:[%s8066_s14 + $0x8c] sm:$0x1] }
  0x7f   : > { %7259 = vmatpush3.bf16.msra.mxu1 %v7932_v36  ;;  %v6466_v36 = vrot.slane %v6448_v16, 9  ;;  %v880_v44 = vrot.slane %v879_v35, 4  ;;  %v930_v9 = vshll.u32 %v681_v63, 16  ;;  %v913_v11 = vor.u32 %v912_v5, %v908_v61  ;;  %v7934_v54 = vld [vmem:[%s9183_s1 + $0x1d0] sm:$0xff]  }
  0x80   : > { %7260 = vmatprep.subr.bf16.mxu1 %v7936_v7  ;;  %7226 = vmatprep.mubr.bf16.mxu1 %v6169_v38  ;;  %v904_v10 = vrot.slane %v903_v3, 4  ;;  %v934_v12 = vshrl.u32 %v681_v63, 16  ;;  %v940_v13 = vshll.u32 %v682_v0, 16  ;;  %v926_v15 = vrot.slane %v924_v8, 5  ;;  %v7930_v38 = vld [vmem:[%s9183_s1 + $0x1c8] sm:$0xff]   ;;  %v7929_v63 = vld [vmem:[%s8066_s14 + $0x3c] sm:$0xff]  }
  0x81   : > { %v3544_v50 = vsel %vm8189_vm5, %v6466_v36, %v3543_v41  ;;  %v885_v53 = vsel %vm8089_vm2, %v880_v44, %v884_v29  ;;  %v932_v16 = vrot.slane %v930_v9, 5  ;;  %v914_v19 = vrot.slane %v913_v11, 4  ;;  %v7931_v3 = vld [vmem:[%s8066_s14 + $0x48] sm:$0xff]   ;;  %v690_v8 = vld [vmem:[%s8066_s14 + $0x94] sm:$0xf] }
  0x82   : > { %v6170_v1 = vcombine.low %v885_v53, %v895_v59  ;;  %v6498_v2 = vcombine.low %v3544_v50, %v3547_v60  ;;  %v909_v17 = vsel %vm8089_vm2, %v904_v10, %v908_v61  ;;  %v936_v20 = vrot.slane %v934_v12, 4  ;;  %v691_v9 = vld [vmem:[%s8066_s14 + $0x98] sm:$0x1] }
  0x83   : > { %7261 = vmatpush3.bf16.msra.mxu1 %v7936_v7  ;;  %v921_v7 = vshrl.u32 %v680_v58, 16  ;;  %v942_v21 = vrot.slane %v940_v13, 5  ;;  %v919_v28 = vsel %vm8089_vm2, %v914_v19, %v918_v6  ;;  %v945_v30 = vshrl.u32 %v683_v23, 16 }
  0x84   : > { %7294 = vmatprep.subr.bf16.mxu1 %v8435_v27  ;;  %7227 = vmatmul.mubr.bf16.gmra.mrb[12].mxu1 %v6170_v1  ;;  %v937_v29 = vor.u32 %v936_v20, %v932_v16  ;;  %v948_v31 = vshll.u32 %v683_v23, 16  ;;  %v6171_v32 = vcombine.low %v909_v17, %v919_v28  ;;  %v954_v35 = vshll.u32 %v684_v24, 16  ;;  %v692_v20 = vld [vmem:[%s8066_s14 + $0x9c] sm:$0xf] }
  0x85   : > { %7435 = vmatmul.mubr.bf16.gmra.mrb[28].mxu0 %v6498_v2  ;;  %v923_v14 = vrot.slane %v921_v7, 4  ;;  %v958_v36 = vshrl.u32 %v684_v24, 16  ;;  %v947_v40 = vrot.slane %v945_v30, 4  ;;  %v964_v42 = vshll.u32 %v685_v25, 16  ;;  %v689_v2 = vld [vmem:[%s8066_s14 + $0x90] sm:$0xf] }
  0x86   : > { %7454 = vmatprep.mubr.bf16.mxu0 %v7923_v57  ;;  %v938_v39 = vrot.slane %v937_v29, 4  ;;  %v950_v41 = vrot.slane %v948_v31, 5  ;;  %7230 = vmatprep.mubr.bf16.mxu1 %v6171_v32  ;;  %v956_v45 = vrot.slane %v954_v35, 5  ;;  %v969_v49 = vshrl.u32 %v686_v37, 16  ;;  %v693_v24 = vld [vmem:[%s8066_s14 + $0xa0] sm:$0xf] }
  0x87   : > { %v927_v47 = vor.u32 %v926_v15, %v923_v14  ;;  %v960_v46 = vrot.slane %v958_v36, 4  ;;  %v966_v52 = vrot.slane %v964_v42, 5  ;;  %v972_v53 = vshll.u32 %v686_v37, 16  ;;  %v7938_v14 = vld [vmem:[%s9183_s1 + $0x1d8] sm:$0xff]   ;;  %v694_v29 = vld [vmem:[%s8066_s14 + $0xa4] sm:$0x1] }
  0x88   : > { %v943_v50 = vsel %vm8089_vm2, %v938_v39, %v942_v21  ;;  %v951_v51 = vor.u32 %v950_v41, %v947_v40  ;;  %v971_v57 = vrot.slane %v969_v49, 4  ;;  %v978_v58 = vshll.u32 %v687_v43, 16  ;;  %v7942_v36 = vld [vmem:[%s9183_s1 + $0x1e0] sm:$0xff]  }
  0x89   : > { %v928_v34 = vrot.slane %v927_v47, 4  ;;  %v961_v56 = vor.u32 %v960_v46, %v956_v45  ;;  %v974_v60 = vrot.slane %v972_v53, 5  ;;  %v982_v61 = vshrl.u32 %v687_v43, 16  ;;  %v695_v53 = vld [vmem:[%s8066_s14 + $0xa8] sm:$0xf] }
  0x8a   : > { %v952_v59 = vrot.slane %v951_v51, 4  ;;  %v988_v62 = vshll.u32 %v688_v48, 16  ;;  %v980_v1 = vrot.slane %v978_v58, 5  ;;  %v993_v11 = vshrl.u32 %v689_v2, 16  ;;  %v697_v58 = vld [vmem:[%s8066_s14 + $0xb0] sm:$0x1] }
  0x8b   : > { %v933_v44 = vsel %vm8089_vm2, %v928_v34, %v932_v16  ;;  %v962_v0 = vrot.slane %v961_v56, 4  ;;  %v975_v5 = vor.u32 %v974_v60, %v971_v57  ;;  %v984_v6 = vrot.slane %v982_v61, 4 }
  0x8c   : > { %v6172_v55 = vcombine.low %v933_v44, %v943_v50  ;;  %v990_v7 = vrot.slane %v988_v62, 5  ;;  %v996_v12 = vshll.u32 %v689_v2, 16  ;;  %v1002_v13 = vshll.u32 %v690_v8, 16  ;;  %v7935_v50 = vld [vmem:[%s8066_s14 + $0x60] sm:$0xff]  }
  0x8d   : > { %7455 = vmatmul.mubr.bf16.vlgmr.msra.gmra.mrb[0].mxu0 %v7925_v22  ;;  %v967_v10 = vsel %vm8089_vm2, %v962_v0, %v966_v52  ;;  %v976_v16 = vrot.slane %v975_v5, 4  ;;  %v985_v17 = vor.u32 %v984_v6, %v980_v1  ;;  %v1006_v19 = vshrl.u32 %v690_v8, 16  ;;  %v7946_v0 = vld [vmem:[%s9183_s1 + $0x1e8] sm:$0xff]   ;;  %v698_v5 = vld [vmem:[%s8066_s14 + $0xb4] sm:$0xf] }
  0x8e   : > { %7487 = vmatpush3.bf16.msra.mxu0 %v8354_v18  ;;  %7458 = vmatprep.mubr.bf16.mxu0 %v7927_v26  ;;  %v957_v18 = vsel %vm8089_vm2, %v952_v59, %v956_v45  ;;  %v995_v21 = vrot.slane %v993_v11, 4  ;;  %v998_v22 = vrot.slane %v996_v12, 5  ;;  %v1004_v47 = vrot.slane %v1002_v13, 5  ;;  %v7933_v45 = vld [vmem:[%s8066_s14 + $0x54] sm:$0xff]  }
  0x8f   : > { %7488 = vmatprep.subr.bf16.mxu0 %v7930_v38  ;;  %7231 = vmatmul.mubr.bf16.gmra.mrb[16].mxu1 %v6172_v55  ;;  %v6173_v15 = vcombine.low %v957_v18, %v967_v10  ;;  %v1012_v23 = vshll.u32 %v691_v9, 16  ;;  %v981_v25 = vsel %vm8089_vm2, %v976_v16, %v980_v1  ;;  %v986_v26 = vrot.slane %v985_v17, 4  ;;  %v699_v9 = vld [vmem:[%s8066_s14 + $0xb8] sm:$0xf]  ;;  %v700_v10 = vld [vmem:[%s8066_s14 + $0xbc] sm:$0x1] }
  0x90   : > { %v1008_v28 = vrot.slane %v1006_v19, 4  ;;  %v1017_v30 = vshrl.u32 %v692_v20, 16  ;;  %v999_v31 = vor.u32 %v998_v22, %v995_v21  ;;  %v1020_v34 = vshll.u32 %v692_v20, 16 }
  0x91   : > { %7234 = vmatprep.mubr.bf16.mxu1 %v6173_v15  ;;  %v1014_v32 = vrot.slane %v1012_v23, 5  ;;  %v1026_v35 = vshll.u32 %v693_v24, 16  ;;  %v991_v37 = vsel %vm8089_vm2, %v986_v26, %v990_v7  ;;  %v1030_v40 = vshrl.u32 %v693_v24, 16  ;;  %v7950_v15 = vld [vmem:[%s9183_s1 + $0x1f0] sm:$0xff]  }
  0x92   : > { %7489 = vmatpush3.bf16.msra.mxu0 %v7930_v38  ;;  %v1009_v38 = vor.u32 %v1008_v28, %v1004_v47  ;;  %v1019_v39 = vrot.slane %v1017_v30, 4  ;;  %v6174_v41 = vcombine.low %v981_v25, %v991_v37  ;;  %v1000_v42 = vrot.slane %v999_v31, 4  ;;  %v7937_v24 = vld [vmem:[%s8066_s14 + $0x6c] sm:$0xff]   ;;  %v1474_v37 = vld [vmem:[%s8066_s14] sm:$0xe] }
  0x93   : > { %7490 = vmatprep.subr.bf16.mxu0 %v7934_v54  ;;  %v1022_v43 = vrot.slane %v1020_v34, 5  ;;  %v1028_v44 = vrot.slane %v1026_v35, 5  ;;  %v1032_v48 = vrot.slane %v1030_v40, 4  ;;  %v1036_v49 = vshll.u32 %v694_v29, 16  ;;  %v7939_v29 = vld [vmem:[%s8066_s14 + $0x78] sm:$0xff]  }
  0x94   : > { %v1010_v46 = vrot.slane %v1009_v38, 4  ;;  %v1005_v51 = vsel %vm8089_vm2, %v1000_v42, %v1004_v47  ;;  %v1041_v59 = vshrl.u32 %v695_v53, 16  ;;  %v1044_v62 = vshll.u32 %v695_v53, 16  ;;  %v7954_v34 = vld [vmem:[%s9183_s1 + $0x1f8] sm:$0xff]   ;;  %v1475_v38 = vld [vmem:[%s8066_s14 + $0x4] sm:$0xf] }
  0x95   : > { %7459 = vmatmul.mubr.bf16.gmra.mrb[4].mxu0 %v7929_v63  ;;  %v1023_v52 = vor.u32 %v1022_v43, %v1019_v39  ;;  %v1033_v56 = vor.u32 %v1032_v48, %v1028_v44  ;;  %v1038_v57 = vrot.slane %v1036_v49, 5  ;;  %v1060_v18 = vshll.u32 %v697_v58, 16  ;;  %v1476_v39 = vld [vmem:[%s8066_s14 + $0x8] sm:$0x1]  ;;  %v1477_v48 = vld [vmem:[%s8066_s14 + $0xc] sm:$0xe] }
  0x96   : > { %7462 = vmatprep.mubr.bf16.mxu0 %v7931_v3  ;;  %7491 = vmatpush3.bf16.msra.mxu0 %v7934_v54  ;;  %v696_v54 = vld [vmem:[%s8066_s14 + $0xac] sm:$0xf]  ;;  %v1015_v55 = vsel %vm8089_vm2, %v1010_v46, %v1014_v32  ;;  %v1043_v2 = vrot.slane %v1041_v59, 4  ;;  %v1046_v7 = vrot.slane %v1044_v62, 5  ;;  %v1068_v19 = vshll.u32 %v698_v5, 16 }
  0x97   : > { %7492 = vmatprep.subr.bf16.mxu0 %v7938_v14  ;;  %7235 = vmatmul.mubr.bf16.gmra.mrb[20].mxu1 %v6174_v41  ;;  %v6175_v60 = vcombine.low %v1005_v51, %v1015_v55  ;;  %v1024_v61 = vrot.slane %v1023_v52, 4  ;;  %v1050_v63 = vshll.u32 %v696_v54, 16  ;;  %v1034_v1 = vrot.slane %v1033_v56, 4  ;;  %v1478_v49 = vld [vmem:[%s8066_s14 + $0x10] sm:$0xf]  ;;  %v7941_v55 = vld [vmem:[%s8066_s14 + $0x84] sm:$0xff]  }
  0x98   : > { %v1054_v3 = vshrl.u32 %v696_v54, 16  ;;  %v1062_v13 = vrot.slane %v1060_v18, 5  ;;  %v1047_v17 = vor.u32 %v1046_v7, %v1043_v2  ;;  %v1074_v20 = vshll.u32 %v699_v9, 16  ;;  %v1479_v53 = vld [vmem:[%s8066_s14 + $0x14] sm:$0x1]  ;;  %v8545_v56 = vld [vmem:[%s9183_s1 + $0x200] sm:$0xff]  }
  0x99   : > { %7238 = vmatprep.mubr.bf16.mxu1 %v6175_v60  ;;  %v1029_v6 = vsel %vm8089_vm2, %v1024_v61, %v1028_v44  ;;  %v1052_v8 = vrot.slane %v1050_v63, 5  ;;  %v1039_v11 = vsel %vm8089_vm2, %v1034_v1, %v1038_v57  ;;  %v1078_v47 = vshrl.u32 %v699_v9, 16  ;;  %v1480_v1 = vld [vmem:[%s8066_s14 + $0x18] sm:$0xe]  ;;  %v7943_v2 = vld [vmem:[%s8066_s14 + $0x90] sm:$0xff]  }
  0x9a   : > { %7493 = vmatpush3.bf16.msra.mxu0 %v7938_v14  ;;  %v1056_v12 = vrot.slane %v1054_v3, 4  ;;  %v1065_v14 = vshrl.u32 %v698_v5, 16  ;;  %v6176_v16 = vcombine.low %v1029_v6, %v1039_v11  ;;  %v1084_v23 = vshll.u32 %v700_v10, 16  ;;  %v1481_v3 = vld [vmem:[%s8066_s14 + $0x1c] sm:$0xf] }
  0x9b   : > { %7494 = vmatprep.subr.bf16.mxu0 %v7942_v36  ;;  %v1048_v25 = vrot.slane %v1047_v17, 4  ;;  %v1070_v26 = vrot.slane %v1068_v19, 5  ;;  %v1076_v28 = vrot.slane %v1074_v20, 5  ;;  %v1080_v31 = vrot.slane %v1078_v47, 4  ;;  %v1482_v18 = vld [vmem:[%s8066_s14 + $0x20] sm:$0x1] }
  0x9c   : > { %v1057_v21 = vor.u32 %v1056_v12, %v1052_v8  ;;  %v1067_v22 = vrot.slane %v1065_v14, 4  ;;  %v1086_v32 = vrot.slane %v1084_v23, 5  ;;  %v6187_v42 = vrot.slane %v1474_v37, 9  ;;  %v1483_v10 = vld [vmem:[%s8066_s14 + $0x24] sm:$0xe]  ;;  %v7945_v47 = vld [vmem:[%s8066_s14 + $0x9c] sm:$0xff]  }
  0x9d   : > { %7463 = vmatmul.mubr.bf16.gmra.mrb[8].mxu0 %v7933_v45  ;;  %v1053_v35 = vsel %vm8089_vm2, %v1048_v25, %v1052_v8  ;;  %v1081_v41 = vor.u32 %v1080_v31, %v1076_v28  ;;  %v1575_v43 = vrot.slane %v1475_v38, 5  ;;  %v1578_v46 = vrot.slane %v1476_v39, 5  ;;  %v1484_v11 = vld [vmem:[%s8066_s14 + $0x28] sm:$0xf]  ;;  %v1485_v12 = vld [vmem:[%s8066_s14 + $0x2c] sm:$0x1] }
  0x9e   : > { %7466 = vmatprep.mubr.bf16.mxu0 %v7935_v50  ;;  %7495 = vmatpush3.bf16.msra.mxu0 %v7942_v36  ;;  %v1058_v30 = vrot.slane %v1057_v21, 4  ;;  %v1071_v36 = vor.u32 %v1070_v26, %v1067_v22  ;;  %v6188_v54 = vrot.slane %v1477_v48, 9  ;;  %v1582_v58 = vrot.slane %v1478_v49, 5  ;;  %v7944_v22 = vld [vmem:[%s9183_s1 + $0xc8] sm:$0xff]   ;;  %v1487_v25 = vld [vmem:[%s8066_s14 + $0x34] sm:$0xf] }
  0x9f   : > { %7496 = vmatprep.subr.bf16.mxu0 %v7946_v0  ;;  %7239 = vmatmul.mubr.bf16.gmra.mrb[24].mxu1 %v6176_v16  ;;  %v1082_v50 = vrot.slane %v1081_v41, 4  ;;  %v1576_v51 = vsel %vm8189_vm5, %v6187_v42, %v1575_v43  ;;  %v1577_v52 = vrot.slane %v1575_v43, 4  ;;  %v1585_v59 = vrot.slane %v1479_v53, 5  ;;  %v1488_v26 = vld [vmem:[%s8066_s14 + $0x38] sm:$0x1]  ;;  %v7947_v31 = vld [vmem:[%s8066_s14 + $0xa8] sm:$0xff]  }
  0xa0   : > { %v1063_v40 = vsel %vm8089_vm2, %v1058_v30, %v1062_v13  ;;  %v1072_v45 = vrot.slane %v1071_v36, 4  ;;  %v6189_v5 = vrot.slane %v1480_v1, 9  ;;  %v1589_v6 = vrot.slane %v1481_v3, 5  ;;  %v1491_v36 = vld [vmem:[%s8066_s14 + $0x44] sm:$0x1]  ;;  %v7949_v48 = vld [vmem:[%s8066_s14 + $0xb4] sm:$0xff]  }
  0xa1   : > { %v6177_v44 = vcombine.low %v1053_v35, %v1063_v40  ;;  %v1087_v60 = vsel %vm8089_vm2, %v1082_v50, %v1086_v32  ;;  %v1579_v61 = vsel %vm8189_vm5, %v1577_v52, %v1578_v46  ;;  %v1592_v7 = vrot.slane %v1482_v18, 5  ;;  %v1489_v32 = vld [vmem:[%s8066_s14 + $0x3c] sm:$0xe]  ;;  %v1490_v35 = vld [vmem:[%s8066_s14 + $0x40] sm:$0xf]  ;;  %v7948_v40 = vld [vmem:[%s9183_s1 + $0xd0] sm:$0xff]  }
  0xa2   : > { %7497 = vmatpush3.bf16.msra.mxu0 %v7946_v0  ;;  %v1077_v57 = vsel %vm8089_vm2, %v1072_v45, %v1076_v28  ;;  %v6219_v63 = vcombine.low %v1576_v51, %v1579_v61  ;;  %v1584_v0 = vrot.slane %v1582_v58, 4  ;;  %v1583_v8 = vsel %vm8189_vm5, %v6188_v54, %v1582_v58  ;;  %v1493_v49 = vld [vmem:[%s8066_s14 + $0x4c] sm:$0xf]  ;;  %v1494_v50 = vld [vmem:[%s8066_s14 + $0x50] sm:$0x1]  ;;  %v7952_v52 = vld [vmem:[%s9183_s1 + $0xd8] sm:$0xff]  }
  0xa3   : > { %7498 = vmatprep.subr.bf16.mxu0 %v7950_v15  ;;  %7242 = vmatprep.mubr.bf16.mxu1 %v6177_v44  ;;  %v6178_v62 = vcombine.low %v1077_v57, %v1087_v60  ;;  %v1590_v13 = vsel %vm8189_vm5, %v6189_v5, %v1589_v6  ;;  %v1591_v14 = vrot.slane %v1589_v6, 4  ;;  %v6190_v16 = vrot.slane %v1483_v10, 9  ;;  %v1492_v44 = vld [vmem:[%s8066_s14 + $0x48] sm:$0xe]  ;;  %v1495_v57 = vld [vmem:[%s8066_s14 + $0x54] sm:$0xe] }
  0xa4   : > { %v1586_v9 = vsel %vm8189_vm5, %v1584_v0, %v1585_v59  ;;  %v1599_v21 = vrot.slane %v1485_v12, 5  ;;  %v1606_v30 = vrot.slane %v1488_v26, 5  ;;  %v1610_v39 = vrot.slane %v1490_v35, 5  ;;  %v1496_v58 = vld [vmem:[%s8066_s14 + $0x58] sm:$0xf]  ;;  %v7951_v61 = vld [vmem:[%s8066_s14 + $0xc0] sm:$0xff]  }
  0xa5   : > { %7467 = vmatmul.mubr.bf16.gmra.mrb[12].mxu0 %v7937_v24  ;;  %v6220_v17 = vcombine.low %v1583_v8, %v1586_v9  ;;  %v1593_v19 = vsel %vm8189_vm5, %v1591_v14, %v1592_v7  ;;  %v1486_v24 = vld [vmem:[%s8066_s14 + $0x30] sm:$0xe]  ;;  %v6192_v42 = vrot.slane %v1489_v32, 9  ;;  %v1613_v43 = vrot.slane %v1491_v36, 5  ;;  %v1497_v59 = vld [vmem:[%s8066_s14 + $0x5c] sm:$0x1] }
  0xa6   : > { %7470 = vmatprep.mubr.bf16.mxu0 %v7939_v29  ;;  %7499 = vmatpush3.bf16.msra.mxu0 %v7950_v15  ;;  %v1596_v15 = vrot.slane %v1484_v11, 5  ;;  %v6221_v23 = vcombine.low %v1590_v13, %v1593_v19  ;;  %v6191_v28 = vrot.slane %v1486_v24, 9  ;;  %v1603_v29 = vrot.slane %v1487_v25, 5  ;;  %v7955_v6 = vld [vmem:[%s9183_s1 + $0xe0] sm:$0xff]   ;;  %v1500_v11 = vld [vmem:[%s8066_s14 + $0x68] sm:$0x1] }
  0xa7   : > { %7500 = vmatprep.subr.bf16.mxu0 %v7954_v34  ;;  %7243 = vmatmul.mubr.bf16.gmra.mrb[28].mxu1 %v6178_v62  ;;  %v1612_v46 = vrot.slane %v1610_v39, 4  ;;  %v6193_v51 = vrot.slane %v1492_v44, 9  ;;  %v1617_v54 = vrot.slane %v1493_v49, 5  ;;  %v6194_v62 = vrot.slane %v1495_v57, 9  ;;  %v1498_v7 = vld [vmem:[%s8066_s14 + $0x60] sm:$0xe] }
  0xa8   : > { %7262 = vmatprep.mubr.bf16.mxu1 %v6219_v63  ;;  %v1598_v20 = vrot.slane %v1596_v15, 4  ;;  %v1597_v37 = vsel %vm8189_vm5, %v6190_v16, %v1596_v15  ;;  %v1624_v63 = vrot.slane %v1496_v58, 5  ;;  %v1611_v0 = vsel %vm8189_vm5, %v6192_v42, %v1610_v39  ;;  %v1499_v8 = vld [vmem:[%s8066_s14 + $0x64] sm:$0xf]  ;;  %v6579_v13 = vld [vmem:[%s8066_s14 + $0x18] sm:$0xf] }
  0xa9   : > { %v1619_v60 = vrot.slane %v1617_v54, 4  ;;  %v1614_v1 = vsel %vm8189_vm5, %v1612_v46, %v1613_v43  ;;  %v1618_v3 = vsel %vm8189_vm5, %v6193_v51, %v1617_v54  ;;  %v1631_v12 = vrot.slane %v1499_v8, 5  ;;  %v7953_v16 = vld [vmem:[%s8066_s14 + $0xcc] sm:$0xff]   ;;  %v6580_v19 = vld [vmem:[%s8066_s14 + $0x1c] sm:$0xf] }
  0xaa   : > { %7501 = vmatpush3.bf16.msra.mxu0 %v7954_v34  ;;  %v1605_v34 = vrot.slane %v1603_v29, 4  ;;  %v1600_v38 = vsel %vm8189_vm5, %v1598_v20, %v1599_v21  ;;  %v1626_v5 = vrot.slane %v1624_v63, 4  ;;  %v6224_v9 = vcombine.low %v1611_v0, %v1614_v1  ;;  %v6581_v20 = vld [vmem:[%s8066_s14 + $0x20] sm:$0x1]  ;;  %v1501_v26 = vld [vmem:[%s8066_s14 + $0x6c] sm:$0xe] }
  0xab   : > { %7534 = vmatprep.subr.bf16.mxu0 %v8545_v56  ;;  %v6222_v45 = vcombine.low %v1597_v37, %v1600_v38  ;;  %v8618_v10 = vsel %vm8189_vm5, %v6194_v62, %v1624_v63  ;;  %v4434_v21 = vshrl.u32 %v6579_v13, 16  ;;  %v4437_v24 = vshll.u32 %v6579_v13, 16  ;;  %v1503_v36 = vld [vmem:[%s8066_s14 + $0x74] sm:$0x1]  ;;  %v6582_v46 = vld [vmem:[%s8066_s14 + $0x24] sm:$0xf] }
  0xac   : > { %v1607_v41 = vsel %vm8189_vm5, %v1605_v34, %v1606_v30  ;;  %v4443_v25 = vshll.u32 %v6580_v19, 16  ;;  %v4453_v30 = vshll.u32 %v6581_v20, 16  ;;  %v6196_v32 = vrot.slane %v1501_v26, 9  ;;  %v6584_v51 = vld [vmem:[%s8066_s14 + $0x2c] sm:$0x1] }
  0xad   : > { %7471 = vmatmul.mubr.bf16.gmra.mrb[16].mxu0 %v7941_v55  ;;  %v1620_v55 = vrot.slane %v1494_v50, 5  ;;  %v4439_v34 = vrot.slane %v4437_v24, 5  ;;  %v6583_v50 = vld [vmem:[%s8066_s14 + $0x28] sm:$0xf]  ;;  %v1506_v8 = vld [vmem:[%s8066_s14 + $0x80] sm:$0x1] }
  0xae   : > { %7474 = vmatprep.mubr.bf16.mxu0 %v7943_v2  ;;  %v1627_v2 = vrot.slane %v1497_v59, 5  ;;  %v4445_v35 = vrot.slane %v4443_v25, 5  ;;  %v4455_v44 = vrot.slane %v4453_v30, 5  ;;  %v4467_v57 = vshll.u32 %v6583_v50, 16  ;;  %v6587_v20 = vld [vmem:[%s8066_s14 + $0x38] sm:$0x1] }
  0xaf   : > { %7263 = vmatmul.mubr.bf16.vlgmr.msra.gmra.mrb[0].mxu1 %v6220_v17  ;;  %v1621_v18 = vsel %vm8189_vm5, %v1619_v60, %v1620_v55  ;;  %v6195_v17 = vrot.slane %v1498_v7, 9  ;;  %v4471_v58 = vshrl.u32 %v6583_v50, 16  ;;  %v1505_v7 = vld [vmem:[%s8066_s14 + $0x7c] sm:$0xf]  ;;  %v1507_v26 = vld [vmem:[%s8066_s14 + $0x84] sm:$0xe] }
  0xb0   : > { %7295 = vmatpush3.bf16.msra.mxu1 %v8435_v27  ;;  %7266 = vmatprep.mubr.bf16.mxu1 %v6221_v23  ;;  %v1604_v27 = vsel %vm8189_vm5, %v6191_v28, %v1603_v29  ;;  %v6225_v14 = vcombine.low %v1618_v3, %v1621_v18  ;;  %v8624_v15 = vsel %vm8189_vm5, %v1626_v5, %v1627_v2  ;;  %v1634_v23 = vrot.slane %v1500_v11, 5  ;;  %v1504_v3 = vld [vmem:[%s8066_s14 + $0x78] sm:$0xe] }
  0xb1   : > { %7296 = vmatprep.subr.bf16.mxu1 %v7944_v22  ;;  %v6223_v53 = vcombine.low %v1604_v27, %v1607_v41  ;;  %v4436_v28 = vrot.slane %v4434_v21, 4  ;;  %v4447_v29 = vshrl.u32 %v6580_v19, 16  ;;  %v6226_v38 = vcombine.low %v8618_v10, %v8624_v15  ;;  %v7959_v41 = vld [vmem:[%s9183_s1 + $0xf0] sm:$0xff]   ;;  %v7961_v10 = vld [vmem:[%s9183_s1 + $0xf8] sm:$0xff]  }
  0xb2   : > { %v1632_v39 = vsel %vm8189_vm5, %v6195_v17, %v1631_v12  ;;  %v1641_v27 = vrot.slane %v1503_v36, 5  ;;  %v4469_v0 = vrot.slane %v4467_v57, 5  ;;  %v4473_v1 = vrot.slane %v4471_v58, 4  ;;  %v6585_v15 = vld [vmem:[%s8066_s14 + $0x30] sm:$0xf] }
  0xb3   : > { %v4440_v43 = vor.u32 %v4439_v34, %v4436_v28  ;;  %v4477_v2 = vshll.u32 %v6584_v51, 16  ;;  %v1648_v19 = vrot.slane %v1506_v8, 5  ;;  %v4482_v21 = vshrl.u32 %v6585_v15, 16 }
  0xb4   : > { %7297 = vmatpush3.bf16.msra.mxu1 %v7944_v22  ;;  %v7957_v22 = vld [vmem:[%s9183_s1 + $0xe8] sm:$0xff]  }
  0xb5   : > { %7475 = vmatmul.mubr.bf16.gmra.mrb[20].mxu0 %v7945_v47  ;;  %7298 = vmatprep.subr.bf16.mxu1 %v7948_v40  ;;  %v1633_v47 = vrot.slane %v1631_v12, 4  ;;  %v4441_v54 = vrot.slane %v4440_v43, 4  ;;  %v4474_v12 = vor.u32 %v4473_v1, %v4469_v0  ;;  %v4479_v13 = vrot.slane %v4477_v2, 5  ;;  %v6588_v43 = vld [vmem:[%s8066_s14 + $0x3c] sm:$0xf] }
  0xb6   : > { %7478 = vmatprep.mubr.bf16.mxu0 %v7947_v31  ;;  %v1502_v31 = vld [vmem:[%s8066_s14 + $0x70] sm:$0xf] }
  0xb7   : > { %7267 = vmatmul.mubr.bf16.gmra.mrb[4].mxu1 %v6222_v45  ;;  %v1638_v37 = vrot.slane %v1502_v31, 5  ;;  %v1635_v42 = vsel %vm8189_vm5, %v1633_v47, %v1634_v23  ;;  %v4446_v63 = vsel %vm8089_vm2, %v4441_v54, %v4445_v35  ;;  %v4475_v47 = vrot.slane %v4474_v12, 4  ;;  %v7962_v12 = vld [vmem:[%s9183_s1 + $0x218] sm:$0xff]  }
  0xb8   : > { %7270 = vmatprep.mubr.bf16.mxu1 %v6223_v53  ;;  %7299 = vmatpush3.bf16.msra.mxu1 %v7948_v40  ;;  %v4449_v40 = vrot.slane %v4447_v29, 4  ;;  %v4461_v53 = vshll.u32 %v6582_v46, 16  ;;  %v6227_v59 = vcombine.low %v1632_v39, %v1635_v42  ;;  %v4484_v29 = vrot.slane %v4482_v21, 4 }
  0xb9   : > { %7300 = vmatprep.subr.bf16.mxu1 %v7952_v52  ;;  %v1640_v45 = vrot.slane %v1638_v37, 4  ;;  %v8647_v49 = vsel %vm8189_vm5, %v6196_v32, %v1638_v37  ;;  %v1508_v32 = vld [vmem:[%s8066_s14 + $0x88] sm:$0xf]  ;;  %v4480_v34 = vsel %vm8089_vm2, %v4475_v47, %v4479_v13  ;;  %v4501_v37 = vshll.u32 %v6587_v20, 16 }
  0xba   : > { %v4463_v62 = vrot.slane %v4461_v53, 5  ;;  %v4506_v53 = vshrl.u32 %v6588_v43, 16  ;;  %v4509_v54 = vshll.u32 %v6588_v43, 16 }
  0xbb   : > { %v8653_v55 = vsel %vm8189_vm5, %v1640_v45, %v1641_v27  ;;  %v6198_v45 = vrot.slane %v1507_v26, 9 }
  0xbc   : > { %7301 = vmatpush3.bf16.msra.mxu1 %v7952_v52  ;;  %v4458_v52 = vshrl.u32 %v6582_v46, 16  ;;  %v6228_v5 = vcombine.low %v8647_v49, %v8653_v55  ;;  %v1652_v46 = vrot.slane %v1508_v32, 5  ;;  %v6589_v49 = vld [vmem:[%s8066_s14 + $0x40] sm:$0xf] }
  0xbd   : > { %7479 = vmatmul.mubr.bf16.gmra.mrb[24].mxu0 %v7949_v48  ;;  %7302 = vmatprep.subr.bf16.mxu1 %v7955_v6  ;;  %v4450_v48 = vor.u32 %v4449_v40, %v4445_v35  ;;  %v4515_v58 = vshll.u32 %v6589_v49, 16 }
  0xbe   : > { %7482 = vmatprep.mubr.bf16.mxu0 %v7951_v61  ;;  %v4460_v61 = vrot.slane %v4458_v52, 4  ;;  %v6590_v52 = vld [vmem:[%s8066_s14 + $0x44] sm:$0x1]  ;;  %v1653_v55 = vsel %vm8189_vm5, %v6198_v45, %v1652_v46  ;;  %v1654_v57 = vrot.slane %v1652_v46, 4 }
  0xbf   : > { %7271 = vmatmul.mubr.bf16.gmra.mrb[8].mxu1 %v6224_v9  ;;  %v4451_v60 = vrot.slane %v4450_v48, 4  ;;  %v6197_v9 = vrot.slane %v1504_v3, 9  ;;  %v4517_v2 = vrot.slane %v4515_v58, 5  ;;  %v7965_v45 = vld [vmem:[%s9183_s1 + $0x220] sm:$0xff]  }
  0xc0   : > { %7274 = vmatprep.mubr.bf16.mxu1 %v6225_v14  ;;  %7303 = vmatpush3.bf16.msra.mxu1 %v7955_v6  ;;  %v4464_v6 = vor.u32 %v4463_v62, %v4460_v61  ;;  %v1645_v14 = vrot.slane %v1505_v7, 5  ;;  %v4508_v62 = vrot.slane %v4506_v53, 4 }
  0xc1   : > { %7304 = vmatprep.subr.bf16.mxu1 %v7957_v22  ;;  %v4456_v18 = vsel %vm8089_vm2, %v4451_v60, %v4455_v44  ;;  %v4503_v44 = vrot.slane %v4501_v37, 5  ;;  %v8693_v60 = vld [vmem:[%s9183_s1 + $0x100] sm:$0xff]  }
  0xc2   : > { %v6643_v11 = vcombine.low %v4446_v63, %v4456_v18  ;;  %v4465_v17 = vrot.slane %v4464_v6, 4  ;;  %v1646_v23 = vsel %vm8189_vm5, %v6197_v9, %v1645_v14  ;;  %v1647_v24 = vrot.slane %v1645_v14, 4  ;;  %v1511_v9 = vld [vmem:[%s8066_s14 + $0x94] sm:$0xf] }
  0xc3   : > { %v4511_v63 = vrot.slane %v4509_v54, 5  ;;  %v4525_v18 = vshll.u32 %v6590_v52, 16  ;;  %v6596_v54 = vld [vmem:[%s8066_s14 + $0x5c] sm:$0x1] }
  0xc4   : > { %7305 = vmatpush3.bf16.msra.mxu1 %v7957_v22  ;;  %v4485_v22 = vshll.u32 %v6585_v15, 16  ;;  %v4470_v28 = vsel %vm8089_vm2, %v4465_v17, %v4469_v0  ;;  %v1649_v35 = vsel %vm8189_vm5, %v1647_v24, %v1648_v19  ;;  %v7960_v0 = vld [vmem:[%s9183_s1 + $0x210] sm:$0xff]   ;;  %v6591_v17 = vld [vmem:[%s8066_s14 + $0x48] sm:$0xf]  ;;  %v6592_v19 = vld [vmem:[%s8066_s14 + $0x4c] sm:$0xf] }
  0xc5   : > { %7483 = vmatmul.mubr.bf16.gmra.mrb[28].mxu0 %v7953_v16  ;;  %7306 = vmatprep.subr.bf16.mxu1 %v7959_v41  ;;  %v6586_v16 = vld [vmem:[%s8066_s14 + $0x34] sm:$0xf]  ;;  %v6644_v39 = vcombine.low %v4470_v28, %v4480_v34  ;;  %v6229_v40 = vcombine.low %v1646_v23, %v1649_v35  ;;  %v4512_v8 = vor.u32 %v4511_v63, %v4508_v62  ;;  %v4527_v15 = vrot.slane %v4525_v18, 5  ;;  %v1514_v35 = vld [vmem:[%s8066_s14 + $0xa0] sm:$0xf] }
  0xc6   : > { %7502 = vmatprep.mubr.bf16.mxu0 %v6643_v11  ;;  %v4491_v25 = vshll.u32 %v6586_v16, 16  ;;  %v4487_v30 = vrot.slane %v4485_v22, 5  ;;  %v4495_v31 = vshrl.u32 %v6586_v16, 16  ;;  %v1659_v16 = vrot.slane %v1511_v9, 5  ;;  %v6593_v22 = vld [vmem:[%s8066_s14 + $0x50] sm:$0x1] }
  0xc7   : > { %7275 = vmatmul.mubr.bf16.gmra.mrb[12].mxu1 %v6226_v38  ;;  %v1509_v38 = vld [vmem:[%s8066_s14 + $0x8c] sm:$0x1]  ;;  %v4513_v20 = vrot.slane %v4512_v8, 4  ;;  %v4530_v47 = vshrl.u32 %v6591_v17, 16  ;;  %v4533_v23 = vshll.u32 %v6591_v17, 16  ;;  %v4539_v28 = vshll.u32 %v6592_v19, 16 }
  0xc8   : > { %7278 = vmatprep.mubr.bf16.mxu1 %v6227_v59  ;;  %7307 = vmatpush3.bf16.msra.mxu1 %v7959_v41  ;;  %v4493_v36 = vrot.slane %v4491_v25, 5  ;;  %v4488_v27 = vor.u32 %v4487_v30, %v4484_v29  ;;  %v4497_v42 = vrot.slane %v4495_v31, 4  ;;  %v7958_v41 = vld [vmem:[%s9183_s1 + $0x208] sm:$0xff]   ;;  %v1655_v48 = vrot.slane %v1509_v38, 5  ;;  %v1513_v29 = vld [vmem:[%s8066_s14 + $0x9c] sm:$0xe] }
  0xc9   : > { %7308 = vmatprep.subr.bf16.mxu1 %v7961_v10  ;;  %v4519_v59 = vshrl.u32 %v6589_v49, 16  ;;  %v1661_v26 = vrot.slane %v1659_v16, 4  ;;  %v4518_v30 = vsel %vm8089_vm2, %v4513_v20, %v4517_v2  ;;  %v4532_v31 = vrot.slane %v4530_v47, 4  ;;  %v6597_v20 = vld [vmem:[%s8066_s14 + $0x60] sm:$0xf] }
  0xca   : > { %v4489_v50 = vrot.slane %v4488_v27, 4  ;;  %v4498_v51 = vor.u32 %v4497_v42, %v4493_v36  ;;  %v1656_v1 = vsel %vm8189_vm5, %v1654_v57, %v1655_v48  ;;  %v4535_v32 = vrot.slane %v4533_v23, 5  ;;  %v6599_v23 = vld [vmem:[%s8066_s14 + $0x68] sm:$0x1] }
  0xcb   : > { %v4521_v3 = vrot.slane %v4519_v59, 4  ;;  %v6230_v7 = vcombine.low %v1653_v55, %v1656_v1  ;;  %v4543_v34 = vshrl.u32 %v6592_v19, 16  ;;  %v4541_v38 = vrot.slane %v4539_v28, 5 }
  0xcc   : > { %7309 = vmatpush3.bf16.msra.mxu1 %v7961_v10  ;;  %v4494_v61 = vsel %vm8089_vm2, %v4489_v50, %v4493_v36  ;;  %v1512_v10 = vld [vmem:[%s8066_s14 + $0x98] sm:$0x1]  ;;  %v4536_v43 = vor.u32 %v4535_v32, %v4532_v31  ;;  %v6200_v48 = vrot.slane %v1513_v29, 9  ;;  %v1666_v49 = vrot.slane %v1514_v35, 5  ;;  %v1519_v31 = vld [vmem:[%s8066_s14 + $0xb4] sm:$0xe] }
  0xcd   : > { %7503 = vmatmul.mubr.bf16.vlgmr.msra.gmra.mrb[0].mxu0 %v6644_v39  ;;  %7582 = vmatprep.subr.bf16.mxu1 %v8693_v60  ;;  %v4522_v14 = vor.u32 %v4521_v3, %v4517_v2  ;;  %v1662_v21 = vrot.slane %v1512_v10, 5  ;;  %v4549_v39 = vshll.u32 %v6593_v22, 16  ;;  %v7968_v2 = vld [vmem:[%s9183_s1 + $0x228] sm:$0xff]  }
  0xce   : > { %7535 = vmatpush3.bf16.msra.mxu0 %v8545_v56  ;;  %v4499_v56 = vrot.slane %v4498_v51, 4  ;;  %v6595_v51 = vld [vmem:[%s8066_s14 + $0x58] sm:$0xf]  ;;  %v4537_v52 = vrot.slane %v4536_v43, 4  ;;  %v1667_v58 = vsel %vm8189_vm5, %v6200_v48, %v1666_v49  ;;  %v1668_v59 = vrot.slane %v1666_v49, 4 }
  0xcf   : > { %7279 = vmatmul.mubr.bf16.gmra.mrb[16].mxu1 %v6228_v5  ;;  %7536 = vmatprep.subr.bf16.mxu0 %v7958_v41  ;;  %v1510_v5 = vld [vmem:[%s8066_s14 + $0x90] sm:$0xe]  ;;  %v4523_v24 = vrot.slane %v4522_v14, 4  ;;  %v1663_v37 = vsel %vm8189_vm5, %v1661_v26, %v1662_v21  ;;  %v4551_v46 = vrot.slane %v4549_v39, 5  ;;  %v6598_v21 = vld [vmem:[%s8066_s14 + $0x64] sm:$0xf] }
  0xd0   : > { %7282 = vmatprep.mubr.bf16.mxu1 %v6229_v40  ;;  %v4504_v6 = vsel %vm8089_vm2, %v4499_v56, %v4503_v44  ;;  %v6199_v11 = vrot.slane %v1510_v5, 9  ;;  %v1515_v40 = vld [vmem:[%s8066_s14 + $0xa4] sm:$0x1]  ;;  %v6594_v44 = vld [vmem:[%s8066_s14 + $0x54] sm:$0xf]  ;;  %v4567_v56 = vshrl.u32 %v6595_v51, 16  ;;  %v4542_v62 = vsel %vm8089_vm2, %v4537_v52, %v4541_v38 }
  0xd1   : > { %v6645_v13 = vcombine.low %v4494_v61, %v4504_v6  ;;  %v4528_v36 = vsel %vm8089_vm2, %v4523_v24, %v4527_v15  ;;  %v1669_v50 = vrot.slane %v1515_v40, 5  ;;  %v4554_v55 = vshrl.u32 %v6594_v44, 16  ;;  %v7971_v14 = vld [vmem:[%s9183_s1 + $0x230] sm:$0xff]   ;;  %v7974_v48 = vld [vmem:[%s9183_s1 + $0x238] sm:$0xff]  }
  0xd2   : > { %7537 = vmatpush3.bf16.msra.mxu0 %v7958_v41  ;;  %v1660_v25 = vsel %vm8189_vm5, %v6199_v11, %v1659_v16  ;;  %v6646_v27 = vcombine.low %v4518_v30, %v4528_v36  ;;  %v4545_v41 = vrot.slane %v4543_v34, 4  ;;  %v4557_v57 = vshll.u32 %v6594_v44, 16  ;;  %v1517_v11 = vld [vmem:[%s8066_s14 + $0xac] sm:$0xf] }
  0xd3   : > { %7538 = vmatprep.subr.bf16.mxu0 %v7960_v0  ;;  %7506 = vmatprep.mubr.bf16.mxu0 %v6645_v13  ;;  %v6231_v42 = vcombine.low %v1660_v25, %v1663_v37  ;;  %v4563_v61 = vshll.u32 %v6595_v51, 16  ;;  %v1670_v3 = vsel %vm8189_vm5, %v1668_v59, %v1669_v50  ;;  %v4569_v5 = vrot.slane %v4567_v56, 4  ;;  %v1520_v37 = vld [vmem:[%s8066_s14 + $0xb8] sm:$0xf] }
  0xd4   : > { %v4546_v53 = vor.u32 %v4545_v41, %v4541_v38  ;;  %v4559_v1 = vrot.slane %v4557_v57, 5  ;;  %v4573_v6 = vshll.u32 %v6596_v54, 16  ;;  %v6232_v9 = vcombine.low %v1667_v58, %v1670_v3  ;;  %v6602_v57 = vld [vmem:[%s8066_s14 + $0x74] sm:$0x1] }
  0xd5   : > { %7507 = vmatmul.mubr.bf16.gmra.mrb[4].mxu0 %v6646_v27  ;;  %v4565_v18 = vrot.slane %v4563_v61, 5  ;;  %v1673_v19 = vrot.slane %v1517_v11, 5  ;;  %v4578_v24 = vshrl.u32 %v6597_v20, 16  ;;  %v4581_v25 = vshll.u32 %v6597_v20, 16 }
  0xd6   : > { %7539 = vmatpush3.bf16.msra.mxu0 %v7960_v0  ;;  %v4547_v63 = vrot.slane %v4546_v53, 4  ;;  %v4556_v0 = vrot.slane %v4554_v55, 4  ;;  %v4575_v17 = vrot.slane %v4573_v6, 5  ;;  %v4587_v30 = vshll.u32 %v6598_v21, 16  ;;  %v6601_v53 = vld [vmem:[%s8066_s14 + $0x70] sm:$0xf] }
  0xd7   : > { %7283 = vmatmul.mubr.bf16.gmra.mrb[20].mxu1 %v6230_v7  ;;  %7540 = vmatprep.subr.bf16.mxu0 %v7962_v12  ;;  %v1516_v7 = vld [vmem:[%s8066_s14 + $0xa8] sm:$0xe]  ;;  %v4570_v16 = vor.u32 %v4569_v5, %v4565_v18  ;;  %v1675_v29 = vrot.slane %v1673_v19, 4  ;;  %v4580_v34 = vrot.slane %v4578_v24, 4  ;;  %v4583_v35 = vrot.slane %v4581_v25, 5 }
  0xd8   : > { %7286 = vmatprep.mubr.bf16.mxu1 %v6231_v42  ;;  %v4552_v8 = vsel %vm8089_vm2, %v4547_v63, %v4551_v46  ;;  %v4560_v10 = vor.u32 %v4559_v1, %v4556_v0  ;;  %v6201_v13 = vrot.slane %v1516_v7, 9  ;;  %v4591_v36 = vshrl.u32 %v6598_v21, 16  ;;  %v1521_v42 = vld [vmem:[%s8066_s14 + $0xbc] sm:$0x1]  ;;  %v6600_v46 = vld [vmem:[%s8066_s14 + $0x6c] sm:$0xf] }
  0xd9   : > { %v6647_v15 = vcombine.low %v4542_v62, %v4552_v8  ;;  %v4571_v26 = vrot.slane %v4570_v16, 4  ;;  %v4589_v40 = vrot.slane %v4587_v30, 5  ;;  %v4597_v27 = vshll.u32 %v6599_v23, 16  ;;  %v7963_v8 = vld [vmem:[%s8066_s14 + $0xc] sm:$0xff]  }
  0xda   : > { %7541 = vmatpush3.bf16.msra.mxu0 %v7962_v12  ;;  %v1518_v12 = vld [vmem:[%s8066_s14 + $0xb0] sm:$0x1]  ;;  %v4561_v22 = vrot.slane %v4560_v10, 4  ;;  %v1674_v28 = vsel %vm8189_vm5, %v6201_v13, %v1673_v19  ;;  %v4584_v44 = vor.u32 %v4583_v35, %v4580_v34  ;;  %v6202_v50 = vrot.slane %v1519_v31, 9  ;;  %v6604_v13 = vld [vmem:[%s8066_s14 + $0x7c] sm:$0xf] }
  0xdb   : > { %7542 = vmatprep.subr.bf16.mxu0 %v7965_v45  ;;  %v1676_v47 = vrot.slane %v1518_v12, 5  ;;  %7510 = vmatprep.mubr.bf16.mxu0 %v6647_v15  ;;  %v4576_v38 = vsel %vm8089_vm2, %v4571_v26, %v4575_v17  ;;  %v4599_v49 = vrot.slane %v4597_v27, 5  ;;  %v1680_v51 = vrot.slane %v1520_v37, 5  ;;  %v6603_v12 = vld [vmem:[%s8066_s14 + $0x78] sm:$0xf] }
  0xdc   : > { %v4566_v32 = vsel %vm8089_vm2, %v4561_v22, %v4565_v18  ;;  %v1683_v52 = vrot.slane %v1521_v42, 5  ;;  %v4585_v54 = vrot.slane %v4584_v44, 4  ;;  %v4602_v58 = vshrl.u32 %v6600_v46, 16  ;;  %v6605_v17 = vld [vmem:[%s8066_s14 + $0x80] sm:$0x1] }
  0xdd   : > { %v1677_v39 = vsel %vm8189_vm5, %v1675_v29, %v1676_v47  ;;  %v6648_v43 = vcombine.low %v4566_v32, %v4576_v38  ;;  %v4605_v59 = vshll.u32 %v6600_v46, 16  ;;  %v1681_v61 = vsel %vm8189_vm5, %v6202_v50, %v1680_v51  ;;  %v6606_v26 = vld [vmem:[%s8066_s14 + $0x84] sm:$0xf]  ;;  %v6607_v32 = vld [vmem:[%s8066_s14 + $0x88] sm:$0xf] }
  0xde   : > { %7543 = vmatpush3.bf16.msra.mxu0 %v7965_v45  ;;  %v6233_v41 = vcombine.low %v1674_v28, %v1677_v39  ;;  %v4593_v45 = vrot.slane %v4591_v36, 4  ;;  %v1682_v56 = vrot.slane %v1680_v51, 4  ;;  %v4611_v62 = vshll.u32 %v6601_v53, 16  ;;  %v7964_v36 = vld [vmem:[%s8066_s14 + $0x18] sm:$0xff]   ;;  %v6608_v37 = vld [vmem:[%s8066_s14 + $0x8c] sm:$0x1] }
  0xdf   : > { %7287 = vmatmul.mubr.bf16.gmra.mrb[24].mxu1 %v6232_v9  ;;  %7544 = vmatprep.subr.bf16.mxu0 %v7968_v2  ;;  %v4615_v63 = vshrl.u32 %v6601_v53, 16  ;;  %v4590_v0 = vsel %vm8089_vm2, %v4585_v54, %v4589_v40  ;;  %v4607_v3 = vrot.slane %v4605_v59, 5  ;;  %v4621_v7 = vshll.u32 %v6602_v57, 16  ;;  %v6610_v57 = vld [vmem:[%s8066_s14 + $0x94] sm:$0xf] }
  0xe0   : > { %7511 = vmatmul.mubr.bf16.gmra.mrb[8].mxu0 %v6648_v43  ;;  %7290 = vmatprep.mubr.bf16.mxu1 %v6233_v41  ;;  %v4594_v55 = vor.u32 %v4593_v45, %v4589_v40  ;;  %v1684_v18 = vsel %vm8189_vm5, %v1682_v56, %v1683_v52  ;;  %v4613_v5 = vrot.slane %v4611_v62, 5  ;;  %v4626_v19 = vshrl.u32 %v6603_v12, 16  ;;  %v7966_v41 = vld [vmem:[%s8066_s14 + $0x24] sm:$0xff]  }
  0xe1   : > { %v4617_v6 = vrot.slane %v4615_v63, 4  ;;  %v6234_v10 = vcombine.low %v1681_v61, %v1684_v18  ;;  %v4623_v16 = vrot.slane %v4621_v7, 5  ;;  %v4629_v21 = vshll.u32 %v6603_v12, 16  ;;  %v6611_v61 = vld [vmem:[%s8066_s14 + $0x98] sm:$0x1] }
  0xe2   : > { %7545 = vmatpush3.bf16.msra.mxu0 %v7968_v2  ;;  %v4595_v1 = vrot.slane %v4594_v55, 4  ;;  %v4604_v2 = vrot.slane %v4602_v58, 4  ;;  %v4635_v22 = vshll.u32 %v6604_v13, 16  ;;  %v4639_v47 = vshrl.u32 %v6604_v13, 16  ;;  %v6609_v55 = vld [vmem:[%s8066_s14 + $0x90] sm:$0xf] }
  0xe3   : > { %7546 = vmatprep.subr.bf16.mxu0 %v7971_v14  ;;  %v4618_v15 = vor.u32 %v4617_v6, %v4613_v5  ;;  %v4628_v24 = vrot.slane %v4626_v19, 4  ;;  %v4645_v25 = vshll.u32 %v6605_v17, 16  ;;  %v4631_v29 = vrot.slane %v4629_v21, 5  ;;  %v6614_v12 = vld [vmem:[%s8066_s14 + $0xa4] sm:$0x1]  ;;  %v7967_v17 = vld [vmem:[%s8066_s14 + $0x30] sm:$0xff]  }
  0xe4   : > { %v4600_v9 = vsel %vm8089_vm2, %v4595_v1, %v4599_v49  ;;  %v4608_v11 = vor.u32 %v4607_v3, %v4604_v2  ;;  %v4637_v30 = vrot.slane %v4635_v22, 5  ;;  %v4641_v31 = vrot.slane %v4639_v47, 4  ;;  %v6612_v3 = vld [vmem:[%s8066_s14 + $0x9c] sm:$0xf] }
  0xe5   : > { %v4619_v23 = vrot.slane %v4618_v15, 4  ;;  %v4647_v35 = vrot.slane %v4645_v25, 5  ;;  %v4650_v38 = vshrl.u32 %v6606_v26, 16  ;;  %v4653_v39 = vshll.u32 %v6606_v26, 16 }
  0xe6   : > { %7547 = vmatpush3.bf16.msra.mxu0 %v7971_v14  ;;  %v6649_v14 = vcombine.low %v4590_v0, %v4600_v9  ;;  %v4609_v20 = vrot.slane %v4608_v11, 4  ;;  %v4632_v27 = vor.u32 %v4631_v29, %v4628_v24  ;;  %v4642_v42 = vor.u32 %v4641_v31, %v4637_v30  ;;  %v6613_v9 = vld [vmem:[%s8066_s14 + $0xa0] sm:$0xf]  ;;  %v7985_v29 = vld [vmem:[%s9183_s1 + $0x110] sm:$0xff]  }
  0xe7   : > { %7548 = vmatprep.subr.bf16.mxu0 %v7974_v48  ;;  %7291 = vmatmul.mubr.bf16.gmra.mrb[28].mxu1 %v6234_v10  ;;  %v4624_v34 = vsel %vm8089_vm2, %v4619_v23, %v4623_v16  ;;  %v4659_v43 = vshll.u32 %v6607_v32, 16  ;;  %v4652_v44 = vrot.slane %v4650_v38, 4  ;;  %v4655_v45 = vrot.slane %v4653_v39, 5  ;;  %v7969_v23 = vld [vmem:[%s8066_s14 + $0x3c] sm:$0xff]   ;;  %v6616_v38 = vld [vmem:[%s8066_s14 + $0xac] sm:$0xf] }
  0xe8   : > { %7514 = vmatprep.mubr.bf16.mxu0 %v6649_v14  ;;  %7310 = vmatprep.mubr.bf16.mxu1 %v7963_v8  ;;  %v4614_v28 = vsel %vm8089_vm2, %v4609_v20, %v4613_v5  ;;  %v4663_v46 = vshrl.u32 %v6607_v32, 16  ;;  %v4633_v49 = vrot.slane %v4632_v27, 4  ;;  %v4643_v50 = vrot.slane %v4642_v42, 4  ;;  %v7984_v8 = vld [vmem:[%s9183_s1 + $0x108] sm:$0xff]   ;;  %v6617_v39 = vld [vmem:[%s8066_s14 + $0xb0] sm:$0x1] }
  0xe9   : > { %v6650_v40 = vcombine.low %v4614_v28, %v4624_v34  ;;  %v4661_v51 = vrot.slane %v4659_v43, 5  ;;  %v4656_v52 = vor.u32 %v4655_v45, %v4652_v44  ;;  %v4674_v56 = vshrl.u32 %v6609_v55, 16  ;;  %v6615_v34 = vld [vmem:[%s8066_s14 + $0xa8] sm:$0xf] }
  0xea   : > { %7549 = vmatpush3.bf16.msra.mxu0 %v7974_v48  ;;  %v4669_v48 = vshll.u32 %v6608_v37, 16  ;;  %v4665_v53 = vrot.slane %v4663_v46, 4  ;;  %v4638_v58 = vsel %vm8089_vm2, %v4633_v49, %v4637_v30  ;;  %v4648_v59 = vsel %vm8089_vm2, %v4643_v50, %v4647_v35  ;;  %v7970_v49 = vld [vmem:[%s8066_s14 + $0x48] sm:$0xff]   ;;  %v7986_v50 = vld [vmem:[%s9183_s1 + $0x118] sm:$0xff]  }
  0xeb   : > { %7515 = vmatmul.mubr.bf16.gmra.mrb[12].mxu0 %v6650_v40  ;;  %v4677_v62 = vshll.u32 %v6609_v55, 16  ;;  %v6651_v63 = vcombine.low %v4638_v58, %v4648_v59  ;;  %v4657_v0 = vrot.slane %v4656_v52, 4  ;;  %v4683_v2 = vshll.u32 %v6610_v57, 16  ;;  %v6618_v55 = vld [vmem:[%s8066_s14 + $0xb4] sm:$0xf] }
  0xec   : > { %v4671_v54 = vrot.slane %v4669_v48, 5  ;;  %v4666_v1 = vor.u32 %v4665_v53, %v4661_v51  ;;  %v4676_v18 = vrot.slane %v4674_v56, 4  ;;  %v4687_v6 = vshrl.u32 %v6610_v57, 16  ;;  %v7972_v57 = vld [vmem:[%s8066_s14 + $0x54] sm:$0xff]  }
  0xed   : > { %v4679_v5 = vrot.slane %v4677_v62, 5  ;;  %v4693_v7 = vshll.u32 %v6611_v61, 16  ;;  %7518 = vmatprep.mubr.bf16.mxu0 %v6651_v63  ;;  %v4662_v10 = vsel %vm8089_vm2, %v4657_v0, %v4661_v51  ;;  %v4685_v11 = vrot.slane %v4683_v2, 5  ;;  %v6619_v56 = vld [vmem:[%s8066_s14 + $0xb8] sm:$0xf] }
  0xee   : > { %v4698_v13 = vshrl.u32 %v6612_v3, 16  ;;  %v4689_v15 = vrot.slane %v4687_v6, 4  ;;  %v4701_v19 = vshll.u32 %v6612_v3, 16  ;;  %v4707_v22 = vshll.u32 %v6613_v9, 16  ;;  %v6620_v62 = vld [vmem:[%s8066_s14 + $0xbc] sm:$0x1] }
  0xef   : > { %7311 = vmatmul.mubr.bf16.vlgmr.msra.gmra.mrb[0].mxu1 %v7964_v36  ;;  %v4680_v14 = vor.u32 %v4679_v5, %v4676_v18  ;;  %v4695_v16 = vrot.slane %v4693_v7, 5  ;;  %v4711_v47 = vshrl.u32 %v6613_v9, 16  ;;  %v4717_v32 = vshll.u32 %v6614_v12, 16  ;;  %v7987_v7 = vld [vmem:[%s9183_s1 + $0x120] sm:$0xff]  }
  0xf0   : > { %7590 = vmatpush3.bf16.msra.mxu1 %v8693_v60  ;;  %7314 = vmatprep.mubr.bf16.mxu1 %v7966_v41  ;;  %v4667_v60 = vrot.slane %v4666_v1, 4  ;;  %v4700_v21 = vrot.slane %v4698_v13, 4  ;;  %v4690_v26 = vor.u32 %v4689_v15, %v4685_v11  ;;  %v4703_v28 = vrot.slane %v4701_v19, 5  ;;  %v6622_v15 = vld [vmem:[%s8066_s14 + $0xc4] sm:$0xf] }
  0xf1   : > { %7583 = vmatprep.subr.bf16.mxu1 %v7984_v8  ;;  %v4681_v25 = vrot.slane %v4680_v14, 4  ;;  %v4709_v30 = vrot.slane %v4707_v22, 5  ;;  %v4713_v31 = vrot.slane %v4711_v47, 4  ;;  %v4722_v40 = vshrl.u32 %v6615_v34, 16 }
  0xf2   : > { %v4672_v20 = vsel %vm8089_vm2, %v4667_v60, %v4671_v54  ;;  %v4691_v36 = vrot.slane %v4690_v26, 4  ;;  %v4704_v37 = vor.u32 %v4703_v28, %v4700_v21  ;;  %v4719_v42 = vrot.slane %v4717_v32, 5  ;;  %v6623_v21 = vld [vmem:[%s8066_s14 + $0xc8] sm:$0x1]  ;;  %v7973_v26 = vld [vmem:[%s8066_s14 + $0x60] sm:$0xff]  }
  0xf3   : > { %v6652_v24 = vcombine.low %v4662_v10, %v4672_v20  ;;  %v4686_v35 = vsel %vm8089_vm2, %v4681_v25, %v4685_v11  ;;  %v4714_v27 = vor.u32 %v4713_v31, %v4709_v30  ;;  %v4725_v43 = vshll.u32 %v6615_v34, 16  ;;  %v6621_v11 = vld [vmem:[%s8066_s14 + $0xc0] sm:$0xf]  ;;  %v7988_v28 = vld [vmem:[%s9183_s1 + $0x128] sm:$0xff]  }
  0xf4   : > { %7591 = vmatpush3.bf16.msra.mxu1 %v7984_v8  ;;  %v4731_v41 = vshll.u32 %v6616_v38, 16  ;;  %v4696_v44 = vsel %vm8089_vm2, %v4691_v36, %v4695_v16  ;;  %v4705_v45 = vrot.slane %v4704_v37, 4  ;;  %v4724_v46 = vrot.slane %v4722_v40, 4  ;;  %v6624_v34 = vld [vmem:[%s8066_s14 + $0xcc] sm:$0xf] }
  0xf5   : > { %7584 = vmatprep.subr.bf16.mxu1 %v7985_v29  ;;  %7519 = vmatmul.mubr.bf16.gmra.mrb[16].mxu0 %v6652_v24  ;;  %v4735_v48 = vshrl.u32 %v6616_v38, 16  ;;  %v6653_v51 = vcombine.low %v4686_v35, %v4696_v44  ;;  %v4715_v52 = vrot.slane %v4714_v27, 4  ;;  %v4727_v53 = vrot.slane %v4725_v43, 5  ;;  %v6625_v35 = vld [vmem:[%s8066_s14 + $0xd0] sm:$0xf] }
  0xf6   : > { %v4733_v54 = vrot.slane %v4731_v41, 5  ;;  %v4710_v58 = vsel %vm8089_vm2, %v4705_v45, %v4709_v30  ;;  %v4741_v61 = vshll.u32 %v6617_v39, 16  ;;  %v4746_v1 = vshrl.u32 %v6618_v55, 16  ;;  %v7975_v36 = vld [vmem:[%s8066_s14 + $0x6c] sm:$0xff]   ;;  %v6626_v40 = vld [vmem:[%s8066_s14 + $0xd4] sm:$0x1] }
  0xf7   : > { %7315 = vmatmul.mubr.bf16.gmra.mrb[4].mxu1 %v7967_v17  ;;  %v4737_v59 = vrot.slane %v4735_v48, 4  ;;  %7522 = vmatprep.mubr.bf16.mxu0 %v6653_v51  ;;  %v4720_v63 = vsel %vm8089_vm2, %v4715_v52, %v4719_v42  ;;  %v4728_v0 = vor.u32 %v4727_v53, %v4724_v46  ;;  %v4749_v2 = vshll.u32 %v6618_v55, 16 }
  0xf8   : > { %7318 = vmatprep.mubr.bf16.mxu1 %v7969_v23  ;;  %7592 = vmatpush3.bf16.msra.mxu1 %v7985_v29  ;;  %v6654_v3 = vcombine.low %v4710_v58, %v4720_v63  ;;  %v4743_v5 = vrot.slane %v4741_v61, 5  ;;  %v4755_v6 = vshll.u32 %v6619_v56, 16  ;;  %v4748_v9 = vrot.slane %v4746_v1, 4  ;;  %v6667_v61 = vld [vmem:[%s8066_s14 + $0x18] sm:$0xe] }
  0xf9   : > { %7585 = vmatprep.subr.bf16.mxu1 %v7986_v50  ;;  %v4738_v18 = vor.u32 %v4737_v59, %v4733_v54  ;;  %v4729_v8 = vrot.slane %v4728_v0, 4  ;;  %v4751_v10 = vrot.slane %v4749_v2, 5  ;;  %v4759_v60 = vshrl.u32 %v6619_v56, 16  ;;  %v6668_v56 = vld [vmem:[%s8066_s14 + $0x1c] sm:$0xf] }
  0xfa   : > { %v4757_v13 = vrot.slane %v4755_v6, 5  ;;  %v4765_v14 = vshll.u32 %v6620_v62, 16  ;;  %v4770_v16 = vshrl.u32 %v6621_v11, 16  ;;  %v4773_v22 = vshll.u32 %v6621_v11, 16  ;;  %v6669_v0 = vld [vmem:[%s8066_s14 + $0x20] sm:$0x1] }
  0xfb   : > { %v4739_v12 = vrot.slane %v4738_v18, 4  ;;  %v4734_v17 = vsel %vm8089_vm2, %v4729_v8, %v4733_v54  ;;  %v4752_v19 = vor.u32 %v4751_v10, %v4748_v9  ;;  %v4761_v20 = vrot.slane %v4759_v60, 4  ;;  %v7976_v6 = vld [vmem:[%s8066_s14 + $0x78] sm:$0xff]   ;;  %v6670_v60 = vld [vmem:[%s8066_s14 + $0x24] sm:$0xe] }
  0xfc   : > { %7593 = vmatpush3.bf16.msra.mxu1 %v7986_v50  ;;  %v4767_v23 = vrot.slane %v4765_v14, 5  ;;  %v4772_v24 = vrot.slane %v4770_v16, 4  ;;  %v4779_v25 = vshll.u32 %v6622_v15, 16  ;;  %v4775_v32 = vrot.slane %v4773_v22, 5  ;;  %v7989_v50 = vld [vmem:[%s9183_s1 + $0x130] sm:$0xff]   ;;  %v7977_v16 = vld [vmem:[%s8066_s14 + $0x84] sm:$0xff]  }
  0xfd   : > { %7586 = vmatprep.subr.bf16.mxu1 %v7987_v7  ;;  %7523 = vmatmul.mubr.bf16.gmra.mrb[20].mxu0 %v6654_v3  ;;  %v4744_v47 = vsel %vm8089_vm2, %v4739_v12, %v4743_v5  ;;  %v4753_v30 = vrot.slane %v4752_v19, 4  ;;  %v4762_v31 = vor.u32 %v4761_v20, %v4757_v13  ;;  %v4783_v38 = vshrl.u32 %v6622_v15, 16  ;;  %v6671_v11 = vld [vmem:[%s8066_s14 + $0x28] sm:$0xf]  ;;  %v6672_v15 = vld [vmem:[%s8066_s14 + $0x2c] sm:$0x1] }
  0xfe   : > { %v6655_v29 = vcombine.low %v4734_v17, %v4744_v47  ;;  %v4781_v37 = vrot.slane %v4779_v25, 5  ;;  %v4789_v39 = vshll.u32 %v6623_v21, 16  ;;  %v4794_v27 = vshrl.u32 %v6624_v34, 16  ;;  %v6673_v22 = vld [vmem:[%s8066_s14 + $0x30] sm:$0xe] }
  0xff   : > { %7319 = vmatmul.mubr.bf16.gmra.mrb[8].mxu1 %v7970_v49  ;;  %v4758_v42 = vsel %vm8089_vm2, %v4753_v30, %v4757_v13  ;;  %v4763_v43 = vrot.slane %v4762_v31, 4  ;;  %v4776_v41 = vor.u32 %v4775_v32, %v4772_v24  ;;  %v4797_v44 = vshll.u32 %v6624_v34, 16  ;;  %v6674_v25 = vld [vmem:[%s8066_s14 + $0x34] sm:$0xf] }
 0x100   : > { %7322 = vmatprep.mubr.bf16.mxu1 %v7972_v57  ;;  %7594 = vmatpush3.bf16.msra.mxu1 %v7987_v7  ;;  %v4785_v45 = vrot.slane %v4783_v38, 4  ;;  %v4791_v46 = vrot.slane %v4789_v39, 5  ;;  %v4796_v48 = vrot.slane %v4794_v27, 4  ;;  %v4803_v49 = vshll.u32 %v6625_v35, 16  ;;  %v7990_v7 = vld [vmem:[%s9183_s1 + $0x138] sm:$0xff]  }
 0x101   : > { %7587 = vmatprep.subr.bf16.mxu1 %v7988_v28  ;;  %7526 = vmatprep.mubr.bf16.mxu0 %v6655_v29  ;;  %v4768_v51 = vsel %vm8089_vm2, %v4763_v43, %v4767_v23  ;;  %v4777_v52 = vrot.slane %v4776_v41, 4  ;;  %v4799_v53 = vrot.slane %v4797_v44, 5  ;;  %v4807_v54 = vshrl.u32 %v6625_v35, 16  ;;  %v6678_v38 = vld [vmem:[%s8066_s14 + $0x44] sm:$0x1] }
 0x102   : > { %v6656_v55 = vcombine.low %v4758_v42, %v4768_v51  ;;  %v4786_v57 = vor.u32 %v4785_v45, %v4781_v37  ;;  %v4805_v58 = vrot.slane %v4803_v49, 5  ;;  %v4813_v59 = vshll.u32 %v6626_v40, 16  ;;  %v7978_v42 = vld [vmem:[%s8066_s14 + $0x90] sm:$0xff]   ;;  %v6679_v41 = vld [vmem:[%s8066_s14 + $0x48] sm:$0xe] }
 0x103   : > { %v4800_v62 = vor.u32 %v4799_v53, %v4796_v48  ;;  %v4809_v63 = vrot.slane %v4807_v54, 4  ;;  %v6715_v1 = vrot.slane %v6667_v61, 9  ;;  %v4782_v2 = vsel %vm8089_vm2, %v4777_v52, %v4781_v37  ;;  %v6677_v37 = vld [vmem:[%s8066_s14 + $0x40] sm:$0xf]  ;;  %v6680_v49 = vld [vmem:[%s8066_s14 + $0x4c] sm:$0xf] }
 0x104   : > { %7595 = vmatpush3.bf16.msra.mxu1 %v7988_v28  ;;  %v4787_v3 = vrot.slane %v4786_v57, 4  ;;  %v5301_v18 = vrot.slane %v6668_v56, 5  ;;  %v5304_v5 = vrot.slane %v6669_v0, 5  ;;  %v4815_v10 = vrot.slane %v4813_v59, 5  ;;  %v7979_v48 = vld [vmem:[%s8066_s14 + $0x9c] sm:$0xff]  }
 0x105   : > { %7588 = vmatprep.subr.bf16.mxu1 %v7989_v50  ;;  %7527 = vmatmul.mubr.bf16.gmra.mrb[24].mxu0 %v6656_v55  ;;  %v4801_v8 = vrot.slane %v4800_v62, 4  ;;  %v4810_v9 = vor.u32 %v4809_v63, %v4805_v58  ;;  %v5308_v21 = vrot.slane %v6671_v11, 5  ;;  %v6716_v23 = vrot.slane %v6670_v60, 9  ;;  %v6682_v57 = vld [vmem:[%s8066_s14 + $0x54] sm:$0xe] }
 0x106   : > { %v4792_v12 = vsel %vm8089_vm2, %v4787_v3, %v4791_v46  ;;  %v5302_v13 = vsel %vm8189_vm5, %v6715_v1, %v5301_v18  ;;  %v5303_v14 = vrot.slane %v5301_v18, 4  ;;  %v5311_v24 = vrot.slane %v6672_v15, 5  ;;  %v6684_v59 = vld [vmem:[%s8066_s14 + $0x5c] sm:$0x1]  ;;  %v6685_v18 = vld [vmem:[%s8066_s14 + $0x60] sm:$0xe] }
 0x107   : > { %7323 = vmatmul.mubr.bf16.gmra.mrb[12].mxu1 %v7973_v26  ;;  %v6657_v17 = vcombine.low %v4782_v2, %v4792_v12  ;;  %v4806_v19 = vsel %vm8089_vm2, %v4801_v8, %v4805_v58  ;;  %v4811_v20 = vrot.slane %v4810_v9, 4  ;;  %v6675_v26 = vld [vmem:[%s8066_s14 + $0x38] sm:$0x1]  ;;  %v5310_v30 = vrot.slane %v5308_v21, 4  ;;  %v6687_v8 = vld [vmem:[%s8066_s14 + $0x68] sm:$0x1] }
 0x108   : > { %7326 = vmatprep.mubr.bf16.mxu1 %v7975_v36  ;;  %7596 = vmatpush3.bf16.msra.mxu1 %v7989_v50  ;;  %v5305_v47 = vsel %vm8189_vm5, %v5303_v14, %v5304_v5  ;;  %v6717_v31 = vrot.slane %v6673_v22, 9  ;;  %v5315_v34 = vrot.slane %v6674_v25, 5  ;;  %v5318_v35 = vrot.slane %v6675_v26, 5  ;;  %v6676_v36 = vld [vmem:[%s8066_s14 + $0x3c] sm:$0xe]  ;;  %v7980_v15 = vld [vmem:[%s8066_s14 + $0xa8] sm:$0xff]  }
 0x109   : > { %7589 = vmatprep.subr.bf16.mxu1 %v7990_v7  ;;  %7530 = vmatprep.mubr.bf16.mxu0 %v6657_v17  ;;  %v4816_v28 = vsel %vm8089_vm2, %v4811_v20, %v4815_v10  ;;  %v6747_v29 = vcombine.low %v5302_v13, %v5305_v47  ;;  %v6718_v39 = vrot.slane %v6676_v36, 9  ;;  %v5322_v40 = vrot.slane %v6677_v37, 5  ;;  %v6681_v50 = vld [vmem:[%s8066_s14 + $0x50] sm:$0x1]  ;;  %v6683_v58 = vld [vmem:[%s8066_s14 + $0x58] sm:$0xf] }
 0x10a   : > { %v6658_v32 = vcombine.low %v4806_v19, %v4816_v28  ;;  %v5317_v27 = vrot.slane %v5315_v34, 4  ;;  %v5325_v43 = vrot.slane %v6678_v38, 5  ;;  %v5309_v44 = vsel %vm8189_vm5, %v6716_v23, %v5308_v21  ;;  %v6686_v5 = vld [vmem:[%s8066_s14 + $0x64] sm:$0xf]  ;;  %v6688_v13 = vld [vmem:[%s8066_s14 + $0x6c] sm:$0xe] }
 0x10b   : > { %v5312_v45 = vsel %vm8189_vm5, %v5310_v30, %v5311_v24  ;;  %v5324_v46 = vrot.slane %v5322_v40, 4  ;;  %v6719_v51 = vrot.slane %v6679_v41, 9  ;;  %v5316_v52 = vsel %vm8189_vm5, %v6717_v31, %v5315_v34  ;;  %v6689_v19 = vld [vmem:[%s8066_s14 + $0x70] sm:$0xf]  ;;  %v6690_v20 = vld [vmem:[%s8066_s14 + $0x74] sm:$0x1] }
 0x10c   : > { %7597 = vmatpush3.bf16.msra.mxu1 %v7990_v7  ;;  %v5319_v53 = vsel %vm8189_vm5, %v5317_v27, %v5318_v35  ;;  %v5329_v54 = vrot.slane %v6680_v49, 5  ;;  %v5332_v55 = vrot.slane %v6681_v50, 5  ;;  %v6748_v61 = vcombine.low %v5309_v44, %v5312_v45  ;;  %v7981_v23 = vld [vmem:[%s8066_s14 + $0xb4] sm:$0xff]   ;;  %v6339_v26 = vld [vmem:[%s8066_s14 + $0x6c] sm:$0xf] }
 0x10d   : > { %7531 = vmatmul.mubr.bf16.gmra.mrb[28].mxu0 %v6658_v32  ;;  %v8903_v56 = vsel %vm8189_vm5, %v6718_v39, %v5322_v40  ;;  %v6720_v63 = vrot.slane %v6682_v57, 9  ;;  %v6749_v0 = vcombine.low %v5316_v52, %v5319_v53  ;;  %v8907_v1 = vsel %vm8189_vm5, %v5324_v46, %v5325_v43  ;;  %v6340_v28 = vld [vmem:[%s8066_s14 + $0x70] sm:$0xf]  ;;  %v6341_v31 = vld [vmem:[%s8066_s14 + $0x74] sm:$0x1] }
 0x10e   : > { %7550 = vmatprep.mubr.bf16.mxu0 %v6747_v29  ;;  %v5331_v62 = vrot.slane %v5329_v54, 4  ;;  %v5336_v2 = vrot.slane %v6683_v58, 5  ;;  %v5339_v3 = vrot.slane %v6684_v59, 5  ;;  %v6721_v9 = vrot.slane %v6685_v18, 9  ;;  %v6691_v35 = vld [vmem:[%s8066_s14 + $0x78] sm:$0xe] }
 0x10f   : > { %7327 = vmatmul.mubr.bf16.gmra.mrb[16].mxu1 %v7976_v6  ;;  %v8913_v6 = vsel %vm8189_vm5, %v6719_v51, %v5329_v54  ;;  %v5343_v10 = vrot.slane %v6686_v5, 5  ;;  %v5346_v12 = vrot.slane %v6687_v8, 5  ;;  %v6750_v14 = vcombine.low %v8903_v56, %v8907_v1  ;;  %v6692_v40 = vld [vmem:[%s8066_s14 + $0x7c] sm:$0xf]  ;;  %v6693_v27 = vld [vmem:[%s8066_s14 + $0x80] sm:$0x1] }
 0x110   : > { %7330 = vmatprep.mubr.bf16.mxu1 %v7977_v16  ;;  %v8917_v7 = vsel %vm8189_vm5, %v5331_v62, %v5332_v55  ;;  %v8922_v60 = vsel %vm8189_vm5, %v6720_v63, %v5336_v2  ;;  %v5338_v11 = vrot.slane %v5336_v2, 4  ;;  %v6722_v21 = vrot.slane %v6688_v13, 9  ;;  %v6342_v45 = vld [vmem:[%s8066_s14 + $0x78] sm:$0xf]  ;;  %v6343_v51 = vld [vmem:[%s8066_s14 + $0x7c] sm:$0xf] }
 0x111   : > { %v8930_v16 = vsel %vm8189_vm5, %v6721_v9, %v5343_v10  ;;  %v5345_v17 = vrot.slane %v5343_v10, 4  ;;  %v6751_v22 = vcombine.low %v8913_v6, %v8917_v7  ;;  %v5350_v24 = vrot.slane %v6689_v19, 5  ;;  %v6344_v57 = vld [vmem:[%s8066_s14 + $0x80] sm:$0x1]  ;;  %v6694_v62 = vld [vmem:[%s8066_s14 + $0x84] sm:$0xe] }
 0x112   : > { %v8938_v47 = vsel %vm8189_vm5, %v5338_v11, %v5339_v3  ;;  %v5353_v25 = vrot.slane %v6690_v20, 5  ;;  %v2763_v32 = vshrl.u32 %v6339_v26, 16  ;;  %v2766_v34 = vshll.u32 %v6339_v26, 16  ;;  %v6695_v3 = vld [vmem:[%s8066_s14 + $0x88] sm:$0xf]  ;;  %v7982_v9 = vld [vmem:[%s8066_s14 + $0xc0] sm:$0xff]  }
 0x113   : > { %v6752_v29 = vcombine.low %v8922_v60, %v8938_v47  ;;  %v8947_v30 = vsel %vm8189_vm5, %v5345_v17, %v5346_v12  ;;  %v8955_v37 = vsel %vm8189_vm5, %v6722_v21, %v5350_v24  ;;  %v5352_v38 = vrot.slane %v5350_v24, 4  ;;  %v6696_v8 = vld [vmem:[%s8066_s14 + $0x8c] sm:$0x1]  ;;  %v6346_v21 = vld [vmem:[%s8066_s14 + $0x88] sm:$0xf] }
 0x114   : > { %v6753_v36 = vcombine.low %v8930_v16, %v8947_v30  ;;  %v2772_v39 = vshll.u32 %v6340_v28, 16  ;;  %v2768_v43 = vrot.slane %v2766_v34, 5  ;;  %v2776_v41 = vshrl.u32 %v6340_v28, 16 }
 0x115   : > { %7551 = vmatmul.mubr.bf16.vlgmr.msra.gmra.mrb[0].mxu0 %v6748_v61  ;;  %v2782_v44 = vshll.u32 %v6341_v31, 16  ;;  %v8962_v46 = vsel %vm8189_vm5, %v5352_v38, %v5353_v25  ;;  %v6723_v49 = vrot.slane %v6691_v35, 9  ;;  %v5357_v50 = vrot.slane %v6692_v40, 5  ;;  %v6347_v31 = vld [vmem:[%s8066_s14 + $0x8c] sm:$0x1] }
 0x116   : > { %7554 = vmatprep.mubr.bf16.mxu0 %v6749_v0  ;;  %v6754_v52 = vcombine.low %v8955_v37, %v8962_v46  ;;  %v2778_v54 = vrot.slane %v2776_v41, 4  ;;  %v5360_v61 = vrot.slane %v6693_v27, 5  ;;  %v2787_v56 = vshrl.u32 %v6342_v45, 16  ;;  %v6697_v27 = vld [vmem:[%s8066_s14 + $0x90] sm:$0xe] }
 0x117   : > { %7331 = vmatmul.mubr.bf16.gmra.mrb[20].mxu1 %v7978_v42  ;;  %v2765_v42 = vrot.slane %v2763_v32, 4  ;;  %v2784_v55 = vrot.slane %v2782_v44, 5  ;;  %v8970_v58 = vsel %vm8189_vm5, %v6723_v49, %v5357_v50  ;;  %v5359_v59 = vrot.slane %v5357_v50, 4 }
 0x118   : > { %7334 = vmatprep.mubr.bf16.mxu1 %v7979_v48  ;;  %v2774_v48 = vrot.slane %v2772_v39, 5  ;;  %v2790_v1 = vshll.u32 %v6342_v45, 16  ;;  %v2796_v2 = vshll.u32 %v6343_v51, 16  ;;  %v2789_v5 = vrot.slane %v2787_v56, 4  ;;  %v6698_v45 = vld [vmem:[%s8066_s14 + $0x94] sm:$0xf] }
 0x119   : > { %v2769_v53 = vor.u32 %v2768_v43, %v2765_v42  ;;  %v8976_v18 = vsel %vm8189_vm5, %v5359_v59, %v5360_v61  ;;  %v2800_v6 = vshrl.u32 %v6343_v51, 16  ;;  %v2806_v7 = vshll.u32 %v6344_v57, 16  ;;  %v6349_v57 = vld [vmem:[%s8066_s14 + $0x94] sm:$0xf] }
 0x11a   : > { %v2779_v0 = vor.u32 %v2778_v54, %v2774_v48  ;;  %v6755_v12 = vcombine.low %v8970_v58, %v8976_v18  ;;  %v2792_v13 = vrot.slane %v2790_v1, 5  ;;  %v6724_v20 = vrot.slane %v6694_v62, 9  ;;  %v6348_v54 = vld [vmem:[%s8066_s14 + $0x90] sm:$0xf]  ;;  %v6700_v1 = vld [vmem:[%s8066_s14 + $0x9c] sm:$0xe] }
 0x11b   : > { %v2770_v63 = vrot.slane %v2769_v53, 4  ;;  %v2802_v17 = vrot.slane %v2800_v6, 4  ;;  %v2808_v19 = vrot.slane %v2806_v7, 5  ;;  %v5364_v24 = vrot.slane %v6695_v3, 5  ;;  %v6699_v53 = vld [vmem:[%s8066_s14 + $0x98] sm:$0x1] }
 0x11c   : > { %v2780_v11 = vrot.slane %v2779_v0, 4  ;;  %v5367_v25 = vrot.slane %v6696_v8, 5  ;;  %v2820_v40 = vshll.u32 %v6346_v21, 16  ;;  %v2824_v44 = vshrl.u32 %v6346_v21, 16  ;;  %v6701_v7 = vld [vmem:[%s8066_s14 + $0xa0] sm:$0xf] }
 0x11d   : > { %7555 = vmatmul.mubr.bf16.gmra.mrb[4].mxu0 %v6750_v14  ;;  %v2775_v10 = vsel %vm8089_vm2, %v2770_v63, %v2774_v48  ;;  %v6345_v14 = vld [vmem:[%s8066_s14 + $0x84] sm:$0xf]  ;;  %v8991_v38 = vsel %vm8189_vm5, %v6724_v20, %v5364_v24  ;;  %v5366_v39 = vrot.slane %v5364_v24, 4  ;;  %v2830_v51 = vshll.u32 %v6347_v31, 16  ;;  %v6350_v63 = vld [vmem:[%s8066_s14 + $0x98] sm:$0x1] }
 0x11e   : > { %7558 = vmatprep.mubr.bf16.mxu0 %v6751_v22  ;;  %v2785_v22 = vsel %vm8089_vm2, %v2780_v11, %v2784_v55  ;;  %v2811_v32 = vshrl.u32 %v6345_v14, 16  ;;  %v2814_v34 = vshll.u32 %v6345_v14, 16  ;;  %v2822_v50 = vrot.slane %v2820_v40, 5  ;;  %v6351_v20 = vld [vmem:[%s8066_s14 + $0x9c] sm:$0xf] }
 0x11f   : > { %7335 = vmatmul.mubr.bf16.gmra.mrb[24].mxu1 %v7980_v15  ;;  %v2798_v15 = vrot.slane %v2796_v2, 5  ;;  %v6387_v26 = vcombine.low %v2775_v10, %v2785_v22  ;;  %v9002_v49 = vsel %vm8189_vm5, %v5366_v39, %v5367_v25  ;;  %v2826_v55 = vrot.slane %v2824_v44, 4  ;;  %v6352_v25 = vld [vmem:[%s8066_s14 + $0xa0] sm:$0xf]  ;;  %v6353_v39 = vld [vmem:[%s8066_s14 + $0xa4] sm:$0x1] }
 0x120   : > { %7338 = vmatprep.mubr.bf16.mxu1 %v7981_v23  ;;  %v2793_v23 = vor.u32 %v2792_v13, %v2789_v5  ;;  %v2813_v43 = vrot.slane %v2811_v32, 4  ;;  %v2816_v41 = vrot.slane %v2814_v34, 5  ;;  %v6756_v47 = vcombine.low %v8991_v38, %v9002_v49  ;;  %v6702_v13 = vld [vmem:[%s8066_s14 + $0xa4] sm:$0x1]  ;;  %v6704_v44 = vld [vmem:[%s8066_s14 + $0xac] sm:$0xf] }
 0x121   : > { %v2803_v28 = vor.u32 %v2802_v17, %v2798_v15  ;;  %v2832_v61 = vrot.slane %v2830_v51, 5  ;;  %v6725_v56 = vrot.slane %v6697_v27, 9  ;;  %v5371_v62 = vrot.slane %v6698_v45, 5 }
 0x122   : > { %v2794_v35 = vrot.slane %v2793_v23, 4  ;;  %v2827_v16 = vor.u32 %v2826_v55, %v2822_v50  ;;  %v5374_v30 = vrot.slane %v6699_v53, 5  ;;  %v2838_v5 = vshll.u32 %v6348_v54, 16  ;;  %v6705_v53 = vld [vmem:[%s8066_s14 + $0xb0] sm:$0x1] }
 0x123   : > { %v2804_v42 = vrot.slane %v2803_v28, 4  ;;  %v9018_v2 = vsel %vm8189_vm5, %v6725_v56, %v5371_v62  ;;  %v5373_v3 = vrot.slane %v5371_v62, 4  ;;  %v2844_v6 = vshll.u32 %v6349_v57, 16 }
 0x124   : > { %v2799_v48 = vsel %vm8089_vm2, %v2794_v35, %v2798_v15  ;;  %v2848_v11 = vshrl.u32 %v6349_v57, 16  ;;  %v2840_v15 = vrot.slane %v2838_v5, 5  ;;  %v6726_v24 = vrot.slane %v6700_v1, 9 }
 0x125   : > { %7559 = vmatmul.mubr.bf16.gmra.mrb[8].mxu0 %v6752_v29  ;;  %v2809_v60 = vsel %vm8089_vm2, %v2804_v42, %v2808_v19  ;;  %v2817_v29 = vor.u32 %v2816_v41, %v2813_v43  ;;  %v5375_v14 = vsel %vm8189_vm5, %v5373_v3, %v5374_v30  ;;  %v2846_v17 = vrot.slane %v2844_v6, 5  ;;  %v6703_v43 = vld [vmem:[%s8066_s14 + $0xa8] sm:$0xe] }
 0x126   : > { %7562 = vmatprep.mubr.bf16.mxu0 %v6753_v36  ;;  %v6388_v59 = vcombine.low %v2799_v48, %v2809_v60  ;;  %v2835_v36 = vshrl.u32 %v6348_v54, 16  ;;  %v2854_v19 = vshll.u32 %v6350_v63, 16  ;;  %v6757_v22 = vcombine.low %v9018_v2, %v5375_v14  ;;  %v6354_v54 = vld [vmem:[%s8066_s14 + $0xa8] sm:$0xf]  ;;  %v6706_v2 = vld [vmem:[%s8066_s14 + $0xb4] sm:$0xe] }
 0x127   : > { %7339 = vmatmul.mubr.bf16.gmra.mrb[28].mxu1 %v7982_v9  ;;  %v2818_v0 = vrot.slane %v2817_v29, 4  ;;  %v2828_v9 = vrot.slane %v2827_v16, 4  ;;  %v2850_v23 = vrot.slane %v2848_v11, 4  ;;  %v5378_v32 = vrot.slane %v6701_v7, 5  ;;  %v6708_v14 = vld [vmem:[%s8066_s14 + $0xbc] sm:$0x1] }
 0x128   : > { %7374 = vmatprep.mubr.bf16.mxu1 %v6387_v26  ;;  %v2837_v10 = vrot.slane %v2835_v36, 4  ;;  %v2856_v31 = vrot.slane %v2854_v19, 5  ;;  %v5381_v35 = vrot.slane %v6702_v13, 5  ;;  %v2859_v40 = vshrl.u32 %v6351_v20, 16 }
 0x129   : > { %v2823_v8 = vsel %vm8089_vm2, %v2818_v0, %v2822_v50  ;;  %v2833_v21 = vsel %vm8089_vm2, %v2828_v9, %v2832_v61  ;;  %v2851_v34 = vor.u32 %v2850_v23, %v2846_v17  ;;  %v2862_v27 = vshll.u32 %v6351_v20, 16  ;;  %v6356_v0 = vld [vmem:[%s8066_s14 + $0xb0] sm:$0x1]  ;;  %v6358_v23 = vld [vmem:[%s8066_s14 + $0xb8] sm:$0xf] }
 0x12a   : > { %v6389_v26 = vcombine.low %v2823_v8, %v2833_v21  ;;  %v2841_v28 = vor.u32 %v2840_v15, %v2837_v10  ;;  %v9040_v46 = vsel %vm8189_vm5, %v6726_v24, %v5378_v32  ;;  %v2868_v42 = vshll.u32 %v6352_v25, 16  ;;  %v6707_v8 = vld [vmem:[%s8066_s14 + $0xb8] sm:$0xf] }
 0x12b   : > { %v2852_v58 = vrot.slane %v2851_v34, 4  ;;  %v2861_v18 = vrot.slane %v2859_v40, 4  ;;  %v2872_v41 = vshrl.u32 %v6352_v25, 16  ;;  %v2878_v51 = vshll.u32 %v6353_v39, 16  ;;  %v6359_v34 = vld [vmem:[%s8066_s14 + $0xbc] sm:$0x1] }
 0x12c   : > { %v2842_v37 = vrot.slane %v2841_v28, 4  ;;  %v2870_v50 = vrot.slane %v2868_v42, 5  ;;  %v6727_v62 = vrot.slane %v6703_v43, 9  ;;  %v5385_v63 = vrot.slane %v6704_v44, 5 }
 0x12d   : > { %7563 = vmatmul.mubr.bf16.gmra.mrb[12].mxu0 %v6754_v52  ;;  %v5380_v52 = vrot.slane %v5378_v32, 4  ;;  %v2857_v60 = vsel %vm8089_vm2, %v2852_v58, %v2856_v31  ;;  %v2874_v57 = vrot.slane %v2872_v41, 4  ;;  %v2880_v56 = vrot.slane %v2878_v51, 5  ;;  %v6360_v51 = vld [vmem:[%s8066_s14 + $0xc0] sm:$0xf] }
 0x12e   : > { %7566 = vmatprep.mubr.bf16.mxu0 %v6755_v12  ;;  %v2864_v12 = vrot.slane %v2862_v27, 5  ;;  %v2847_v45 = vsel %vm8089_vm2, %v2842_v37, %v2846_v17  ;;  %v5388_v36 = vrot.slane %v6705_v53, 5  ;;  %v2883_v1 = vshrl.u32 %v6354_v54, 16  ;;  %v6357_v17 = vld [vmem:[%s8066_s14 + $0xb4] sm:$0xf] }
 0x12f   : > { %7375 = vmatmul.mubr.bf16.vlgmr.msra.gmra.mrb[16].mxu1 %v6388_v59  ;;  %v9048_v48 = vsel %vm8189_vm5, %v5380_v52, %v5381_v35  ;;  %v6355_v59 = vld [vmem:[%s8066_s14 + $0xac] sm:$0xf]  ;;  %v6390_v61 = vcombine.low %v2847_v45, %v2857_v60  ;;  %v2875_v30 = vor.u32 %v2874_v57, %v2870_v50  ;;  %v5386_v3 = vsel %vm8189_vm5, %v6727_v62, %v5385_v63  ;;  %v6709_v52 = vld [vmem:[%s8066_s14 + $0xc0] sm:$0xe] }
 0x130   : > { %7378 = vmatprep.mubr.bf16.mxu1 %v6389_v26  ;;  %v6758_v29 = vcombine.low %v9040_v46, %v9048_v48  ;;  %v2865_v55 = vor.u32 %v2864_v12, %v2861_v18  ;;  %v5387_v5 = vrot.slane %v5385_v63, 4  ;;  %v2886_v6 = vshll.u32 %v6354_v54, 16  ;;  %v6710_v12 = vld [vmem:[%s8066_s14 + $0xc4] sm:$0xf] }
 0x131   : > { %v2892_v7 = vshll.u32 %v6355_v59, 16  ;;  %v2876_v10 = vrot.slane %v2875_v30, 4  ;;  %v2885_v11 = vrot.slane %v2883_v1, 4  ;;  %v2896_v13 = vshrl.u32 %v6355_v59, 16 }
 0x132   : > { %v2866_v16 = vrot.slane %v2865_v55, 4  ;;  %v5389_v38 = vsel %vm8189_vm5, %v5387_v5, %v5388_v36  ;;  %v2888_v49 = vrot.slane %v2886_v6, 5  ;;  %v2902_v15 = vshll.u32 %v6356_v0, 16  ;;  %v6712_v5 = vld [vmem:[%s8066_s14 + $0xcc] sm:$0xe] }
 0x133   : > { %v2881_v19 = vsel %vm8089_vm2, %v2876_v10, %v2880_v56  ;;  %v6759_v20 = vcombine.low %v5386_v3, %v5389_v38  ;;  %v2898_v21 = vrot.slane %v2896_v13, 4  ;;  %v5392_v28 = vrot.slane %v6707_v8, 5  ;;  %v6713_v10 = vld [vmem:[%s8066_s14 + $0xd0] sm:$0xf] }
 0x134   : > { %v2871_v9 = vsel %vm8089_vm2, %v2866_v16, %v2870_v50  ;;  %v2889_v25 = vor.u32 %v2888_v49, %v2885_v11  ;;  %v2904_v26 = vrot.slane %v2902_v15, 5  ;;  %v5395_v32 = vrot.slane %v6708_v14, 5  ;;  %v6711_v50 = vld [vmem:[%s8066_s14 + $0xc8] sm:$0x1]  ;;  %v6714_v49 = vld [vmem:[%s8066_s14 + $0xd4] sm:$0x1] }
 0x135   : > { %7567 = vmatmul.mubr.bf16.gmra.mrb[16].mxu0 %v6756_v47  ;;  %v2894_v47 = vrot.slane %v2892_v7, 5  ;;  %v6391_v24 = vcombine.low %v2871_v9, %v2881_v19  ;;  %v2907_v35 = vshrl.u32 %v6357_v17, 16  ;;  %v2910_v39 = vshll.u32 %v6357_v17, 16  ;;  %v6362_v16 = vld [vmem:[%s8066_s14 + $0xc8] sm:$0x1] }
 0x136   : > { %7570 = vmatprep.mubr.bf16.mxu0 %v6757_v22  ;;  %v6728_v22 = vrot.slane %v6706_v2, 9  ;;  %v2890_v40 = vrot.slane %v2889_v25, 4  ;;  %v5394_v37 = vrot.slane %v5392_v28, 4  ;;  %v2916_v46 = vshll.u32 %v6358_v23, 16 }
 0x137   : > { %7379 = vmatmul.mubr.bf16.gmra.mrb[20].mxu1 %v6390_v61  ;;  %v2899_v31 = vor.u32 %v2898_v21, %v2894_v47  ;;  %v2909_v43 = vrot.slane %v2907_v35, 4  ;;  %v2912_v58 = vrot.slane %v2910_v39, 5  ;;  %v2920_v18 = vshrl.u32 %v6358_v23, 16 }
 0x138   : > { %7382 = vmatprep.mubr.bf16.mxu1 %v6391_v24  ;;  %v5393_v27 = vsel %vm8189_vm5, %v6728_v22, %v5392_v28  ;;  %v2895_v41 = vsel %vm8089_vm2, %v2890_v40, %v2894_v47  ;;  %v5396_v44 = vsel %vm8189_vm5, %v5394_v37, %v5395_v32  ;;  %v2918_v45 = vrot.slane %v2916_v46, 5 }
 0x139   : > { %v2900_v42 = vrot.slane %v2899_v31, 4  ;;  %v2926_v48 = vshll.u32 %v6359_v34, 16  ;;  %v6760_v54 = vcombine.low %v5393_v27, %v5396_v44  ;;  %v2913_v60 = vor.u32 %v2912_v58, %v2909_v43 }
 0x13a   : > { %v2922_v55 = vrot.slane %v2920_v18, 4  ;;  %v6729_v61 = vrot.slane %v6709_v52, 9  ;;  %v5399_v56 = vrot.slane %v6710_v12, 5  ;;  %v5402_v0 = vrot.slane %v6711_v50, 5 }
 0x13b   : > { %v2905_v53 = vsel %vm8089_vm2, %v2900_v42, %v2904_v26  ;;  %v2928_v59 = vrot.slane %v2926_v48, 5  ;;  %v2914_v62 = vrot.slane %v2913_v60, 4  ;;  %v2931_v30 = vshrl.u32 %v6360_v51, 16 }
 0x13c   : > { %v6392_v57 = vcombine.low %v2895_v41, %v2905_v53  ;;  %v2923_v63 = vor.u32 %v2922_v55, %v2918_v45  ;;  %v5400_v36 = vsel %vm8189_vm5, %v6729_v61, %v5399_v56  ;;  %v5401_v1 = vrot.slane %v5399_v56, 4 }
 0x13d   : > { %7571 = vmatmul.mubr.bf16.gmra.mrb[20].mxu0 %v6758_v29  ;;  %v6361_v29 = vld [vmem:[%s8066_s14 + $0xc4] sm:$0xf]  ;;  %v2934_v2 = vshll.u32 %v6360_v51, 16  ;;  %v2919_v6 = vsel %vm8089_vm2, %v2914_v62, %v2918_v45  ;;  %v2933_v8 = vrot.slane %v2931_v30, 4  ;;  %v2950_v38 = vshll.u32 %v6362_v16, 16 }
 0x13e   : > { %7574 = vmatprep.mubr.bf16.mxu0 %v6759_v20  ;;  %v2940_v3 = vshll.u32 %v6361_v29, 16  ;;  %v2924_v7 = vrot.slane %v2923_v63, 4  ;;  %v2944_v9 = vshrl.u32 %v6361_v29, 16  ;;  %v5403_v11 = vsel %vm8189_vm5, %v5401_v1, %v5402_v0 }
 0x13f   : > { %7383 = vmatmul.mubr.bf16.gmra.mrb[24].mxu1 %v6392_v57  ;;  %v2936_v13 = vrot.slane %v2934_v2, 5  ;;  %v6761_v15 = vcombine.low %v5400_v36, %v5403_v11  ;;  %v6730_v19 = vrot.slane %v6712_v5, 9  ;;  %v5406_v22 = vrot.slane %v6713_v10, 5 }
 0x140   : > { %v2942_v14 = vrot.slane %v2940_v3, 5  ;;  %v2929_v47 = vsel %vm8089_vm2, %v2924_v7, %v2928_v59  ;;  %v2946_v17 = vrot.slane %v2944_v9, 4  ;;  %v2952_v24 = vrot.slane %v2950_v38, 5 }
 0x141   : > { %v6393_v20 = vcombine.low %v2919_v6, %v2929_v47  ;;  %v2937_v21 = vor.u32 %v2936_v13, %v2933_v8  ;;  %v5409_v25 = vrot.slane %v6714_v49, 5  ;;  %v5407_v28 = vsel %vm8189_vm5, %v6730_v19, %v5406_v22 }
 0x142   : > { %v2947_v23 = vor.u32 %v2946_v17, %v2942_v14  ;;  %v5408_v31 = vrot.slane %v5406_v22, 4 }
 0x143   : > { %7386 = vmatprep.mubr.bf16.mxu1 %v6393_v20  ;;  %v2938_v26 = vrot.slane %v2937_v21, 4 }
 0x144   : > { %v2948_v32 = vrot.slane %v2947_v23, 4  ;;  %v5410_v35 = vsel %vm8189_vm5, %v5408_v31, %v5409_v25 }
 0x145   : > { %7575 = vmatmul.mubr.bf16.gmra.mrb[24].mxu0 %v6760_v54  ;;  %v2943_v34 = vsel %vm8089_vm2, %v2938_v26, %v2942_v14  ;;  %v6762_v40 = vcombine.low %v5407_v28, %v5410_v35  ;;  %v9119_v54 = vld [vmem:[%s9184_s2] ss:$0 sm:$0xff] }
 0x146   : > { %7578 = vmatprep.mubr.bf16.mxu0 %v6761_v15  ;;  %v2953_v39 = vsel %vm8089_vm2, %v2948_v32, %v2952_v24 }
 0x147   : > { %v6394_v27 = vcombine.low %v2943_v34, %v2953_v39 }
 0x149   : > { %7387 = vmatmul.mubr.bf16.gmra.mrb[28].mxu1 %v6394_v27 }
 0x14d   : > { %7579 = vmatmul.mubr.bf16.gmra.mrb[28].mxu0 %v6762_v40 }
 0x1c2   : > { %v7312_v37 = vpop.f32.mrb[0].mxu1 }
 0x1c3   : > { %v2331_v46 = vpop.f32.mrb[1].mxu1 }
 0x1c4   : > { %v7313_v52 = vpop.f32.mrb[2].mxu1 }
 0x1c5   : > { %v2334_v42 = vpop.f32.mrb[3].mxu1 }
 0x1ca   : > { %v7316_v43 = vpop.f32.mrb[4].mxu1 }
 0x1cb   : > { %v2347_v58 = vpop.f32.mrb[5].mxu1 }
 0x1cc   : > { %v7317_v18 = vpop.f32.mrb[6].mxu1 }
 0x1cd   : > { %v2350_v12 = vpop.f32.mrb[7].mxu1 }
 0x1d2   : > { %v7320_v41 = vpop.f32.mrb[8].mxu1 }
 0x1d3   : > { %v2363_v44 = vpop.f32.mrb[9].mxu1 }
 0x1d4   : > { %v7321_v45 = vpop.f32.mrb[10].mxu1 }
 0x1d5   : > { %v2366_v4 = vpop.f32.mrb[11].mxu1 }
 0x1da   : > { %v9108_v48 = vpop.f32.mrb[12].mxu1 }
 0x1db   : > { %v9110_v33 = vpop.f32.mrb[13].mxu1 }
 0x1dc   : > { %v9112_v50 = vpop.f32.mrb[14].mxu1 }
 0x1dd   : > { %v9114_v51 = vpop.f32.mrb[15].mxu1 }
 0x1e8   : > { %v7552_v53 = vpop.f32.mrb[0].mxu0 }
 0x1e9   : > { %v7598_v60 = vadd.f32 %v7552_v53, %v7312_v37  ;;  %v5606_v55 = vpop.f32.mrb[1].mxu0 }
 0x1ea   : > { %v7599_v29 = vadd.f32 %v5606_v55, %v2331_v46  ;;  %v7553_v57 = vpop.f32.mrb[2].mxu0 }
 0x1eb   : > { %v5838_v59 = vadd.f32 %v7598_v60, %v9119_v54  ;;  %v7600_v61 = vadd.f32 %v7553_v57, %v7313_v52  ;;  %v5609_v56 = vpop.f32.mrb[3].mxu0 }
 0x1ec   : > { %v5836_v62 = vadd.f32 %v7599_v29, %v9119_v54  ;;  %v7601_v63 = vadd.f32 %v5609_v56, %v2334_v42 }
 0x1ed   : > { %v5839_v0 = vadd.f32 %v7600_v61, %v9119_v54  ;;  %v5870_v30 = vmax.f32 %v5838_v59, 0.0 }
 0x1ee   : > { %v5837_v16 = vadd.f32 %v7601_v63, %v9119_v54  ;;  %v5868_v1 = vmax.f32 %v5836_v62, 0.0 }
 0x1ef   : > { %v5871_v36 = vmax.f32 %v5839_v0, 0.0 }
 0x1f0   : > { %v5869_v2 = vmax.f32 %v5837_v16, 0.0  ;;  %v7556_v3 = vpop.f32.mrb[4].mxu0 }
 0x1f1   : > { %v6847_v5 = vpack.c.bf16 %v5871_v36, %v5870_v30  ;;  %v7602_v6 = vadd.f32 %v7556_v3, %v7316_v43  ;;  %v5622_v7 = vpop.f32.mrb[5].mxu0 }
 0x1f2   : > { %v6842_v8 = vpack.c.bf16 %v5869_v2, %v5868_v1  ;;  %v7603_v9 = vadd.f32 %v5622_v7, %v2347_v58  ;;  %v7557_v10 = vpop.f32.mrb[6].mxu0 }
 0x1f3   : > { %6919 = vst [vmem:[%s9129_s10 + $0x8] sm:$0xff] %v6847_v5   ;;  %v5842_v11 = vadd.f32 %v7602_v6, %v9119_v54  ;;  %v7604_v13 = vadd.f32 %v7557_v10, %v7317_v18  ;;  %v5625_v14 = vpop.f32.mrb[7].mxu0 }
 0x1f4   : > { %6843 = vst [vmem:[%s9129_s10] sm:$0xff] %v6842_v8   ;;  %v5840_v38 = vadd.f32 %v7603_v9, %v9119_v54  ;;  %v7605_v49 = vadd.f32 %v5625_v14, %v2350_v12 }
 0x1f5   : > { %v5843_v47 = vadd.f32 %v7604_v13, %v9119_v54  ;;  %v5874_v17 = vmax.f32 %v5842_v11, 0.0 }
 0x1f6   : > { %v5841_v15 = vadd.f32 %v7605_v49, %v9119_v54  ;;  %v5872_v20 = vmax.f32 %v5840_v38, 0.0 }
 0x1f7   : > { %v5875_v19 = vmax.f32 %v5843_v47, 0.0 }
 0x1f8   : > { %v5873_v21 = vmax.f32 %v5841_v15, 0.0  ;;  %v7560_v22 = vpop.f32.mrb[8].mxu0 }
 0x1f9   : > { %v6857_v23 = vpack.c.bf16 %v5875_v19, %v5874_v17  ;;  %v7606_v24 = vadd.f32 %v7560_v22, %v7320_v41  ;;  %v5638_v25 = vpop.f32.mrb[9].mxu0 }
 0x1fa   : > { %v6852_v26 = vpack.c.bf16 %v5873_v21, %v5872_v20  ;;  %v7607_v28 = vadd.f32 %v5638_v25, %v2363_v44  ;;  %v7561_v31 = vpop.f32.mrb[10].mxu0 }
 0x1fb   : > { %6921 = vst [vmem:[%s9129_s10 + $0x18] sm:$0xff] %v6857_v23   ;;  %v5846_v32 = vadd.f32 %v7606_v24, %v9119_v54  ;;  %v7608_v34 = vadd.f32 %v7561_v31, %v7321_v45  ;;  %v5641_v35 = vpop.f32.mrb[11].mxu0 }
 0x1fc   : > { %6920 = vst [vmem:[%s9129_s10 + $0x10] sm:$0xff] %v6852_v26   ;;  %v5844_v39 = vadd.f32 %v7607_v28, %v9119_v54  ;;  %v7609_v40 = vadd.f32 %v5641_v35, %v2366_v4 }
 0x1fd   : > { %v5847_v27 = vadd.f32 %v7608_v34, %v9119_v54  ;;  %v5878_v52 = vmax.f32 %v5846_v32, 0.0 }
 0x1fe   : > { %v5845_v37 = vadd.f32 %v7609_v40, %v9119_v54  ;;  %v5876_v58 = vmax.f32 %v5844_v39, 0.0 }
 0x1ff   : > { %v5879_v42 = vmax.f32 %v5847_v27, 0.0 }
 0x200   : > { %v5877_v18 = vmax.f32 %v5845_v37, 0.0  ;;  %v7564_v12 = vpop.f32.mrb[12].mxu0 }
 0x201   : > { %v6867_v44 = vpack.c.bf16 %v5879_v42, %v5878_v52  ;;  %v7610_v45 = vadd.f32 %v7564_v12, %v9108_v48  ;;  %v5654_v53 = vpop.f32.mrb[13].mxu0 }
 0x202   : > { %v7376_v46 = vpop.f32.mrb[16].mxu1  ;;  %v6862_v4 = vpack.c.bf16 %v5877_v18, %v5876_v58  ;;  %v7611_v55 = vadd.f32 %v5654_v53, %v9110_v33  ;;  %v7565_v29 = vpop.f32.mrb[14].mxu0 }
 0x203   : > { %v3213_v43 = vpop.f32.mrb[17].mxu1  ;;  %6923 = vst [vmem:[%s9129_s10 + $0x28] sm:$0xff] %v6867_v44   ;;  %v5850_v57 = vadd.f32 %v7610_v45, %v9119_v54  ;;  %v7612_v59 = vadd.f32 %v7565_v29, %v9112_v50  ;;  %v5657_v61 = vpop.f32.mrb[15].mxu0 }
 0x204   : > { %v7377_v41 = vpop.f32.mrb[18].mxu1  ;;  %6922 = vst [vmem:[%s9129_s10 + $0x20] sm:$0xff] %v6862_v4   ;;  %v5848_v56 = vadd.f32 %v7611_v55, %v9119_v54  ;;  %v7613_v62 = vadd.f32 %v5657_v61, %v9114_v51 }
 0x205   : > { %v3216_v60 = vpop.f32.mrb[19].mxu1  ;;  %v5851_v63 = vadd.f32 %v7612_v59, %v9119_v54  ;;  %v5882_v0 = vmax.f32 %v5850_v57, 0.0 }
 0x206   : > { %v5849_v48 = vadd.f32 %v7613_v62, %v9119_v54  ;;  %v5880_v33 = vmax.f32 %v5848_v56, 0.0 }
 0x207   : > { %v5883_v16 = vmax.f32 %v5851_v63, 0.0 }
 0x208   : > { %v5881_v30 = vmax.f32 %v5849_v48, 0.0  ;;  %v7568_v36 = vpop.f32.mrb[16].mxu0 }
 0x209   : > { %v6877_v2 = vpack.c.bf16 %v5883_v16, %v5882_v0  ;;  %v7614_v50 = vadd.f32 %v7568_v36, %v7376_v46  ;;  %v5670_v3 = vpop.f32.mrb[17].mxu0 }
 0x20a   : > { %v7380_v1 = vpop.f32.mrb[20].mxu1  ;;  %v6872_v6 = vpack.c.bf16 %v5881_v30, %v5880_v33  ;;  %v7615_v7 = vadd.f32 %v5670_v3, %v3213_v43  ;;  %v7569_v8 = vpop.f32.mrb[18].mxu0 }
 0x20b   : > { %v3229_v5 = vpop.f32.mrb[21].mxu1  ;;  %6925 = vst [vmem:[%s9129_s10 + $0x38] sm:$0xff] %v6877_v2   ;;  %v5854_v9 = vadd.f32 %v7614_v50, %v9119_v54  ;;  %v7616_v10 = vadd.f32 %v7569_v8, %v7377_v41  ;;  %v5673_v11 = vpop.f32.mrb[19].mxu0 }
 0x20c   : > { %v7381_v51 = vpop.f32.mrb[22].mxu1  ;;  %6924 = vst [vmem:[%s9129_s10 + $0x30] sm:$0xff] %v6872_v6   ;;  %v5852_v14 = vadd.f32 %v7615_v7, %v9119_v54  ;;  %v7617_v38 = vadd.f32 %v5673_v11, %v3216_v60 }
 0x20d   : > { %v3232_v13 = vpop.f32.mrb[23].mxu1  ;;  %v5855_v49 = vadd.f32 %v7616_v10, %v9119_v54  ;;  %v5886_v15 = vmax.f32 %v5854_v9, 0.0 }
 0x20e   : > { %v5853_v47 = vadd.f32 %v7617_v38, %v9119_v54  ;;  %v5884_v19 = vmax.f32 %v5852_v14, 0.0 }
 0x20f   : > { %v5887_v17 = vmax.f32 %v5855_v49, 0.0 }
 0x210   : > { %v5885_v20 = vmax.f32 %v5853_v47, 0.0  ;;  %v7572_v21 = vpop.f32.mrb[20].mxu0 }
 0x211   : > { %v6887_v22 = vpack.c.bf16 %v5887_v17, %v5886_v15  ;;  %v7618_v23 = vadd.f32 %v7572_v21, %v7380_v1  ;;  %v5686_v24 = vpop.f32.mrb[21].mxu0 }
 0x212   : > { %v6882_v25 = vpack.c.bf16 %v5885_v20, %v5884_v19  ;;  %v7619_v26 = vadd.f32 %v5686_v24, %v3229_v5  ;;  %v7573_v28 = vpop.f32.mrb[22].mxu0  ;;  %v7384_v40 = vpop.f32.mrb[24].mxu1 }
 0x213   : > { %6927 = vst [vmem:[%s9129_s10 + $0x48] sm:$0xff] %v6887_v22   ;;  %v5858_v31 = vadd.f32 %v7618_v23, %v9119_v54  ;;  %v7620_v32 = vadd.f32 %v7573_v28, %v7381_v51  ;;  %v5689_v34 = vpop.f32.mrb[23].mxu0  ;;  %v3245_v37 = vpop.f32.mrb[25].mxu1 }
 0x214   : > { %6926 = vst [vmem:[%s9129_s10 + $0x40] sm:$0xff] %v6882_v25   ;;  %v5856_v35 = vadd.f32 %v7619_v26, %v9119_v54  ;;  %v7621_v39 = vadd.f32 %v5689_v34, %v3232_v13  ;;  %v7385_v52 = vpop.f32.mrb[26].mxu1 }
 0x215   : > { %v5859_v27 = vadd.f32 %v7620_v32, %v9119_v54  ;;  %v5890_v42 = vmax.f32 %v5858_v31, 0.0  ;;  %v3248_v58 = vpop.f32.mrb[27].mxu1 }
 0x216   : > { %v5857_v46 = vadd.f32 %v7621_v39, %v9119_v54  ;;  %v5888_v18 = vmax.f32 %v5856_v35, 0.0 }
 0x217   : > { %v5891_v43 = vmax.f32 %v5859_v27, 0.0 }
 0x218   : > { %v5889_v12 = vmax.f32 %v5857_v46, 0.0  ;;  %v7576_v41 = vpop.f32.mrb[24].mxu0 }
 0x219   : > { %v6897_v44 = vpack.c.bf16 %v5891_v43, %v5890_v42  ;;  %v7622_v45 = vadd.f32 %v7576_v41, %v7384_v40  ;;  %v5702_v53 = vpop.f32.mrb[25].mxu0 }
 0x21a   : > { %v6892_v60 = vpack.c.bf16 %v5889_v12, %v5888_v18  ;;  %v7623_v4 = vadd.f32 %v5702_v53, %v3245_v37  ;;  %v7577_v55 = vpop.f32.mrb[26].mxu0 }
 0x21b   : > { %6929 = vst [vmem:[%s9129_s10 + $0x58] sm:$0xff] %v6897_v44   ;;  %v5862_v29 = vadd.f32 %v7622_v45, %v9119_v54  ;;  %v7624_v57 = vadd.f32 %v7577_v55, %v7385_v52  ;;  %v5705_v59 = vpop.f32.mrb[27].mxu0 }
 0x21c   : > { %6928 = vst [vmem:[%s9129_s10 + $0x50] sm:$0xff] %v6892_v60   ;;  %v5860_v61 = vadd.f32 %v7623_v4, %v9119_v54  ;;  %v7625_v56 = vadd.f32 %v5705_v59, %v3248_v58  ;;  %v7388_v30 = vpop.f32.mrb[28].mxu1 }
 0x21d   : > { %v5863_v62 = vadd.f32 %v7624_v57, %v9119_v54  ;;  %v5894_v48 = vmax.f32 %v5862_v29, 0.0  ;;  %v3261_v50 = vpop.f32.mrb[29].mxu1 }
 0x21e   : > { %v5861_v63 = vadd.f32 %v7625_v56, %v9119_v54  ;;  %v5892_v16 = vmax.f32 %v5860_v61, 0.0  ;;  %v7389_v7 = vpop.f32.mrb[30].mxu1 }
 0x21f   : > { %v5895_v0 = vmax.f32 %v5863_v62, 0.0  ;;  %v3264_v10 = vpop.f32.mrb[31].mxu1 }
 0x220   : > { %v5893_v33 = vmax.f32 %v5861_v63, 0.0  ;;  %v7580_v36 = vpop.f32.mrb[28].mxu0 }
 0x221   : > { %v6907_v1 = vpack.c.bf16 %v5895_v0, %v5894_v48  ;;  %v7626_v2 = vadd.f32 %v7580_v36, %v7388_v30  ;;  %v5718_v3 = vpop.f32.mrb[29].mxu0 }
 0x222   : > { %v6902_v5 = vpack.c.bf16 %v5893_v33, %v5892_v16  ;;  %v7627_v6 = vadd.f32 %v5718_v3, %v3261_v50  ;;  %v7581_v8 = vpop.f32.mrb[30].mxu0 }
 0x223   : > { %6931 = vst [vmem:[%s9129_s10 + $0x68] sm:$0xff] %v6907_v1   ;;  %v5866_v51 = vadd.f32 %v7626_v2, %v9119_v54  ;;  %v7628_v9 = vadd.f32 %v7581_v8, %v7389_v7  ;;  %v5721_v11 = vpop.f32.mrb[31].mxu0 }
 0x224   : > { %6930 = vst [vmem:[%s9129_s10 + $0x60] sm:$0xff] %v6902_v5   ;;  %v5864_v13 = vadd.f32 %v7627_v6, %v9119_v54  ;;  %v7629_v14 = vadd.f32 %v5721_v11, %v3264_v10 }
 0x225   : > { %v5867_v38 = vadd.f32 %v7628_v9, %v9119_v54  ;;  %v5898_v47 = vmax.f32 %v5866_v51, 0.0 }
 0x226   : > { %v5865_v49 = vadd.f32 %v7629_v14, %v9119_v54  ;;  %v5896_v17 = vmax.f32 %v5864_v13, 0.0 }
 0x227   : > { %v5899_v15 = vmax.f32 %v5867_v38, 0.0 }
 0x228   : > { %v5897_v19 = vmax.f32 %v5865_v49, 0.0 }
 0x229   : > { %v6917_v20 = vpack.c.bf16 %v5899_v15, %v5898_v47 }
 0x22a   : > { %v6912_v21 = vpack.c.bf16 %v5897_v19, %v5896_v17 }
 0x22b   : > { %6933 = vst [vmem:[%s9129_s10 + $0x78] sm:$0xff] %v6917_v20  }
 0x22c   : > { %6932 = vst [vmem:[%s9129_s10 + $0x70] sm:$0xff] %v6912_v21  }
 0x22d PF: > { %s13_s12 = sadd.s32 1, %s7997_s12  }
 0x22e   : > { %p10_p4 = scmp.ge.s32.totalorder %s13_s12, 4  }
 0x230   :  { %12 = sbr.rel (!%p10_p4) target bundleno = 1 (0x1), region = 72 }

</bundles_post_ra>
